<compile_context>
chip_gen: v7x
topology: tpu7x:2x2x1
jax: 0.10.0
libtpu: 0.0.40
codegen_flags: <defaults>
</compile_context>

<pallas_src>
import functools

import jax
import jax.numpy as jnp
from jax.experimental import pallas as pl
from jax.experimental.pallas import tpu as pltpu

LANE = 128


def _rup(x, m=LANE):
    return ((x + m - 1) // m) * m


# ----------------------------- shared kernel math -----------------------------

def _masked_layer_norm(v, gamma, beta, d_real, eps=1e-5):
    """LayerNorm over the first d_real lanes of the last axis (two-pass var)."""
    lane = jax.lax.broadcasted_iota(jnp.int32, v.shape, v.ndim - 1)
    mask = lane < d_real
    vm = jnp.where(mask, v, 0.0)
    inv_d = jnp.float32(1.0 / d_real)
    mu = jnp.sum(vm, axis=-1, keepdims=True) * inv_d
    diff = jnp.where(mask, vm - mu, 0.0)
    var = jnp.sum(diff * diff, axis=-1, keepdims=True) * inv_d
    y = diff * jax.lax.rsqrt(var + eps) * gamma + beta
    return jnp.where(mask, y, 0.0)       # padded output lanes forced to zero


# ----------------------------- GCN layer kernel --------------------------------

def _gcn_layer_kernel(adj_ref, x_ref, w_ref, b_ref, out_ref):
    # (TILE_M, N) @ (N, Din) -> f32, then @ (Din, Hp) -> f32.
    # (A@X)@W is the right association under row tiling (X@W would otherwise be
    # recomputed for every row tile).
    t = jnp.dot(adj_ref[...], x_ref[...], preferred_element_type=jnp.float32)
    h = jnp.dot(t.astype(jnp.bfloat16), w_ref[...],
                preferred_element_type=jnp.float32)
    out_ref[...] = jnp.maximum(h + b_ref[...], 0.0).astype(jnp.bfloat16)


def gcn_layer(adj, x, w, b, *, tile_m):
    """relu(A_hat @ X @ W + b), row-tiled over the adjacency, parallel grid."""
    n_nodes = adj.shape[0]
    d_in = x.shape[1]
    d_hid = w.shape[1]
    assert n_nodes % tile_m == 0, "node count must be a multiple of tile_m"
    num_tiles = n_nodes // tile_m

    flops = 2 * n_nodes * n_nodes * d_in + 2 * n_nodes * d_in * d_hid
    bytes_accessed = (adj.size * 2 + x.size * 2 + w.size * 2 + b.size * 4
                      + n_nodes * d_hid * 2)

    return pl.pallas_call(
        _gcn_layer_kernel,
        out_shape=jax.ShapeDtypeStruct((n_nodes, d_hid), jnp.bfloat16),
        grid_spec=pltpu.PrefetchScalarGridSpec(
            num_scalar_prefetch=0,
            grid=(num_tiles,),
            in_specs=[
                pl.BlockSpec((tile_m, n_nodes), lambda i: (i, 0)),  # adj row tile (streamed)
                pl.BlockSpec((n_nodes, d_in), lambda i: (0, 0)),    # X resident
                pl.BlockSpec((d_in, d_hid), lambda i: (0, 0)),      # W resident
                pl.BlockSpec((1, d_hid), lambda i: (0, 0)),         # bias
            ],
            out_specs=pl.BlockSpec((tile_m, d_hid), lambda i: (i, 0)),
        ),
        compiler_params=pltpu.CompilerParams(
            dimension_semantics=("parallel",),
            vmem_limit_bytes=32 * 1024 * 1024),
        cost_estimate=pl.CostEstimate(flops=flops, transcendentals=0,
                                      bytes_accessed=bytes_accessed),
    )(adj, x, w, b)


# ----------------------------- head (pool + MLP blocks) ------------------------

def _make_head_kernel(n_layers, n_graphs, nodes_per_graph, real_dims):
    d_graph, d_pers_emb, d_out = real_dims

    def kernel(*refs):
        act_refs = refs[:n_layers]
        pi_ref = refs[n_layers]
        (gw_r, gb_r, gg_r, gbt_r,
         pw_r, pb_r, pg_r, pbt_r,
         fwg_r, fwp_r, fb_r, fg_r, fbt_r) = refs[n_layers + 1:n_layers + 14]
        out_ref = refs[n_layers + 14]

        # global_max_pool per layer: free-view reshape + one sublane reduce.
        pooled = []
        for a_ref in act_refs:
            a = a_ref[...]                                   # (N, Hp) bf16
            pooled.append(jnp.max(
                a.reshape(n_graphs, nodes_per_graph, a.shape[-1]), axis=1))
        jk = jnp.concatenate(pooled, axis=-1)                # (G, L*Hp) bf16

        # graph_block: single merged matmul over the JK concat.
        g = jnp.dot(jk, gw_r[...], preferred_element_type=jnp.float32) + gb_r[...]
        ge = jnp.maximum(
            _masked_layer_norm(g, gg_r[...], gbt_r[...], d_graph), 0.0)

        # pi_block.
        pe = jnp.dot(pi_ref[...], pw_r[...],
                     preferred_element_type=jnp.float32) + pb_r[...]
        pe = jnp.maximum(
            _masked_layer_norm(pe, pg_r[...], pbt_r[...], d_pers_emb), 0.0)

        # fc_block: split weight avoids the lane concat of (ge, pe).
        o = (jnp.dot(ge.astype(jnp.bfloat16), fwg_r[...],
                     preferred_element_type=jnp.float32)
             + jnp.dot(pe.astype(jnp.bfloat16), fwp_r[...],
                       preferred_element_type=jnp.float32)
             + fb_r[...])
        out_ref[...] = _masked_layer_norm(o, fg_r[...], fbt_r[...], d_out)

    return kernel


def head_forward(acts, pi, head_params, *, n_layers, n_graphs,
                 nodes_per_graph, real_dims, pad_out):
    inputs = tuple(acts) + (pi,) + tuple(head_params)
    kernel = _make_head_kernel(n_layers, n_graphs, nodes_per_graph, real_dims)
    return pl.pallas_call(
        kernel,
        out_shape=jax.ShapeDtypeStruct((n_graphs, pad_out), jnp.float32),
        in_specs=[pl.BlockSpec(memory_space=pltpu.MemorySpace.VMEM)] * len(inputs),
        out_specs=pl.BlockSpec(memory_space=pltpu.MemorySpace.VMEM),
        compiler_params=pltpu.CompilerParams(vmem_limit_bytes=32 * 1024 * 1024),
    )(*inputs)


def prodar_forward(adj, x, pi, conv_ws, conv_bs, head_params, *, n_layers,
                   n_graphs, nodes_per_graph, real_dims, pad_out, tile_m):
    h = x
    acts = []
    for l in range(n_layers):
        h = gcn_layer(adj, h, conv_ws[l], conv_bs[l], tile_m=tile_m)
        acts.append(h)
    return head_forward(acts, pi, head_params,
                        n_layers=n_layers, n_graphs=n_graphs,
                        nodes_per_graph=nodes_per_graph,
                        real_dims=real_dims, pad_out=pad_out)


# ------------------------------ JAX glue ---------------------------------------

def build_gcn_adj(edge_index, num_nodes):
    """Dense \\hat{A} = D^-1/2 (A + I) D^-1/2, messages flow src -> dst."""
    src, dst = edge_index
    a = jnp.zeros((num_nodes, num_nodes), jnp.float32)
    a = a.at[dst, src].set(1.0)
    diag = jnp.arange(num_nodes)
    a = a.at[diag, diag].set(1.0)                 # add_self_loops=True
    deg = a.sum(axis=1)
    dinv = 1.0 / jnp.sqrt(jnp.maximum(deg, 1.0))
    return a * dinv[:, None] * dinv[None, :]


def init_params(key, dim_node_feat, dim_node_hidden, n_graph_layers,
                dim_pers_feat, dim_pers_embedding, dim_graph_embedding, dim_out):
    """Deterministic synthetic parameters, stored as (in, out) f32 matrices."""
    params = []

    def lin(k, din, dout, scale=0.1):
        kw, kb = jax.random.split(k)
        w = jax.random.normal(kw, (din, dout), jnp.float32) * scale
        b = jax.random.normal(kb, (1, dout), jnp.float32) * scale
        return w, b

    keys = jax.random.split(key, n_graph_layers + 3)
    for i in range(n_graph_layers):
        din = dim_node_feat if i == 0 else dim_node_hidden
        w, b = lin(keys[i], din, dim_node_hidden)
        params += [w, b]
    w, b = lin(keys[n_graph_layers], n_graph_layers * dim_node_hidden,
               dim_graph_embedding)
    params += [w, b,
               jnp.ones((1, dim_graph_embedding), jnp.float32),
               jnp.zeros((1, dim_graph_embedding), jnp.float32)]
    w, b = lin(keys[n_graph_layers + 1], dim_pers_feat, dim_pers_embedding)
    params += [w, b,
               jnp.ones((1, dim_pers_embedding), jnp.float32),
               jnp.zeros((1, dim_pers_embedding), jnp.float32)]
    w, b = lin(keys[n_graph_layers + 2],
               dim_graph_embedding + dim_pers_embedding, dim_out)
    params += [w, b,
               jnp.ones((1, dim_out), jnp.float32),
               jnp.zeros((1, dim_out), jnp.float32)]
    return params


def _pad2(a, rows, cols):
    return jnp.zeros((rows, cols), a.dtype).at[:a.shape[0], :a.shape[1]].set(a)


def pack_params(flat_params, n_layers, dim_node_feat, dim_node_hidden,
                dim_graph_emb, dim_pers_feat, dim_pers_emb, dim_out):
    """Zero-pad every dim to 128 lanes; matmul weights -> bf16; merge JK weight."""
    Fp, Hp = _rup(dim_node_feat), _rup(dim_node_hidden)
    Gp, Pp = _rup(dim_graph_emb), _rup(dim_pers_feat)
    Ep, Op = _rup(dim_pers_emb), _rup(dim_out)
    H = dim_node_hidden
    p = list(flat_params)
    idx = 0

    conv_ws, conv_bs = [], []
    for i in range(n_layers):
        w, b = p[idx], p[idx + 1]; idx += 2
        din_p = Fp if i == 0 else Hp
        conv_ws.append(_pad2(w, din_p, Hp).astype(jnp.bfloat16))
        conv_bs.append(_pad2(b, 1, Hp))                              # f32

    gw, gb, gg, gbt = p[idx:idx + 4]; idx += 4
    # Merged JK weight: layer-l rows placed at lane-block offset l*Hp so the
    # graph_block is ONE (G, L*Hp) @ (L*Hp, Gp) matmul in the kernel.
    gw_m = jnp.zeros((n_layers * Hp, Gp), jnp.float32)
    for l in range(n_layers):
        gw_m = gw_m.at[l * Hp:l * Hp + H, :dim_graph_emb].set(
            gw[l * H:(l + 1) * H, :])
    head = [gw_m.astype(jnp.bfloat16),
            _pad2(gb, 1, Gp), _pad2(gg, 1, Gp), _pad2(gbt, 1, Gp)]

    pw, pb, pg, pbt = p[idx:idx + 4]; idx += 4
    head += [_pad2(pw, Pp, Ep).astype(jnp.bfloat16),
             _pad2(pb, 1, Ep), _pad2(pg, 1, Ep), _pad2(pbt, 1, Ep)]

    fw, fb, fg, fbt = p[idx:idx + 4]
    head += [_pad2(fw[:dim_graph_emb, :], Gp, Op).astype(jnp.bfloat16),
             _pad2(fw[dim_graph_emb:, :], Ep, Op).astype(jnp.bfloat16),
             _pad2(fb, 1, Op), _pad2(fg, 1, Op), _pad2(fbt, 1, Op)]
    return conv_ws, conv_bs, head


# ------------------------------ references -------------------------------------

def _ln(v, gamma, beta, eps=1e-5):
    mu = jnp.mean(v, axis=-1, keepdims=True)
    var = jnp.mean((v - mu) ** 2, axis=-1, keepdims=True)
    return (v - mu) * jax.lax.rsqrt(var + eps) * gamma + beta


def reference_forward_f32(adj, x, pi, flat_params, n_layers, n_graphs, npg):
    """Independent fp32 reference mirroring the PyTorch module (inference)."""
    p = list(flat_params)
    conv = [(p[2 * i], p[2 * i + 1]) for i in range(n_layers)]
    idx = 2 * n_layers
    gw, gb, gg, gbt = p[idx:idx + 4]; idx += 4
    pw, pb, pg, pbt = p[idx:idx + 4]; idx += 4
    fw, fb, fg, fbt = p[idx:idx + 4]

    h = x
    jk = []
    for (w, b) in conv:
        h = jnp.maximum(adj @ h @ w + b, 0.0)
        jk.append(h)
    jk = jnp.concatenate(jk, axis=1)
    pooled = jk.reshape(n_graphs, npg, -1).max(axis=1)
    ge = jnp.maximum(_ln(pooled @ gw + gb, gg, gbt), 0.0)
    pe = jnp.maximum(_ln(pi @ pw + pb, pg, pbt), 0.0)
    o = jnp.concatenate([ge, pe], axis=1) @ fw + fb
    return _ln(o, fg, fbt)


def reference_forward_bf16(adj, x, pi, flat_params, n_layers, n_graphs, npg):
    """Mirror of the kernel math (bf16 operands, f32 accumulation)."""
    bf = jnp.bfloat16
    p = list(flat_params)
    conv = [(p[2 * i], p[2 * i + 1]) for i in range(n_layers)]
    idx = 2 * n_layers
    gw, gb, gg, gbt = p[idx:idx + 4]; idx += 4
    pw, pb, pg, pbt = p[idx:idx + 4]; idx += 4
    fw, fb, fg, fbt = p[idx:idx + 4]
    d_graph = gb.shape[-1]

    adj_b = adj.astype(bf)
    h = x.astype(bf)
    pooled_parts = []
    for (w, b) in conv:
        t = jnp.dot(adj_b, h, preferred_element_type=jnp.float32)
        hh = jnp.dot(t.astype(bf), w.astype(bf),
                     preferred_element_type=jnp.float32)
        h = jnp.maximum(hh + b, 0.0).astype(bf)
        pooled_parts.append(h.reshape(n_graphs, npg, -1).max(axis=1))
    jk = jnp.concatenate(pooled_parts, axis=-1)

    g = jnp.dot(jk, gw.astype(bf), preferred_element_type=jnp.float32) + gb
    ge = jnp.maximum(_ln(g, gg, gbt), 0.0)
    pe = jnp.dot(pi.astype(bf), pw.astype(bf),
                 preferred_element_type=jnp.float32) + pb
    pe = jnp.maximum(_ln(pe, pg, pbt), 0.0)
    o = (jnp.dot(ge.astype(bf), fw[:d_graph, :].astype(bf),
                 preferred_element_type=jnp.float32)
         + jnp.dot(pe.astype(bf), fw[d_graph:, :].astype(bf),
                   preferred_element_type=jnp.float32)
         + fb)
    return _ln(o, fg, fbt)


# -------------------------------- main ------------------------------------------

if __name__ == "__main__":
    # Batched so the matmul M dimension fills MXU tiles; N multiple of 128,
    # n_graphs multiple of 8 (no masked vregs / partial stores anywhere).
    N_PER_GRAPH = 64
    NUM_GRAPHS = 8
    N = N_PER_GRAPH * NUM_GRAPHS          # 512 nodes total
    DIM_NODE_FEAT = 16
    DIM_NODE_HIDDEN = 64
    N_GRAPH_LAYERS = 3
    DIM_PERS_FEAT = 32
    DIM_PERS_EMB = 64
    DIM_GRAPH_EMB = 128
    DIM_OUT = 32
    TILE_M = 256                          # adj row tile; sweep 128..512+ at larger N

    key = jax.random.PRNGKey(0)
    k_x, k_pi, k_param = jax.random.split(key, 3)

    x = jax.random.normal(k_x, (N, DIM_NODE_FEAT), jnp.float32)
    pi = jax.random.normal(k_pi, (NUM_GRAPHS, DIM_PERS_FEAT), jnp.float32)

    # Ring graph inside each graph (undirected edges both ways).
    src_list, dst_list = [], []
    for g in range(NUM_GRAPHS):
        base = g * N_PER_GRAPH
        for i in range(N_PER_GRAPH):
            a = base + i
            b = base + (i + 1) % N_PER_GRAPH
            src_list += [a, b]
            dst_list += [b, a]
    edge_index = jnp.array([src_list, dst_list], jnp.int32)
    adj = build_gcn_adj(edge_index, N)

    params = init_params(k_param, DIM_NODE_FEAT, DIM_NODE_HIDDEN, N_GRAPH_LAYERS,
                         DIM_PERS_FEAT, DIM_PERS_EMB, DIM_GRAPH_EMB, DIM_OUT)
    conv_ws, conv_bs, head_params = pack_params(
        params, N_GRAPH_LAYERS, DIM_NODE_FEAT, DIM_NODE_HIDDEN,
        DIM_GRAPH_EMB, DIM_PERS_FEAT, DIM_PERS_EMB, DIM_OUT)

    # Lane-pad inputs (padded lanes are exactly zero) and cast to bf16.
    Fp, Pp, Op = _rup(DIM_NODE_FEAT), _rup(DIM_PERS_FEAT), _rup(DIM_OUT)
    x_pad = jnp.zeros((N, Fp), jnp.float32).at[:, :DIM_NODE_FEAT].set(x) \
              .astype(jnp.bfloat16)
    pi_pad = jnp.zeros((NUM_GRAPHS, Pp), jnp.float32) \
               .at[:, :DIM_PERS_FEAT].set(pi).astype(jnp.bfloat16)
    adj_bf = adj.astype(jnp.bfloat16)

    fwd = jax.jit(functools.partial(
        prodar_forward,
        n_layers=N_GRAPH_LAYERS,
        n_graphs=NUM_GRAPHS,
        nodes_per_graph=N_PER_GRAPH,
        real_dims=(DIM_GRAPH_EMB, DIM_PERS_EMB, DIM_OUT),
        pad_out=Op,
        tile_m=TILE_M))
    out_pad = jax.block_until_ready(
        fwd(adj_bf, x_pad, pi_pad, conv_ws, conv_bs, head_params))
    out = out_pad[:, :DIM_OUT]
    assert out.shape == (NUM_GRAPHS, DIM_OUT)

    # (a) tight check against the bf16-mirror reference (same math as kernel)
    ref_bf = reference_forward_bf16(adj, x, pi, params, N_GRAPH_LAYERS,
                                    NUM_GRAPHS, N_PER_GRAPH)
    assert jnp.allclose(out, ref_bf, rtol=1e-2, atol=1e-2), \
        "mismatch vs bf16-mirror reference"

    # (b) loose check against an independent fp32 PyTorch-fidelity reference
    ref_f32 = reference_forward_f32(adj, x, pi, params, N_GRAPH_LAYERS,
                                    NUM_GRAPHS, N_PER_GRAPH)
    assert float(jnp.max(jnp.abs(out - ref_f32))) < 0.25, \
        "mismatch vs independent fp32 reference"

    # TODO(synk): dropout is treated as inference-mode identity; training-mode
    # dropout masks (pltpu.prng_*) were intentionally not added.
    print("KERNEL_OK")
</pallas_src>

<mosaic_0001>
module attributes {stable_mosaic.version = 11 : i64} {
  func.func @_gcn_layer_kernel(%arg0: i32, %arg1: memref<256x512xbf16, #tpu.memory_space<vmem>>, %arg2: memref<512x128xbf16, #tpu.memory_space<vmem>>, %arg3: memref<128x128xbf16, #tpu.memory_space<vmem>>, %arg4: memref<1x128xf32, #tpu.memory_space<vmem>>, %arg5: memref<256x128xbf16, #tpu.memory_space<vmem>>) attributes {dimension_semantics = [#tpu.dimension_semantics<parallel>], iteration_bounds = array<i64: 2>, scalar_prefetch = 0 : i64, scratch_operands = 0 : i64, tpu.core_type = #tpu.core_type<tc>, window_params = [{transform_indices = @transform_0, window_bounds = array<i64: 256, 512>}, {pipeline_mode = #tpu.pipeline_mode<synchronous>, transform_indices = @transform_1, window_bounds = array<i64: 512, 128>}, {pipeline_mode = #tpu.pipeline_mode<synchronous>, transform_indices = @transform_2, window_bounds = array<i64: 128, 128>}, {pipeline_mode = #tpu.pipeline_mode<synchronous>, transform_indices = @transform_3, window_bounds = array<i64: 1, 128>}, {transform_indices = @transform_4, window_bounds = array<i64: 256, 128>}]} {
    %c0 = arith.constant 0 : index
    %c0_0 = arith.constant 0 : index
    %0 = vector.load %arg1[%c0, %c0_0] : memref<256x512xbf16, #tpu.memory_space<vmem>>, vector<256x512xbf16>
    %c0_1 = arith.constant 0 : index
    %c0_2 = arith.constant 0 : index
    %1 = vector.load %arg2[%c0_1, %c0_2] : memref<512x128xbf16, #tpu.memory_space<vmem>>, vector<512x128xbf16>
    %cst = arith.constant dense<0.000000e+00> : vector<256x128xf32>
    %2 = tpu.matmul %0, %1, %cst {dimension_numbers = #tpu.dot_dimension_numbers<[1], [0], [0], [1], [0, 0, 1, 1], [], []>} : vector<256x512xbf16>, vector<512x128xbf16>, vector<256x128xf32> -> vector<256x128xf32>
    %3 = arith.truncf %2 : vector<256x128xf32> to vector<256x128xbf16>
    %c0_3 = arith.constant 0 : index
    %c0_4 = arith.constant 0 : index
    %4 = vector.load %arg3[%c0_3, %c0_4] : memref<128x128xbf16, #tpu.memory_space<vmem>>, vector<128x128xbf16>
    %cst_5 = arith.constant dense<0.000000e+00> : vector<256x128xf32>
    %5 = tpu.matmul %3, %4, %cst_5 {dimension_numbers = #tpu.dot_dimension_numbers<[1], [0], [0], [1], [0, 0, 1, 1], [], []>} : vector<256x128xbf16>, vector<128x128xbf16>, vector<256x128xf32> -> vector<256x128xf32>
    %c0_6 = arith.constant 0 : index
    %c0_7 = arith.constant 0 : index
    %6 = vector.load %arg4[%c0_6, %c0_7] : memref<1x128xf32, #tpu.memory_space<vmem>>, vector<1x128xf32>
    %7 = vector.broadcast %6 : vector<1x128xf32> to vector<256x128xf32>
    %8 = arith.addf %5, %7 : vector<256x128xf32>
    %cst_8 = arith.constant 0.000000e+00 : f32
    %9 = vector.broadcast %cst_8 : f32 to vector<256x128xf32>
    %10 = arith.maximumf %8, %9 : vector<256x128xf32>
    %11 = arith.truncf %10 : vector<256x128xf32> to vector<256x128xbf16>
    %c0_9 = arith.constant 0 : index
    %c0_10 = arith.constant 0 : index
    %12 = vector.load %arg5[%c0_9, %c0_10] : memref<256x128xbf16, #tpu.memory_space<vmem>>, vector<256x128xbf16>
    tpu.vector_store %arg5[%c0_9, %c0_10], %11 {strides = array<i32>} : memref<256x128xbf16, #tpu.memory_space<vmem>>, vector<256x128xbf16>,
    return
  }
  func.func @transform_0(%arg0: i32) -> (i32, i32) {
    %c0_i32 = arith.constant 0 : i32
    %c0_i32_0 = arith.constant 0 : i32
    return %arg0, %c0_i32 : i32, i32
  }
  func.func @transform_1(%arg0: i32) -> (i32, i32) {
    %c0_i32 = arith.constant 0 : i32
    %c0_i32_0 = arith.constant 0 : i32
    %c0_i32_1 = arith.constant 0 : i32
    return %c0_i32, %c0_i32_0 : i32, i32
  }
  func.func @transform_2(%arg0: i32) -> (i32, i32) {
    %c0_i32 = arith.constant 0 : i32
    %c0_i32_0 = arith.constant 0 : i32
    %c0_i32_1 = arith.constant 0 : i32
    return %c0_i32, %c0_i32_0 : i32, i32
  }
  func.func @transform_3(%arg0: i32) -> (i32, i32) {
    %c0_i32 = arith.constant 0 : i32
    %c0_i32_0 = arith.constant 0 : i32
    %c0_i32_1 = arith.constant 0 : i32
    return %c0_i32, %c0_i32_0 : i32, i32
  }
  func.func @transform_4(%arg0: i32) -> (i32, i32) {
    %c0_i32 = arith.constant 0 : i32
    %c0_i32_0 = arith.constant 0 : i32
    return %arg0, %c0_i32 : i32, i32
  }
}

module attributes {stable_mosaic.version = 11 : i64} {
  func.func @_gcn_layer_kernel(%arg0: i32, %arg1: memref<256x512xbf16, #tpu.memory_space<vmem>>, %arg2: memref<512x128xbf16, #tpu.memory_space<vmem>>, %arg3: memref<128x128xbf16, #tpu.memory_space<vmem>>, %arg4: memref<1x128xf32, #tpu.memory_space<vmem>>, %arg5: memref<256x128xbf16, #tpu.memory_space<vmem>>) attributes {dimension_semantics = [#tpu.dimension_semantics<parallel>], iteration_bounds = array<i64: 2>, scalar_prefetch = 0 : i64, scratch_operands = 0 : i64, tpu.core_type = #tpu.core_type<tc>, window_params = [{transform_indices = @transform_0, window_bounds = array<i64: 256, 512>}, {pipeline_mode = #tpu.pipeline_mode<synchronous>, transform_indices = @transform_1, window_bounds = array<i64: 512, 128>}, {pipeline_mode = #tpu.pipeline_mode<synchronous>, transform_indices = @transform_2, window_bounds = array<i64: 128, 128>}, {pipeline_mode = #tpu.pipeline_mode<synchronous>, transform_indices = @transform_3, window_bounds = array<i64: 1, 128>}, {transform_indices = @transform_4, window_bounds = array<i64: 256, 128>}]} {
    %c0 = arith.constant 0 : index
    %c0_0 = arith.constant 0 : index
    %0 = vector.load %arg1[%c0, %c0_0] : memref<256x512xbf16, #tpu.memory_space<vmem>>, vector<256x512xbf16>
    %c0_1 = arith.constant 0 : index
    %c0_2 = arith.constant 0 : index
    %1 = vector.load %arg2[%c0_1, %c0_2] : memref<512x128xbf16, #tpu.memory_space<vmem>>, vector<512x128xbf16>
    %cst = arith.constant dense<0.000000e+00> : vector<256x128xf32>
    %2 = tpu.matmul %0, %1, %cst {dimension_numbers = #tpu.dot_dimension_numbers<[1], [0], [0], [1], [0, 0, 1, 1], [], []>} : vector<256x512xbf16>, vector<512x128xbf16>, vector<256x128xf32> -> vector<256x128xf32>
    %3 = arith.truncf %2 : vector<256x128xf32> to vector<256x128xbf16>
    %c0_3 = arith.constant 0 : index
    %c0_4 = arith.constant 0 : index
    %4 = vector.load %arg3[%c0_3, %c0_4] : memref<128x128xbf16, #tpu.memory_space<vmem>>, vector<128x128xbf16>
    %cst_5 = arith.constant dense<0.000000e+00> : vector<256x128xf32>
    %5 = tpu.matmul %3, %4, %cst_5 {dimension_numbers = #tpu.dot_dimension_numbers<[1], [0], [0], [1], [0, 0, 1, 1], [], []>} : vector<256x128xbf16>, vector<128x128xbf16>, vector<256x128xf32> -> vector<256x128xf32>
    %c0_6 = arith.constant 0 : index
    %c0_7 = arith.constant 0 : index
    %6 = vector.load %arg4[%c0_6, %c0_7] : memref<1x128xf32, #tpu.memory_space<vmem>>, vector<1x128xf32>
    %7 = vector.broadcast %6 : vector<1x128xf32> to vector<256x128xf32>
    %8 = arith.addf %5, %7 : vector<256x128xf32>
    %cst_8 = arith.constant 0.000000e+00 : f32
    %9 = vector.broadcast %cst_8 : f32 to vector<256x128xf32>
    %10 = arith.maximumf %8, %9 : vector<256x128xf32>
    %11 = arith.truncf %10 : vector<256x128xf32> to vector<256x128xbf16>
    %c0_9 = arith.constant 0 : index
    %c0_10 = arith.constant 0 : index
    %12 = vector.load %arg5[%c0_9, %c0_10] : memref<256x128xbf16, #tpu.memory_space<vmem>>, vector<256x128xbf16>
    tpu.vector_store %arg5[%c0_9, %c0_10], %11 {strides = array<i32>} : memref<256x128xbf16, #tpu.memory_space<vmem>>, vector<256x128xbf16>,
    return
  }
  func.func @transform_0(%arg0: i32) -> (i32, i32) {
    %c0_i32 = arith.constant 0 : i32
    %c0_i32_0 = arith.constant 0 : i32
    return %arg0, %c0_i32 : i32, i32
  }
  func.func @transform_1(%arg0: i32) -> (i32, i32) {
    %c0_i32 = arith.constant 0 : i32
    %c0_i32_0 = arith.constant 0 : i32
    %c0_i32_1 = arith.constant 0 : i32
    return %c0_i32, %c0_i32_0 : i32, i32
  }
  func.func @transform_2(%arg0: i32) -> (i32, i32) {
    %c0_i32 = arith.constant 0 : i32
    %c0_i32_0 = arith.constant 0 : i32
    %c0_i32_1 = arith.constant 0 : i32
    return %c0_i32, %c0_i32_0 : i32, i32
  }
  func.func @transform_3(%arg0: i32) -> (i32, i32) {
    %c0_i32 = arith.constant 0 : i32
    %c0_i32_0 = arith.constant 0 : i32
    %c0_i32_1 = arith.constant 0 : i32
    return %c0_i32, %c0_i32_0 : i32, i32
  }
  func.func @transform_4(%arg0: i32) -> (i32, i32) {
    %c0_i32 = arith.constant 0 : i32
    %c0_i32_0 = arith.constant 0 : i32
    return %arg0, %c0_i32 : i32, i32
  }
}

module attributes {stable_mosaic.version = 11 : i64} {
  func.func @kernel(%arg0: memref<512x128xbf16, #tpu.memory_space<vmem>>, %arg1: memref<512x128xbf16, #tpu.memory_space<vmem>>, %arg2: memref<512x128xbf16, #tpu.memory_space<vmem>>, %arg3: memref<8x128xbf16, #tpu.memory_space<vmem>>, %arg4: memref<384x128xbf16, #tpu.memory_space<vmem>>, %arg5: memref<1x128xf32, #tpu.memory_space<vmem>>, %arg6: memref<1x128xf32, #tpu.memory_space<vmem>>, %arg7: memref<1x128xf32, #tpu.memory_space<vmem>>, %arg8: memref<128x128xbf16, #tpu.memory_space<vmem>>, %arg9: memref<1x128xf32, #tpu.memory_space<vmem>>, %arg10: memref<1x128xf32, #tpu.memory_space<vmem>>, %arg11: memref<1x128xf32, #tpu.memory_space<vmem>>, %arg12: memref<128x128xbf16, #tpu.memory_space<vmem>>, %arg13: memref<128x128xbf16, #tpu.memory_space<vmem>>, %arg14: memref<1x128xf32, #tpu.memory_space<vmem>>, %arg15: memref<1x128xf32, #tpu.memory_space<vmem>>, %arg16: memref<1x128xf32, #tpu.memory_space<vmem>>, %arg17: memref<8x128xf32, #tpu.memory_space<vmem>>) attributes {dimension_semantics = [], scalar_prefetch = 0 : i64, scratch_operands = 0 : i64, tpu.core_type = #tpu.core_type<tc>} {
    %c0 = arith.constant 0 : index
    %c0_0 = arith.constant 0 : index
    %0 = vector.load %arg0[%c0, %c0_0] : memref<512x128xbf16, #tpu.memory_space<vmem>>, vector<512x128xbf16>
    %1 = vector.shape_cast %0 : vector<512x128xbf16> to vector<8x64x128xbf16>
    %cst = arith.constant dense<0xFF80> : vector<8x128xbf16>
    %2 = vector.multi_reduction <maximumf>, %1, %cst [1] : vector<8x64x128xbf16> to vector<8x128xbf16>
    %c0_1 = arith.constant 0 : index
    %c0_2 = arith.constant 0 : index
    %3 = vector.load %arg1[%c0_1, %c0_2] : memref<512x128xbf16, #tpu.memory_space<vmem>>, vector<512x128xbf16>
    %4 = vector.shape_cast %3 : vector<512x128xbf16> to vector<8x64x128xbf16>
    %cst_3 = arith.constant dense<0xFF80> : vector<8x128xbf16>
    %5 = vector.multi_reduction <maximumf>, %4, %cst_3 [1] : vector<8x64x128xbf16> to vector<8x128xbf16>
    %c0_4 = arith.constant 0 : index
    %c0_5 = arith.constant 0 : index
    %6 = vector.load %arg2[%c0_4, %c0_5] : memref<512x128xbf16, #tpu.memory_space<vmem>>, vector<512x128xbf16>
    %7 = vector.shape_cast %6 : vector<512x128xbf16> to vector<8x64x128xbf16>
    %cst_6 = arith.constant dense<0xFF80> : vector<8x128xbf16>
    %8 = vector.multi_reduction <maximumf>, %7, %cst_6 [1] : vector<8x64x128xbf16> to vector<8x128xbf16>
    %9 = tpu.concatenate %2, %5, %8 in 1 : vector<8x128xbf16>, vector<8x128xbf16>, vector<8x128xbf16> -> vector<8x384xbf16>
    %c0_7 = arith.constant 0 : index
    %c0_8 = arith.constant 0 : index
    %10 = vector.load %arg4[%c0_7, %c0_8] : memref<384x128xbf16, #tpu.memory_space<vmem>>, vector<384x128xbf16>
    %cst_9 = arith.constant dense<0.000000e+00> : vector<8x128xf32>
    %11 = tpu.matmul %9, %10, %cst_9 {dimension_numbers = #tpu.dot_dimension_numbers<[1], [0], [0], [1], [0, 0, 1, 1], [], []>} : vector<8x384xbf16>, vector<384x128xbf16>, vector<8x128xf32> -> vector<8x128xf32>
    %c0_10 = arith.constant 0 : index
    %c0_11 = arith.constant 0 : index
    %12 = vector.load %arg5[%c0_10, %c0_11] : memref<1x128xf32, #tpu.memory_space<vmem>>, vector<1x128xf32>
    %13 = vector.broadcast %12 : vector<1x128xf32> to vector<8x128xf32>
    %14 = arith.addf %11, %13 : vector<8x128xf32>
    %c0_12 = arith.constant 0 : index
    %c0_13 = arith.constant 0 : index
    %15 = vector.load %arg6[%c0_12, %c0_13] : memref<1x128xf32, #tpu.memory_space<vmem>>, vector<1x128xf32>
    %c0_14 = arith.constant 0 : index
    %c0_15 = arith.constant 0 : index
    %16 = vector.load %arg7[%c0_14, %c0_15] : memref<1x128xf32, #tpu.memory_space<vmem>>, vector<1x128xf32>
    %17 = tpu.iota {dimensions = array<i32: 1>} : vector<8x128xi32>
    %c128_i32 = arith.constant 128 : i32
    %18 = vector.broadcast %c128_i32 : i32 to vector<8x128xi32>
    %19 = arith.cmpi slt, %17, %18 : vector<8x128xi32>
    %cst_16 = arith.constant 0.000000e+00 : f32
    %20 = vector.broadcast %cst_16 : f32 to vector<8x128xf32>
    %21 = arith.select %19, %14, %20 : vector<8x128xi1>, vector<8x128xf32>
    %cst_17 = arith.constant dense<0.000000e+00> : vector<8xf32>
    %22 = vector.multi_reduction <add>, %21, %cst_17 [1] : vector<8x128xf32> to vector<8xf32>
    %23 = vector.shape_cast %22 : vector<8xf32> to vector<8x1xf32>
    %cst_18 = arith.constant 7.812500e-03 : f32
    %24 = vector.broadcast %cst_18 : f32 to vector<8x1xf32>
    %25 = arith.mulf %23, %24 : vector<8x1xf32>
    %26 = vector.broadcast %25 : vector<8x1xf32> to vector<8x128xf32>
    %27 = arith.subf %21, %26 : vector<8x128xf32>
    %cst_19 = arith.constant 0.000000e+00 : f32
    %28 = vector.broadcast %cst_19 : f32 to vector<8x128xf32>
    %29 = arith.select %19, %27, %28 : vector<8x128xi1>, vector<8x128xf32>
    %30 = arith.mulf %29, %29 : vector<8x128xf32>
    %cst_20 = arith.constant dense<0.000000e+00> : vector<8xf32>
    %31 = vector.multi_reduction <add>, %30, %cst_20 [1] : vector<8x128xf32> to vector<8xf32>
    %32 = vector.shape_cast %31 : vector<8xf32> to vector<8x1xf32>
    %cst_21 = arith.constant 7.812500e-03 : f32
    %33 = vector.broadcast %cst_21 : f32 to vector<8x1xf32>
    %34 = arith.mulf %32, %33 : vector<8x1xf32>
    %cst_22 = arith.constant 9.99999974E-6 : f32
    %35 = vector.broadcast %cst_22 : f32 to vector<8x1xf32>
    %36 = arith.addf %34, %35 : vector<8x1xf32>
    %37 = math.rsqrt %36 : vector<8x1xf32>
    %38 = vector.broadcast %37 : vector<8x1xf32> to vector<8x128xf32>
    %39 = arith.mulf %29, %38 : vector<8x128xf32>
    %40 = vector.broadcast %15 : vector<1x128xf32> to vector<8x128xf32>
    %41 = arith.mulf %39, %40 : vector<8x128xf32>
    %42 = vector.broadcast %16 : vector<1x128xf32> to vector<8x128xf32>
    %43 = arith.addf %41, %42 : vector<8x128xf32>
    %cst_23 = arith.constant 0.000000e+00 : f32
    %44 = vector.broadcast %cst_23 : f32 to vector<8x128xf32>
    %45 = arith.select %19, %43, %44 : vector<8x128xi1>, vector<8x128xf32>
    %cst_24 = arith.constant 0.000000e+00 : f32
    %46 = vector.broadcast %cst_24 : f32 to vector<8x128xf32>
    %47 = arith.maximumf %45, %46 : vector<8x128xf32>
    %c0_25 = arith.constant 0 : index
    %c0_26 = arith.constant 0 : index
    %48 = vector.load %arg3[%c0_25, %c0_26] : memref<8x128xbf16, #tpu.memory_space<vmem>>, vector<8x128xbf16>
    %c0_27 = arith.constant 0 : index
    %c0_28 = arith.constant 0 : index
    %49 = vector.load %arg8[%c0_27, %c0_28] : memref<128x128xbf16, #tpu.memory_space<vmem>>, vector<128x128xbf16>
    %cst_29 = arith.constant dense<0.000000e+00> : vector<8x128xf32>
    %50 = tpu.matmul %48, %49, %cst_29 {dimension_numbers = #tpu.dot_dimension_numbers<[1], [0], [0], [1], [0, 0, 1, 1], [], []>} : vector<8x128xbf16>, vector<128x128xbf16>, vector<8x128xf32> -> vector<8x128xf32>
    %c0_30 = arith.constant 0 : index
    %c0_31 = arith.constant 0 : index
    %51 = vector.load %arg9[%c0_30, %c0_31] : memref<1x128xf32, #tpu.memory_space<vmem>>, vector<1x128xf32>
    %52 = vector.broadcast %51 : vector<1x128xf32> to vector<8x128xf32>
    %53 = arith.addf %50, %52 : vector<8x128xf32>
    %c0_32 = arith.constant 0 : index
    %c0_33 = arith.constant 0 : index
    %54 = vector.load %arg10[%c0_32, %c0_33] : memref<1x128xf32, #tpu.memory_space<vmem>>, vector<1x128xf32>
    %c0_34 = arith.constant 0 : index
    %c0_35 = arith.constant 0 : index
    %55 = vector.load %arg11[%c0_34, %c0_35] : memref<1x128xf32, #tpu.memory_space<vmem>>, vector<1x128xf32>
    %56 = tpu.iota {dimensions = array<i32: 1>} : vector<8x128xi32>
    %c64_i32 = arith.constant 64 : i32
    %57 = vector.broadcast %c64_i32 : i32 to vector<8x128xi32>
    %58 = arith.cmpi slt, %56, %57 : vector<8x128xi32>
    %cst_36 = arith.constant 0.000000e+00 : f32
    %59 = vector.broadcast %cst_36 : f32 to vector<8x128xf32>
    %60 = arith.select %58, %53, %59 : vector<8x128xi1>, vector<8x128xf32>
    %cst_37 = arith.constant dense<0.000000e+00> : vector<8xf32>
    %61 = vector.multi_reduction <add>, %60, %cst_37 [1] : vector<8x128xf32> to vector<8xf32>
    %62 = vector.shape_cast %61 : vector<8xf32> to vector<8x1xf32>
    %cst_38 = arith.constant 1.562500e-02 : f32
    %63 = vector.broadcast %cst_38 : f32 to vector<8x1xf32>
    %64 = arith.mulf %62, %63 : vector<8x1xf32>
    %65 = vector.broadcast %64 : vector<8x1xf32> to vector<8x128xf32>
    %66 = arith.subf %60, %65 : vector<8x128xf32>
    %cst_39 = arith.constant 0.000000e+00 : f32
    %67 = vector.broadcast %cst_39 : f32 to vector<8x128xf32>
    %68 = arith.select %58, %66, %67 : vector<8x128xi1>, vector<8x128xf32>
    %69 = arith.mulf %68, %68 : vector<8x128xf32>
    %cst_40 = arith.constant dense<0.000000e+00> : vector<8xf32>
    %70 = vector.multi_reduction <add>, %69, %cst_40 [1] : vector<8x128xf32> to vector<8xf32>
    %71 = vector.shape_cast %70 : vector<8xf32> to vector<8x1xf32>
    %cst_41 = arith.constant 1.562500e-02 : f32
    %72 = vector.broadcast %cst_41 : f32 to vector<8x1xf32>
    %73 = arith.mulf %71, %72 : vector<8x1xf32>
    %cst_42 = arith.constant 9.99999974E-6 : f32
    %74 = vector.broadcast %cst_42 : f32 to vector<8x1xf32>
    %75 = arith.addf %73, %74 : vector<8x1xf32>
    %76 = math.rsqrt %75 : vector<8x1xf32>
    %77 = vector.broadcast %76 : vector<8x1xf32> to vector<8x128xf32>
    %78 = arith.mulf %68, %77 : vector<8x128xf32>
    %79 = vector.broadcast %54 : vector<1x128xf32> to vector<8x128xf32>
    %80 = arith.mulf %78, %79 : vector<8x128xf32>
    %81 = vector.broadcast %55 : vector<1x128xf32> to vector<8x128xf32>
    %82 = arith.addf %80, %81 : vector<8x128xf32>
    %cst_43 = arith.constant 0.000000e+00 : f32
    %83 = vector.broadcast %cst_43 : f32 to vector<8x128xf32>
    %84 = arith.select %58, %82, %83 : vector<8x128xi1>, vector<8x128xf32>
    %cst_44 = arith.constant 0.000000e+00 : f32
    %85 = vector.broadcast %cst_44 : f32 to vector<8x128xf32>
    %86 = arith.maximumf %84, %85 : vector<8x128xf32>
    %87 = arith.truncf %47 : vector<8x128xf32> to vector<8x128xbf16>
    %c0_45 = arith.constant 0 : index
    %c0_46 = arith.constant 0 : index
    %88 = vector.load %arg12[%c0_45, %c0_46] : memref<128x128xbf16, #tpu.memory_space<vmem>>, vector<128x128xbf16>
    %cst_47 = arith.constant dense<0.000000e+00> : vector<8x128xf32>
    %89 = tpu.matmul %87, %88, %cst_47 {dimension_numbers = #tpu.dot_dimension_numbers<[1], [0], [0], [1], [0, 0, 1, 1], [], []>} : vector<8x128xbf16>, vector<128x128xbf16>, vector<8x128xf32> -> vector<8x128xf32>
    %90 = arith.truncf %86 : vector<8x128xf32> to vector<8x128xbf16>
    %c0_48 = arith.constant 0 : index
    %c0_49 = arith.constant 0 : index
    %91 = vector.load %arg13[%c0_48, %c0_49] : memref<128x128xbf16, #tpu.memory_space<vmem>>, vector<128x128xbf16>
    %cst_50 = arith.constant dense<0.000000e+00> : vector<8x128xf32>
    %92 = tpu.matmul %90, %91, %cst_50 {dimension_numbers = #tpu.dot_dimension_numbers<[1], [0], [0], [1], [0, 0, 1, 1], [], []>} : vector<8x128xbf16>, vector<128x128xbf16>, vector<8x128xf32> -> vector<8x128xf32>
    %93 = arith.addf %89, %92 : vector<8x128xf32>
    %c0_51 = arith.constant 0 : index
    %c0_52 = arith.constant 0 : index
    %94 = vector.load %arg14[%c0_51, %c0_52] : memref<1x128xf32, #tpu.memory_space<vmem>>, vector<1x128xf32>
    %95 = vector.broadcast %94 : vector<1x128xf32> to vector<8x128xf32>
    %96 = arith.addf %93, %95 : vector<8x128xf32>
    %c0_53 = arith.constant 0 : index
    %c0_54 = arith.constant 0 : index
    %97 = vector.load %arg15[%c0_53, %c0_54] : memref<1x128xf32, #tpu.memory_space<vmem>>, vector<1x128xf32>
    %c0_55 = arith.constant 0 : index
    %c0_56 = arith.constant 0 : index
    %98 = vector.load %arg16[%c0_55, %c0_56] : memref<1x128xf32, #tpu.memory_space<vmem>>, vector<1x128xf32>
    %99 = tpu.iota {dimensions = array<i32: 1>} : vector<8x128xi32>
    %c32_i32 = arith.constant 32 : i32
    %100 = vector.broadcast %c32_i32 : i32 to vector<8x128xi32>
    %101 = arith.cmpi slt, %99, %100 : vector<8x128xi32>
    %cst_57 = arith.constant 0.000000e+00 : f32
    %102 = vector.broadcast %cst_57 : f32 to vector<8x128xf32>
    %103 = arith.select %101, %96, %102 : vector<8x128xi1>, vector<8x128xf32>
    %cst_58 = arith.constant dense<0.000000e+00> : vector<8xf32>
    %104 = vector.multi_reduction <add>, %103, %cst_58 [1] : vector<8x128xf32> to vector<8xf32>
    %105 = vector.shape_cast %104 : vector<8xf32> to vector<8x1xf32>
    %cst_59 = arith.constant 3.125000e-02 : f32
    %106 = vector.broadcast %cst_59 : f32 to vector<8x1xf32>
    %107 = arith.mulf %105, %106 : vector<8x1xf32>
    %108 = vector.broadcast %107 : vector<8x1xf32> to vector<8x128xf32>
    %109 = arith.subf %103, %108 : vector<8x128xf32>
    %cst_60 = arith.constant 0.000000e+00 : f32
    %110 = vector.broadcast %cst_60 : f32 to vector<8x128xf32>
    %111 = arith.select %101, %109, %110 : vector<8x128xi1>, vector<8x128xf32>
    %112 = arith.mulf %111, %111 : vector<8x128xf32>
    %cst_61 = arith.constant dense<0.000000e+00> : vector<8xf32>
    %113 = vector.multi_reduction <add>, %112, %cst_61 [1] : vector<8x128xf32> to vector<8xf32>
    %114 = vector.shape_cast %113 : vector<8xf32> to vector<8x1xf32>
    %cst_62 = arith.constant 3.125000e-02 : f32
    %115 = vector.broadcast %cst_62 : f32 to vector<8x1xf32>
    %116 = arith.mulf %114, %115 : vector<8x1xf32>
    %cst_63 = arith.constant 9.99999974E-6 : f32
    %117 = vector.broadcast %cst_63 : f32 to vector<8x1xf32>
    %118 = arith.addf %116, %117 : vector<8x1xf32>
    %119 = math.rsqrt %118 : vector<8x1xf32>
    %120 = vector.broadcast %119 : vector<8x1xf32> to vector<8x128xf32>
    %121 = arith.mulf %111, %120 : vector<8x128xf32>
    %122 = vector.broadcast %97 : vector<1x128xf32> to vector<8x128xf32>
    %123 = arith.mulf %121, %122 : vector<8x128xf32>
    %124 = vector.broadcast %98 : vector<1x128xf32> to vector<8x128xf32>
    %125 = arith.addf %123, %124 : vector<8x128xf32>
    %cst_64 = arith.constant 0.000000e+00 : f32
    %126 = vector.broadcast %cst_64 : f32 to vector<8x128xf32>
    %127 = arith.select %101, %125, %126 : vector<8x128xi1>, vector<8x128xf32>
    %c0_65 = arith.constant 0 : index
    %c0_66 = arith.constant 0 : index
    %128 = vector.load %arg17[%c0_65, %c0_66] : memref<8x128xf32, #tpu.memory_space<vmem>>, vector<8x128xf32>
    tpu.vector_store %arg17[%c0_65, %c0_66], %127 {strides = array<i32>} : memref<8x128xf32, #tpu.memory_space<vmem>>, vector<8x128xf32>,
    return
  }
}

</mosaic_0001>

<bundles_post_ra>
// kernel: prodar_forward.5
= control target key start
LH: loop header
LB: loop body
LE: loop exit
PB: predicated region body
PF: predicated region fallthrough
CT: control target
= control target key end

     0   :  { %s2429_s15 = smov 0   ;;  %s2715_s0 = inlined_call_operand.vmem [shape: bf16[512,512], index: 0, kind: input, shape index: {}]   ;;  %s2716_s1 = inlined_call_operand.vmem [shape: bf16[512,128], index: 1, kind: input, shape index: {}]   ;;  %s2717_s2 = inlined_call_operand.vmem [shape: bf16[128,128], index: 2, kind: input, shape index: {}]   ;;  %s2718_s3 = inlined_call_operand.vmem [shape: f32[1,128], index: 3, kind: input, shape index: {}]   ;;  %s2719_s4 = inlined_call_operand.vmem [shape: bf16[512,128], index: 4, kind: output, shape index: {}]  }
   0x1 LB: > { %s1663_s16 = sadd.s32 4294967295, %s2402_s15   ;;  %p1667_p0 = scmp.ge.s32.totalorder %s2402_s15, 1  ;;  %s2402_s15 = sphi %s2429_s15, %s14_s15  }
   0x2   : > { %p164_p1 = scmp.lt.s32.totalorder %s2402_s15, 3 }
   0x4   : > { %p165_p2 = pnand %p1667_p0, %p164_p1 }
   0x5   : > { %v2260_v0 = vld [vmem:[%s2716_s1 + $0x40] sm:$0xff] (!%p165_p2)   ;;  %s1668_s19 = sshll.u32 (!%p165_p2), %s1663_s16, 5  ;;  %v2262_v2 = vld [vmem:[%s2716_s1 + $0x48] sm:$0xff] (!%p165_p2)   ;;  %v2264_v4 = vld [vmem:[%s2716_s1 + $0x50] sm:$0xff] (!%p165_p2)  }
   0x6   : > { %168 = sbr.rel (%p165_p2) target bundleno = 633 (0x279), region = 36  ;;  %v2261_v1 = vld [vmem:[%s2716_s1] sm:$0xff] (!%p165_p2)   ;;  %2236 = vmatprep.subr.bf16.mxu1 (!%p165_p2), %v2260_v0  ;;  %1940 = vmatprep.subr.bf16.mxu0 (!%p165_p2), %v2260_v0  ;;  %v2263_v3 = vld [vmem:[%s2716_s1 + $0x8] sm:$0xff] (!%p165_p2)   ;;  %p192_p3 = scmp.lt.s32.totalorder (!%p165_p2), %s1668_s19, 63  ;;  %v2265_v5 = vld [vmem:[%s2716_s1 + $0x10] sm:$0xff] (!%p165_p2)  }
   0x7   : > { %2244 = vmatpush3.bf16.msra.mxu1 (!%p165_p2), %v2261_v1  ;;  %1941 = vmatpush3.bf16.msra.mxu0 (!%p165_p2), %v2261_v1  ;;  %v2266_v6 = vld [vmem:[%s2716_s1 + $0x58] sm:$0xff] (!%p165_p2)   ;;  %v2268_v8 = vld [vmem:[%s2716_s1 + $0x60] sm:$0xff] (!%p165_p2)   ;;  %v2270_v10 = vld [vmem:[%s2716_s1 + $0x68] sm:$0xff] (!%p165_p2)  }
   0x8   : > { %2237 = vmatprep.subr.bf16.mxu1 (!%p165_p2), %v2262_v2  ;;  %1942 = vmatprep.subr.bf16.mxu0 (!%p165_p2), %v2262_v2  ;;  %v2267_v7 = vld [vmem:[%s2716_s1 + $0x18] sm:$0xff] (!%p165_p2)   ;;  %v2269_v9 = vld [vmem:[%s2716_s1 + $0x20] sm:$0xff] (!%p165_p2)   ;;  %v2271_v12 = vld [vmem:[%s2716_s1 + $0x28] sm:$0xff] (!%p165_p2)  }
   0x9   : > { %v2272_v13 = vld [vmem:[%s2716_s1 + $0x70] sm:$0xff] (!%p165_p2)   ;;  %v2274_v15 = vld [vmem:[%s2716_s1 + $0x78] sm:$0xff] (!%p165_p2)   ;;  %v2279_v17 = vld [vmem:[%s2716_s1 + $0xc0] sm:$0xff] (!%p165_p2)  }
   0xa   : > { %v2273_v14 = vld [vmem:[%s2716_s1 + $0x30] sm:$0xff] (!%p165_p2)   ;;  %v2275_v16 = vld [vmem:[%s2716_s1 + $0x38] sm:$0xff] (!%p165_p2)   ;;  %v2280_v19 = vld [vmem:[%s2716_s1 + $0x80] sm:$0xff] (!%p165_p2)  }
   0xb   : > { %2245 = vmatpush3.bf16.msra.mxu1 (!%p165_p2), %v2263_v3  ;;  %1943 = vmatpush3.bf16.msra.mxu0 (!%p165_p2), %v2263_v3  ;;  %v2281_v21 = vld [vmem:[%s2716_s1 + $0xc8] sm:$0xff] (!%p165_p2)   ;;  %v2286_v24 = vld [vmem:[%s2716_s1 + $0xd0] sm:$0xff] (!%p165_p2)   ;;  %v2288_v28 = vld [vmem:[%s2716_s1 + $0xd8] sm:$0xff] (!%p165_p2)  }
   0xc   : > { %2238 = vmatprep.subr.bf16.mxu1 (!%p165_p2), %v2264_v4  ;;  %1944 = vmatprep.subr.bf16.mxu0 (!%p165_p2), %v2264_v4  ;;  %v2282_v22 = vld [vmem:[%s2716_s1 + $0x88] sm:$0xff] (!%p165_p2)   ;;  %v2287_v25 = vld [vmem:[%s2716_s1 + $0x90] sm:$0xff] (!%p165_p2)   ;;  %v2289_v31 = vld [vmem:[%s2716_s1 + $0x98] sm:$0xff] (!%p165_p2)  }
   0xd   : > { %s2721_s19 = smov (!%p192_p3, %s1668_s19), 63  ;;  %v2293_v33 = vld [vmem:[%s2716_s1 + $0xe0] sm:$0xff]   ;;  %v2295_v38 = vld [vmem:[%s2716_s1 + $0xe8] sm:$0xff]   ;;  %v2300_v41 = vld [vmem:[%s2716_s1 + $0xf0] sm:$0xff]  }
   0xe   : > { %s1812_s8 = sshll.u32 %s2721_s19, 4  ;;  %v2294_v36 = vld [vmem:[%s2716_s1 + $0xa0] sm:$0xff]   ;;  %v2296_v39 = vld [vmem:[%s2716_s1 + $0xa8] sm:$0xff]   ;;  %v2301_v44 = vld [vmem:[%s2716_s1 + $0xb0] sm:$0xff]   ;;  %s1672_s7 = sshll.u32 %s2721_s19, 2 }
   0xf   : > { %2246 = vmatpush3.bf16.msra.mxu1 %v2265_v5  ;;  %1945 = vmatpush3.bf16.msra.mxu0 %v2265_v5  ;;  %s2470_s13 = scalar_lea.vmem %s2715_s0, %s1812_s8  ;;  %v2302_v46 = vld [vmem:[%s2716_s1 + $0xf8] sm:$0xff]   ;;  %s2666_s10 = scalar_lea.vmem %s2719_s4, %s1672_s7 }
  0x10   : > { %2239 = vmatprep.subr.bf16.mxu1 %v2266_v6  ;;  %1946 = vmatprep.subr.bf16.mxu0 %v2266_v6  ;;  %v2278_v11 = vld [vmem:[%s2470_s13 + $0x184] ss:$16 sps:$4 sm:$0xff]   ;;  %v2276_v18 = vld [vmem:[%s2470_s13 + $0x180] ss:$16 sps:$4 sm:$0xff]   ;;  %v2309_v45 = vld [vmem:[%s2470_s13 + $0xc] ss:$16 sps:$4 sm:$0xff]  }
  0x11   : > { %973 = vmatprep.mubr.bf16.mxu1 %v2278_v11  ;;  %v2283_v20 = vld [vmem:[%s2470_s13 + $0x1a4] ss:$16 sps:$4 sm:$0xff]   ;;  %v2285_v23 = vld [vmem:[%s2470_s13 + $0x1a0] ss:$16 sps:$4 sm:$0xff]   ;;  %v2303_v47 = vld [vmem:[%s2716_s1 + $0xb8] sm:$0xff]  }
  0x12   : > { %v2304_v26 = vld [vmem:[%s2470_s13] ss:$16 sps:$4 sm:$0xff]   ;;  %v2306_v27 = vld [vmem:[%s2470_s13 + $0x4] ss:$16 sps:$4 sm:$0xff]   ;;  %v2307_v48 = vld [vmem:[%s2470_s13 + $0x8] ss:$16 sps:$4 sm:$0xff]  }
  0x13   : > { %2247 = vmatpush3.bf16.msra.mxu1 %v2267_v7  ;;  %1947 = vmatpush3.bf16.msra.mxu0 %v2267_v7  ;;  %v2290_v29 = vld [vmem:[%s2470_s13 + $0x1c4] ss:$16 sps:$4 sm:$0xff]   ;;  %v2292_v32 = vld [vmem:[%s2470_s13 + $0x1c0] ss:$16 sps:$4 sm:$0xff]   ;;  %v2312_v51 = vld [vmem:[%s2470_s13 + $0x2c] ss:$16 sps:$4 sm:$0xff]  }
  0x14   : > { %2240 = vmatprep.subr.bf16.mxu1 %v2268_v8  ;;  %1948 = vmatprep.subr.bf16.mxu0 %v2268_v8  ;;  %v2310_v30 = vld [vmem:[%s2470_s13 + $0x24] ss:$16 sps:$4 sm:$0xff]   ;;  %v2314_v34 = vld [vmem:[%s2470_s13 + $0x20] ss:$16 sps:$4 sm:$0xff]   ;;  %v2315_v53 = vld [vmem:[%s2470_s13 + $0x28] ss:$16 sps:$4 sm:$0xff]  }
  0x15   : > { %877 = vmatprep.mubr.bf16.mxu0 %v2306_v27  ;;  %v2316_v35 = vld [vmem:[%s2470_s13 + $0x44] ss:$16 sps:$4 sm:$0xff]   ;;  %v2299_v40 = vld [vmem:[%s2470_s13 + $0x1e0] ss:$16 sps:$4 sm:$0xff]   ;;  %v2318_v55 = vld [vmem:[%s2470_s13 + $0x4c] ss:$16 sps:$4 sm:$0xff]  }
  0x16   : > { %v2297_v37 = vld [vmem:[%s2470_s13 + $0x1e4] ss:$16 sps:$4 sm:$0xff]   ;;  %v2320_v42 = vld [vmem:[%s2470_s13 + $0x40] ss:$16 sps:$4 sm:$0xff]   ;;  %v2321_v57 = vld [vmem:[%s2470_s13 + $0x48] ss:$16 sps:$4 sm:$0xff]  }
  0x17   : > { %2248 = vmatpush3.bf16.msra.mxu1 %v2269_v9  ;;  %1949 = vmatpush3.bf16.msra.mxu0 %v2269_v9  ;;  %v2322_v43 = vld [vmem:[%s2470_s13 + $0x64] ss:$16 sps:$4 sm:$0xff]   ;;  %v2326_v49 = vld [vmem:[%s2470_s13 + $0x60] ss:$16 sps:$4 sm:$0xff]   ;;  %v2324_v59 = vld [vmem:[%s2470_s13 + $0x6c] ss:$16 sps:$4 sm:$0xff]  }
  0x18   : > { %2241 = vmatprep.subr.bf16.mxu1 %v2270_v10  ;;  %1950 = vmatprep.subr.bf16.mxu0 %v2270_v10  ;;  %v2328_v50 = vld [vmem:[%s2470_s13 + $0x84] ss:$16 sps:$4 sm:$0xff]   ;;  %v2332_v52 = vld [vmem:[%s2470_s13 + $0x80] ss:$16 sps:$4 sm:$0xff]   ;;  %v2327_v61 = vld [vmem:[%s2470_s13 + $0x68] ss:$16 sps:$4 sm:$0xff]  }
  0x19   : > { %v2334_v54 = vld [vmem:[%s2470_s13 + $0xa4] ss:$16 sps:$4 sm:$0xff]   ;;  %v2338_v56 = vld [vmem:[%s2470_s13 + $0xa0] ss:$16 sps:$4 sm:$0xff]   ;;  %v2330_v63 = vld [vmem:[%s2470_s13 + $0x8c] ss:$16 sps:$4 sm:$0xff]  }
  0x1a   : > { %v2340_v58 = vld [vmem:[%s2470_s13 + $0xc4] ss:$16 sps:$4 sm:$0xff]   ;;  %v2344_v60 = vld [vmem:[%s2470_s13 + $0xc0] ss:$16 sps:$4 sm:$0xff]   ;;  %v2333_v1 = vld [vmem:[%s2470_s13 + $0x88] ss:$16 sps:$4 sm:$0xff]  }
  0x1b   : > { %2249 = vmatpush3.bf16.msra.mxu1 %v2271_v12  ;;  %1951 = vmatpush3.bf16.msra.mxu0 %v2271_v12  ;;  %v2346_v62 = vld [vmem:[%s2470_s13 + $0xe4] ss:$16 sps:$4 sm:$0xff]   ;;  %v2350_v0 = vld [vmem:[%s2470_s13 + $0xe0] ss:$16 sps:$4 sm:$0xff]   ;;  %v2336_v3 = vld [vmem:[%s2470_s13 + $0xac] ss:$16 sps:$4 sm:$0xff]  }
  0x1c   : > { %2242 = vmatprep.subr.bf16.mxu1 %v2272_v13  ;;  %1952 = vmatprep.subr.bf16.mxu0 %v2272_v13  ;;  %v2352_v2 = vld [vmem:[%s2470_s13 + $0x104] ss:$16 sps:$4 sm:$0xff]   ;;  %v2356_v4 = vld [vmem:[%s2470_s13 + $0x100] ss:$16 sps:$4 sm:$0xff]   ;;  %v2339_v5 = vld [vmem:[%s2470_s13 + $0xa8] ss:$16 sps:$4 sm:$0xff]  }
  0x1d   : > { %v2358_v6 = vld [vmem:[%s2470_s13 + $0x124] ss:$16 sps:$4 sm:$0xff]   ;;  %v2342_v7 = vld [vmem:[%s2470_s13 + $0xcc] ss:$16 sps:$4 sm:$0xff]   ;;  %v2362_v8 = vld [vmem:[%s2470_s13 + $0x120] ss:$16 sps:$4 sm:$0xff]  }
  0x1e   : > { %v2345_v9 = vld [vmem:[%s2470_s13 + $0xc8] ss:$16 sps:$4 sm:$0xff]   ;;  %v2364_v10 = vld [vmem:[%s2470_s13 + $0x144] ss:$16 sps:$4 sm:$0xff]   ;;  %v2348_v11 = vld [vmem:[%s2470_s13 + $0xec] ss:$16 sps:$4 sm:$0xff]  }
  0x1f   : > { %2250 = vmatpush3.bf16.msra.mxu1 %v2273_v14  ;;  %1953 = vmatpush3.bf16.msra.mxu0 %v2273_v14  ;;  %v2368_v12 = vld [vmem:[%s2470_s13 + $0x140] ss:$16 sps:$4 sm:$0xff]   ;;  %v2351_v13 = vld [vmem:[%s2470_s13 + $0xe8] ss:$16 sps:$4 sm:$0xff]   ;;  %v2370_v14 = vld [vmem:[%s2470_s13 + $0x164] ss:$16 sps:$4 sm:$0xff]  }
  0x20   : > { %2243 = vmatprep.subr.bf16.mxu1 %v2274_v15  ;;  %1954 = vmatprep.subr.bf16.mxu0 %v2274_v15  ;;  %v2354_v15 = vld [vmem:[%s2470_s13 + $0x10c] ss:$16 sps:$4 sm:$0xff]   ;;  %v2392_v27 = vld [vmem:[%s2717_s2 + $0x20] sm:$0xff]  }
  0x23   : > { %2251 = vmatpush3.bf16.msra.mxu1 %v2275_v16  ;;  %1955 = vmatpush3.bf16.msra.mxu0 %v2275_v16  ;;  %v2374_v16 = vld [vmem:[%s2470_s13 + $0x160] ss:$16 sps:$4 sm:$0xff]  }
  0x24   : > { %2052 = vmatprep.subr.bf16.mxu1 %v2279_v17  ;;  %v2357_v17 = vld [vmem:[%s2470_s13 + $0x108] ss:$16 sps:$4 sm:$0xff]  }
  0x26   : > { %974 = vmatmul.mubr.bf16.vlgmr.msra.gmra.mrb[0].mxu1 %v2276_v18  ;;  %878 = vmatmul.mubr.bf16.vlgmr.msra.gmra.mrb[0].mxu0 %v2304_v26  ;;  %v2360_v18 = vld [vmem:[%s2470_s13 + $0x12c] ss:$16 sps:$4 sm:$0xff]  }
  0x27   : > { %2053 = vmatpush3.bf16.msra.mxu1 %v2280_v19  ;;  %981 = vmatprep.mubr.bf16.mxu1 %v2283_v20  ;;  %v2388_v19 = vld [vmem:[%s2717_s2] sm:$0xff]   ;;  %v2363_v20 = vld [vmem:[%s2470_s13 + $0x128] ss:$16 sps:$4 sm:$0xff]  }
  0x28   : > { %2054 = vmatprep.subr.bf16.mxu1 %v2281_v21  ;;  %885 = vmatprep.mubr.bf16.mxu0 %v2310_v30  ;;  %v2366_v21 = vld [vmem:[%s2470_s13 + $0x14c] ss:$16 sps:$4 sm:$0xff]  }
  0x29   : > { %2188 = vmatprep.subr.bf16.mxu0 %v2388_v19  ;;  %v2391_v26 = vld [vmem:[%s2717_s2 + $0x18] sm:$0xff]   ;;  %v2393_v30 = vld [vmem:[%s2717_s2 + $0x28] sm:$0xff]  }
  0x2a   : > { %2189 = vmatpush3.bf16.msra.mxu0 %v2388_v19 }
  0x2b   : > { %2055 = vmatpush3.bf16.msra.mxu1 %v2282_v22  ;;  %v2389_v22 = vld [vmem:[%s2717_s2 + $0x8] sm:$0xff]  }
  0x2c   : > { %2056 = vmatprep.subr.bf16.mxu1 %v2286_v24  ;;  %2190 = vmatprep.subr.bf16.mxu0 %v2389_v22  ;;  %v2369_v24 = vld [vmem:[%s2470_s13 + $0x148] ss:$16 sps:$4 sm:$0xff]  }
  0x2e   : > { %982 = vmatmul.mubr.bf16.gmra.mrb[4].mxu1 %v2285_v23  ;;  %886 = vmatmul.mubr.bf16.gmra.mrb[4].mxu0 %v2314_v34  ;;  %v2390_v23 = vld [vmem:[%s2717_s2 + $0x10] sm:$0xff]   ;;  %v2395_v34 = vld [vmem:[%s2717_s2 + $0x38] sm:$0xff]  }
  0x2f   : > { %2057 = vmatpush3.bf16.msra.mxu1 %v2287_v25  ;;  %989 = vmatprep.mubr.bf16.mxu1 %v2290_v29  ;;  %v2372_v25 = vld [vmem:[%s2470_s13 + $0x16c] ss:$16 sps:$4 sm:$0xff]  }
  0x30   : > { %2058 = vmatprep.subr.bf16.mxu1 %v2288_v28  ;;  %893 = vmatprep.mubr.bf16.mxu0 %v2316_v35  ;;  %v2375_v28 = vld [vmem:[%s2470_s13 + $0x168] ss:$16 sps:$4 sm:$0xff]   ;;  %v2376_v29 = vld [vmem:[%s2470_s13 + $0x18c] ss:$16 sps:$4 sm:$0xff]  }
  0x31   : > { %2191 = vmatpush3.bf16.msra.mxu0 %v2389_v22  ;;  %v2381_v35 = vld [vmem:[%s2470_s13 + $0x1a8] ss:$16 sps:$4 sm:$0xff]  }
  0x32   : > { %2192 = vmatprep.subr.bf16.mxu0 %v2390_v23 }
  0x33   : > { %2059 = vmatpush3.bf16.msra.mxu1 %v2289_v31  ;;  %v2394_v31 = vld [vmem:[%s2717_s2 + $0x30] sm:$0xff]  }
  0x34   : > { %2060 = vmatprep.subr.bf16.mxu1 %v2293_v33  ;;  %v2379_v33 = vld [vmem:[%s2470_s13 + $0x1ac] ss:$16 sps:$4 sm:$0xff]  }
  0x35   : > { %2193 = vmatpush3.bf16.msra.mxu0 %v2390_v23 }
  0x36   : > { %990 = vmatmul.mubr.bf16.gmra.mrb[8].mxu1 %v2292_v32  ;;  %894 = vmatmul.mubr.bf16.gmra.mrb[8].mxu0 %v2320_v42  ;;  %v2378_v32 = vld [vmem:[%s2470_s13 + $0x188] ss:$16 sps:$4 sm:$0xff]  }
  0x37   : > { %2061 = vmatpush3.bf16.msra.mxu1 %v2294_v36  ;;  %997 = vmatprep.mubr.bf16.mxu1 %v2297_v37  ;;  %v2382_v36 = vld [vmem:[%s2470_s13 + $0x1cc] ss:$16 sps:$4 sm:$0xff]   ;;  %v2384_v37 = vld [vmem:[%s2470_s13 + $0x1c8] ss:$16 sps:$4 sm:$0xff]  }
  0x38   : > { %2062 = vmatprep.subr.bf16.mxu1 %v2295_v38  ;;  %901 = vmatprep.mubr.bf16.mxu0 %v2322_v43  ;;  %v2385_v38 = vld [vmem:[%s2470_s13 + $0x1ec] ss:$16 sps:$4 sm:$0xff]  }
  0x39   : > { %2194 = vmatprep.subr.bf16.mxu0 %v2391_v26 }
  0x3a   : > { %2195 = vmatpush3.bf16.msra.mxu0 %v2391_v26 }
  0x3b   : > { %2063 = vmatpush3.bf16.msra.mxu1 %v2296_v39  ;;  %2196 = vmatprep.subr.bf16.mxu0 %v2392_v27  ;;  %v2387_v39 = vld [vmem:[%s2470_s13 + $0x1e8] ss:$16 sps:$4 sm:$0xff]  }
  0x3c   : > { %2064 = vmatprep.subr.bf16.mxu1 %v2300_v41 }
  0x3e   : > { %998 = vmatmul.mubr.bf16.gmra.mrb[12].mxu1 %v2299_v40  ;;  %902 = vmatmul.mubr.bf16.gmra.mrb[12].mxu0 %v2326_v49 }
  0x3f   : > { %2065 = vmatpush3.bf16.msra.mxu1 %v2301_v44  ;;  %1038 = vmatprep.mubr.bf16.mxu1 %v2309_v45 }
  0x40   : > { %2066 = vmatprep.subr.bf16.mxu1 %v2302_v46  ;;  %909 = vmatprep.mubr.bf16.mxu0 %v2328_v50 }
  0x41   : > { %2197 = vmatpush3.bf16.msra.mxu0 %v2392_v27 }
  0x42   : > { %2198 = vmatprep.subr.bf16.mxu0 %v2393_v30 }
  0x43   : > { %2067 = vmatpush3.bf16.msra.mxu1 %v2303_v47 }
  0x45   : > { %2199 = vmatpush3.bf16.msra.mxu0 %v2393_v30 }
  0x46   : > { %1039 = vmatmul.mubr.bf16.vlgmr.msra.gmra.mrb[16].mxu1 %v2307_v48  ;;  %910 = vmatmul.mubr.bf16.gmra.mrb[16].mxu0 %v2332_v52 }
  0x47   : > { %1046 = vmatprep.mubr.bf16.mxu1 %v2312_v51  ;;  %917 = vmatprep.mubr.bf16.mxu0 %v2334_v54 }
  0x48   : > { %2200 = vmatprep.subr.bf16.mxu0 %v2394_v31 }
  0x49   : > { %2201 = vmatpush3.bf16.msra.mxu0 %v2394_v31 }
  0x4a   : > { %2202 = vmatprep.subr.bf16.mxu0 %v2395_v34 }
  0x4d   : > { %2203 = vmatpush3.bf16.msra.mxu0 %v2395_v34 }
  0x4e   : > { %1047 = vmatmul.mubr.bf16.gmra.mrb[20].mxu1 %v2315_v53  ;;  %918 = vmatmul.mubr.bf16.gmra.mrb[20].mxu0 %v2338_v56 }
  0x4f   : > { %1054 = vmatprep.mubr.bf16.mxu1 %v2318_v55  ;;  %925 = vmatprep.mubr.bf16.mxu0 %v2340_v58 }
  0x56   : > { %1055 = vmatmul.mubr.bf16.gmra.mrb[24].mxu1 %v2321_v57  ;;  %926 = vmatmul.mubr.bf16.gmra.mrb[24].mxu0 %v2344_v60 }
  0x57   : > { %1062 = vmatprep.mubr.bf16.mxu1 %v2324_v59  ;;  %933 = vmatprep.mubr.bf16.mxu0 %v2346_v62 }
  0x5e   : > { %1063 = vmatmul.mubr.bf16.gmra.mrb[28].mxu1 %v2327_v61  ;;  %934 = vmatmul.mubr.bf16.gmra.mrb[28].mxu0 %v2350_v0 }
  0x5f   : > { %1070 = vmatprep.mubr.bf16.mxu1 %v2330_v63  ;;  %941 = vmatprep.mubr.bf16.mxu0 %v2352_v2 }
  0x66   : > { %1071 = vmatmul.mubr.bf16.gmra.mrb[32].mxu1 %v2333_v1  ;;  %942 = vmatmul.mubr.bf16.gmra.mrb[32].mxu0 %v2356_v4 }
  0x67   : > { %1078 = vmatprep.mubr.bf16.mxu1 %v2336_v3  ;;  %949 = vmatprep.mubr.bf16.mxu0 %v2358_v6 }
  0x6e   : > { %1079 = vmatmul.mubr.bf16.gmra.mrb[36].mxu1 %v2339_v5  ;;  %950 = vmatmul.mubr.bf16.gmra.mrb[36].mxu0 %v2362_v8 }
  0x6f   : > { %1086 = vmatprep.mubr.bf16.mxu1 %v2342_v7  ;;  %957 = vmatprep.mubr.bf16.mxu0 %v2364_v10 }
  0x76   : > { %1087 = vmatmul.mubr.bf16.gmra.mrb[40].mxu1 %v2345_v9  ;;  %958 = vmatmul.mubr.bf16.gmra.mrb[40].mxu0 %v2368_v12 }
  0x77   : > { %1094 = vmatprep.mubr.bf16.mxu1 %v2348_v11  ;;  %965 = vmatprep.mubr.bf16.mxu0 %v2370_v14 }
  0x7e   : > { %1095 = vmatmul.mubr.bf16.gmra.mrb[44].mxu1 %v2351_v13  ;;  %966 = vmatmul.mubr.bf16.gmra.mrb[44].mxu0 %v2374_v16 }
  0x7f   : > { %1102 = vmatprep.mubr.bf16.mxu1 %v2354_v15 }
  0x86   : > { %1103 = vmatmul.mubr.bf16.gmra.mrb[48].mxu1 %v2357_v17 }
  0x87   : > { %1110 = vmatprep.mubr.bf16.mxu1 %v2360_v18 }
  0x8e   : > { %1111 = vmatmul.mubr.bf16.gmra.mrb[52].mxu1 %v2363_v20 }
  0x8f   : > { %1118 = vmatprep.mubr.bf16.mxu1 %v2366_v21 }
  0x96   : > { %1119 = vmatmul.mubr.bf16.gmra.mrb[56].mxu1 %v2369_v24 }
  0x97   : > { %1126 = vmatprep.mubr.bf16.mxu1 %v2372_v25 }
  0x9e   : > { %1127 = vmatmul.mubr.bf16.gmra.mrb[60].mxu1 %v2375_v28 }
  0x9f   : > { %1134 = vmatprep.mubr.bf16.mxu1 %v2376_v29 }
  0xa6   : > { %1135 = vmatmul.mubr.bf16.gmra.mrb[64].mxu1 %v2378_v32 }
  0xa7   : > { %1142 = vmatprep.mubr.bf16.mxu1 %v2379_v33 }
  0xae   : > { %1143 = vmatmul.mubr.bf16.gmra.mrb[68].mxu1 %v2381_v35 }
  0xaf   : > { %1150 = vmatprep.mubr.bf16.mxu1 %v2382_v36 }
  0xb6   : > { %1151 = vmatmul.mubr.bf16.gmra.mrb[72].mxu1 %v2384_v37 }
  0xb7   : > { %1158 = vmatprep.mubr.bf16.mxu1 %v2385_v38 }
  0xbe   : > { %1159 = vmatmul.mubr.bf16.gmra.mrb[76].mxu1 %v2387_v39 }
  0xf9   : > { %v2028_v40 = vpop.f32.mrb[0].mxu1  ;;  %v1956_v46 = vpop.f32.mrb[0].mxu0 }
  0xfa   : > { %v2029_v41 = vpop.f32.mrb[1].mxu1  ;;  %v1957_v48 = vpop.f32.mrb[1].mxu0 }
  0xfb   : > { %v2629_v42 = vadd.f32 %v2029_v41, %v2028_v40  ;;  %v2031_v43 = vpop.f32.mrb[2].mxu1  ;;  %v1958_v50 = vadd.f32 %v1957_v48, %v1956_v46  ;;  %v1959_v51 = vpop.f32.mrb[2].mxu0 }
  0xfc   : > { %v2032_v44 = vpop.f32.mrb[3].mxu1  ;;  %v1960_v54 = vpop.f32.mrb[3].mxu0 }
  0xfd   : > { %v2631_v45 = vadd.f32 %v2032_v44, %v2031_v43  ;;  %v1961_v56 = vadd.f32 %v1960_v54, %v1959_v51 }
 0x101   : > { %v2034_v47 = vpop.f32.mrb[4].mxu1  ;;  %v1962_v58 = vpop.f32.mrb[4].mxu0 }
 0x102   : > { %v2035_v49 = vpop.f32.mrb[5].mxu1  ;;  %v1963_v60 = vpop.f32.mrb[5].mxu0 }
 0x103   : > { %v2633_v52 = vadd.f32 %v2035_v49, %v2034_v47  ;;  %v2037_v53 = vpop.f32.mrb[6].mxu1  ;;  %v1964_v62 = vadd.f32 %v1963_v60, %v1962_v58  ;;  %v1965_v63 = vpop.f32.mrb[6].mxu0 }
 0x104   : > { %v2038_v55 = vpop.f32.mrb[7].mxu1  ;;  %v1966_v2 = vpop.f32.mrb[7].mxu0 }
 0x105   : > { %v2635_v57 = vadd.f32 %v2038_v55, %v2037_v53  ;;  %v1967_v4 = vadd.f32 %v1966_v2, %v1965_v63 }
 0x109   : > { %v2040_v59 = vpop.f32.mrb[8].mxu1  ;;  %v1968_v6 = vpop.f32.mrb[8].mxu0 }
 0x10a   : > { %v2041_v61 = vpop.f32.mrb[9].mxu1  ;;  %v1969_v8 = vpop.f32.mrb[9].mxu0 }
 0x10b   : > { %v2637_v0 = vadd.f32 %v2041_v61, %v2040_v59  ;;  %v2043_v1 = vpop.f32.mrb[10].mxu1  ;;  %v1970_v10 = vadd.f32 %v1969_v8, %v1968_v6  ;;  %v1971_v11 = vpop.f32.mrb[10].mxu0 }
 0x10c   : > { %v2044_v3 = vpop.f32.mrb[11].mxu1  ;;  %v1972_v14 = vpop.f32.mrb[11].mxu0 }
 0x10d   : > { %v2639_v5 = vadd.f32 %v2044_v3, %v2043_v1  ;;  %v1973_v16 = vadd.f32 %v1972_v14, %v1971_v11 }
 0x111   : > { %v2046_v7 = vpop.f32.mrb[12].mxu1  ;;  %v1974_v18 = vpop.f32.mrb[12].mxu0 }
 0x112   : > { %v2047_v9 = vpop.f32.mrb[13].mxu1  ;;  %v1975_v20 = vpop.f32.mrb[13].mxu0 }
 0x113   : > { %v2641_v12 = vadd.f32 %v2047_v9, %v2046_v7  ;;  %v2049_v13 = vpop.f32.mrb[14].mxu1  ;;  %v1976_v22 = vadd.f32 %v1975_v20, %v1974_v18  ;;  %v1977_v23 = vpop.f32.mrb[14].mxu0 }
 0x114   : > { %v2050_v15 = vpop.f32.mrb[15].mxu1  ;;  %v1978_v26 = vpop.f32.mrb[15].mxu0 }
 0x115   : > { %v2643_v17 = vadd.f32 %v2050_v15, %v2049_v13  ;;  %v1979_v28 = vadd.f32 %v1978_v26, %v1977_v23 }
 0x119   : > { %v2068_v19 = vpop.f32.mrb[16].mxu1  ;;  %v1980_v32 = vpop.f32.mrb[16].mxu0 }
 0x11a   : > { %v2069_v21 = vpop.f32.mrb[17].mxu1  ;;  %v1981_v35 = vpop.f32.mrb[17].mxu0 }
 0x11b   : > { %v2070_v24 = vadd.f32 %v2069_v21, %v2068_v19  ;;  %v2071_v25 = vpop.f32.mrb[18].mxu1  ;;  %v1982_v37 = vadd.f32 %v1981_v35, %v1980_v32  ;;  %v1983_v38 = vpop.f32.mrb[18].mxu0 }
 0x11c   : > { %v2072_v27 = vpop.f32.mrb[19].mxu1  ;;  %v1984_v41 = vpop.f32.mrb[19].mxu0 }
 0x11d   : > { %v1041_v29 = vadd.f32 %v2070_v24, %v1958_v50  ;;  %v2073_v30 = vadd.f32 %v2072_v27, %v2071_v25  ;;  %v1985_v44 = vadd.f32 %v1984_v41, %v1983_v38 }
 0x11f   : > { %v1044_v31 = vadd.f32 %v2073_v30, %v1961_v56 }
 0x121   : > { %v2074_v33 = vpop.f32.mrb[20].mxu1  ;;  %v1167_v34 = vpack.c.bf16 %v1044_v31, %v1041_v29  ;;  %v1986_v49 = vpop.f32.mrb[20].mxu0 }
 0x122   : > { %v2075_v36 = vpop.f32.mrb[21].mxu1  ;;  %v1987_v53 = vpop.f32.mrb[21].mxu0 }
 0x123   : > { %v2076_v39 = vadd.f32 %v2075_v36, %v2074_v33  ;;  %v2077_v40 = vpop.f32.mrb[22].mxu1  ;;  %2204 = vmatprep.mubr.bf16.mxu0 %v1167_v34  ;;  %v1988_v55 = vadd.f32 %v1987_v53, %v1986_v49  ;;  %v1989_v56 = vpop.f32.mrb[22].mxu0 }
 0x124   : > { %v2078_v43 = vpop.f32.mrb[23].mxu1  ;;  %v1990_v60 = vpop.f32.mrb[23].mxu0 }
 0x125   : > { %v1049_v46 = vadd.f32 %v2076_v39, %v1964_v62  ;;  %v2079_v47 = vadd.f32 %v2078_v43, %v2077_v40  ;;  %v1991_v63 = vadd.f32 %v1990_v60, %v1989_v56 }
 0x127   : > { %v1052_v48 = vadd.f32 %v2079_v47, %v1967_v4 }
 0x129   : > { %v1168_v50 = vpack.c.bf16 %v1052_v48, %v1049_v46  ;;  %v2080_v51 = vpop.f32.mrb[24].mxu1  ;;  %v1992_v6 = vpop.f32.mrb[24].mxu0 }
 0x12a   : > { %v2081_v54 = vpop.f32.mrb[25].mxu1  ;;  %v1993_v4 = vpop.f32.mrb[25].mxu0 }
 0x12b   : > { %v2082_v58 = vadd.f32 %v2081_v54, %v2080_v51  ;;  %v2083_v59 = vpop.f32.mrb[26].mxu1  ;;  %2205 = vmatmul.mubr.bf16.vlgmr.msra.gmra.mrb[48].mxu0 %v1168_v50  ;;  %v1994_v9 = vadd.f32 %v1993_v4, %v1992_v6  ;;  %v1995_v11 = vpop.f32.mrb[26].mxu0 }
 0x12c   : > { %v2084_v61 = vpop.f32.mrb[27].mxu1  ;;  %v1996_v15 = vpop.f32.mrb[27].mxu0 }
 0x12d   : > { %v1057_v1 = vadd.f32 %v2082_v58, %v1970_v10  ;;  %v2085_v2 = vadd.f32 %v2084_v61, %v2083_v59  ;;  %v1997_v19 = vadd.f32 %v1996_v15, %v1995_v11 }
 0x12f   : > { %v1060_v3 = vadd.f32 %v2085_v2, %v1973_v16 }
 0x131   : > { %v2086_v62 = vpop.f32.mrb[28].mxu1  ;;  %v1169_v7 = vpack.c.bf16 %v1060_v3, %v1057_v1  ;;  %v1998_v24 = vpop.f32.mrb[28].mxu0 }
 0x132   : > { %v2087_v8 = vpop.f32.mrb[29].mxu1  ;;  %v1999_v16 = vpop.f32.mrb[29].mxu0 }
 0x133   : > { %v2088_v13 = vadd.f32 %v2087_v8, %v2086_v62  ;;  %v2089_v14 = vpop.f32.mrb[30].mxu1  ;;  %2208 = vmatprep.mubr.bf16.mxu0 %v1169_v7  ;;  %v2000_v27 = vadd.f32 %v1999_v16, %v1998_v24  ;;  %v2001_v29 = vpop.f32.mrb[30].mxu0 }
 0x134   : > { %v2090_v18 = vpop.f32.mrb[31].mxu1  ;;  %v2002_v32 = vpop.f32.mrb[31].mxu0 }
 0x135   : > { %v1065_v20 = vadd.f32 %v2088_v13, %v1976_v22  ;;  %v2091_v21 = vadd.f32 %v2090_v18, %v2089_v14  ;;  %v2003_v34 = vadd.f32 %v2002_v32, %v2001_v29 }
 0x137   : > { %v1068_v23 = vadd.f32 %v2091_v21, %v1979_v28 }
 0x139   : > { %v2092_v10 = vpop.f32.mrb[32].mxu1  ;;  %v1170_v25 = vpack.c.bf16 %v1068_v23, %v1065_v20  ;;  %v2004_v39 = vpop.f32.mrb[32].mxu0 }
 0x13a   : > { %v2093_v26 = vpop.f32.mrb[33].mxu1  ;;  %v2005_v28 = vpop.f32.mrb[33].mxu0 }
 0x13b   : > { %v2094_v30 = vadd.f32 %v2093_v26, %v2092_v10  ;;  %v2095_v31 = vpop.f32.mrb[34].mxu1  ;;  %2209 = vmatmul.mubr.bf16.gmra.mrb[52].mxu0 %v1170_v25  ;;  %v2006_v43 = vadd.f32 %v2005_v28, %v2004_v39  ;;  %v2007_v46 = vpop.f32.mrb[34].mxu0 }
 0x13c   : > { %v2096_v33 = vpop.f32.mrb[35].mxu1  ;;  %v2008_v49 = vpop.f32.mrb[35].mxu0 }
 0x13d   : > { %v1073_v35 = vadd.f32 %v2094_v30, %v1982_v37  ;;  %v2097_v36 = vadd.f32 %v2096_v33, %v2095_v31  ;;  %v2009_v51 = vadd.f32 %v2008_v49, %v2007_v46 }
 0x13f   : > { %v1076_v38 = vadd.f32 %v2097_v36, %v1985_v44 }
 0x141   : > { %v2098_v22 = vpop.f32.mrb[36].mxu1  ;;  %v1171_v40 = vpack.c.bf16 %v1076_v38, %v1073_v35  ;;  %v2010_v58 = vpop.f32.mrb[36].mxu0 }
 0x142   : > { %v2099_v41 = vpop.f32.mrb[37].mxu1  ;;  %v2011_v44 = vpop.f32.mrb[37].mxu0 }
 0x143   : > { %v2100_v47 = vadd.f32 %v2099_v41, %v2098_v22  ;;  %v2101_v48 = vpop.f32.mrb[38].mxu1  ;;  %2212 = vmatprep.mubr.bf16.mxu0 %v1171_v40  ;;  %v2012_v61 = vadd.f32 %v2011_v44, %v2010_v58  ;;  %v2013_v1 = vpop.f32.mrb[38].mxu0 }
 0x144   : > { %v2102_v50 = vpop.f32.mrb[39].mxu1  ;;  %v2014_v6 = vpop.f32.mrb[39].mxu0 }
 0x145   : > { %v1081_v53 = vadd.f32 %v2100_v47, %v1988_v55  ;;  %v2103_v54 = vadd.f32 %v2102_v50, %v2101_v48  ;;  %v2015_v7 = vadd.f32 %v2014_v6, %v2013_v1 }
 0x147   : > { %v1084_v56 = vadd.f32 %v2103_v54, %v1991_v63 }
 0x149   : > { %v2104_v37 = vpop.f32.mrb[40].mxu1  ;;  %v1172_v59 = vpack.c.bf16 %v1084_v56, %v1081_v53  ;;  %v2016_v13 = vpop.f32.mrb[40].mxu0 }
 0x14a   : > { %v2105_v60 = vpop.f32.mrb[41].mxu1  ;;  %v2017_v63 = vpop.f32.mrb[41].mxu0 }
 0x14b   : > { %v2106_v2 = vadd.f32 %v2105_v60, %v2104_v37  ;;  %v2107_v3 = vpop.f32.mrb[42].mxu1  ;;  %2213 = vmatmul.mubr.bf16.gmra.mrb[56].mxu0 %v1172_v59  ;;  %v2018_v18 = vadd.f32 %v2017_v63, %v2016_v13  ;;  %v2019_v20 = vpop.f32.mrb[42].mxu0 }
 0x14c   : > { %v2108_v62 = vpop.f32.mrb[43].mxu1  ;;  %v2020_v24 = vpop.f32.mrb[43].mxu0 }
 0x14d   : > { %v1089_v4 = vadd.f32 %v2106_v2, %v1994_v9  ;;  %v2109_v8 = vadd.f32 %v2108_v62, %v2107_v3  ;;  %v2021_v25 = vadd.f32 %v2020_v24, %v2019_v20 }
 0x14f   : > { %v1092_v11 = vadd.f32 %v2109_v8, %v1997_v19 }
 0x151   : > { %v2110_v55 = vpop.f32.mrb[44].mxu1  ;;  %v1173_v14 = vpack.c.bf16 %v1092_v11, %v1089_v4  ;;  %v2022_v30 = vpop.f32.mrb[44].mxu0 }
 0x152   : > { %v2111_v15 = vpop.f32.mrb[45].mxu1  ;;  %v2023_v19 = vpop.f32.mrb[45].mxu0 }
 0x153   : > { %v2112_v21 = vadd.f32 %v2111_v15, %v2110_v55  ;;  %v2113_v23 = vpop.f32.mrb[46].mxu1  ;;  %2216 = vmatprep.mubr.bf16.mxu0 %v1173_v14  ;;  %v2024_v33 = vadd.f32 %v2023_v19, %v2022_v30  ;;  %v2025_v35 = vpop.f32.mrb[46].mxu0 }
 0x154   : > { %v2114_v10 = vpop.f32.mrb[47].mxu1  ;;  %v2026_v39 = vpop.f32.mrb[47].mxu0 }
 0x155   : > { %v1097_v16 = vadd.f32 %v2112_v21, %v2000_v27  ;;  %v2115_v26 = vadd.f32 %v2114_v10, %v2113_v23  ;;  %v2027_v40 = vadd.f32 %v2026_v39, %v2025_v35 }
 0x157   : > { %v1100_v29 = vadd.f32 %v2115_v26, %v2003_v34 }
 0x159   : > { %v2116_v9 = vpop.f32.mrb[48].mxu1  ;;  %v1174_v31 = vpack.c.bf16 %v1100_v29, %v1097_v16 }
 0x15a   : > { %v2117_v32 = vpop.f32.mrb[49].mxu1 }
 0x15b   : > { %v2118_v36 = vadd.f32 %v2117_v32, %v2116_v9  ;;  %v2119_v38 = vpop.f32.mrb[50].mxu1  ;;  %2217 = vmatmul.mubr.bf16.gmra.mrb[60].mxu0 %v1174_v31 }
 0x15c   : > { %v2120_v22 = vpop.f32.mrb[51].mxu1 }
 0x15d   : > { %v1105_v28 = vadd.f32 %v2118_v36, %v2006_v43  ;;  %v2121_v41 = vadd.f32 %v2120_v22, %v2119_v38 }
 0x15f   : > { %v1108_v46 = vadd.f32 %v2121_v41, %v2009_v51 }
 0x161   : > { %v2122_v47 = vpop.f32.mrb[52].mxu1  ;;  %v1175_v27 = vpack.c.bf16 %v1108_v46, %v1105_v28 }
 0x162   : > { %v2123_v48 = vpop.f32.mrb[53].mxu1 }
 0x163   : > { %v2124_v34 = vadd.f32 %v2123_v48, %v2122_v47  ;;  %v2125_v49 = vpop.f32.mrb[54].mxu1  ;;  %2220 = vmatprep.mubr.bf16.mxu0 %v1175_v27 }
 0x164   : > { %v2126_v50 = vpop.f32.mrb[55].mxu1 }
 0x165   : > { %v1113_v53 = vadd.f32 %v2124_v34, %v2012_v61  ;;  %v2127_v54 = vadd.f32 %v2126_v50, %v2125_v49 }
 0x167   : > { %v1116_v56 = vadd.f32 %v2127_v54, %v2015_v7 }
 0x169   : > { %v2128_v58 = vpop.f32.mrb[56].mxu1  ;;  %v1176_v37 = vpack.c.bf16 %v1116_v56, %v1113_v53 }
 0x16a   : > { %v2129_v59 = vpop.f32.mrb[57].mxu1 }
 0x16b   : > { %v2130_v44 = vadd.f32 %v2129_v59, %v2128_v58  ;;  %v2131_v60 = vpop.f32.mrb[58].mxu1  ;;  %2221 = vmatmul.mubr.bf16.gmra.mrb[64].mxu0 %v1176_v37 }
 0x16c   : > { %v2132_v1 = vpop.f32.mrb[59].mxu1 }
 0x16d   : > { %v1121_v43 = vadd.f32 %v2130_v44, %v2018_v18  ;;  %v2133_v2 = vadd.f32 %v2132_v1, %v2131_v60 }
 0x16f   : > { %v1124_v51 = vadd.f32 %v2133_v2, %v2021_v25 }
 0x171   : > { %v2134_v3 = vpop.f32.mrb[60].mxu1  ;;  %v1177_v6 = vpack.c.bf16 %v1124_v51, %v1121_v43 }
 0x172   : > { %v2135_v62 = vpop.f32.mrb[61].mxu1 }
 0x173   : > { %v2136_v4 = vadd.f32 %v2135_v62, %v2134_v3  ;;  %v2137_v8 = vpop.f32.mrb[62].mxu1  ;;  %2224 = vmatprep.mubr.bf16.mxu0 %v1177_v6 }
 0x174   : > { %v2138_v11 = vpop.f32.mrb[63].mxu1 }
 0x175   : > { %v1129_v61 = vadd.f32 %v2136_v4, %v2024_v33  ;;  %v2139_v13 = vadd.f32 %v2138_v11, %v2137_v8 }
 0x177   : > { %v1132_v7 = vadd.f32 %v2139_v13, %v2027_v40 }
 0x179   : > { %v2140_v55 = vpop.f32.mrb[64].mxu1  ;;  %v1178_v14 = vpack.c.bf16 %v1132_v7, %v1129_v61 }
 0x17a   : > { %v2141_v63 = vpop.f32.mrb[65].mxu1 }
 0x17b   : > { %v2142_v15 = vadd.f32 %v2141_v63, %v2140_v55  ;;  %v2143_v20 = vpop.f32.mrb[66].mxu1  ;;  %2225 = vmatmul.mubr.bf16.gmra.mrb[68].mxu0 %v1178_v14 }
 0x17c   : > { %v2144_v21 = vpop.f32.mrb[67].mxu1 }
 0x17d   : > { %v1137_v18 = vadd.f32 %v2142_v15, %v2629_v42  ;;  %v2145_v23 = vadd.f32 %v2144_v21, %v2143_v20 }
 0x17f   : > { %v1140_v24 = vadd.f32 %v2145_v23, %v2631_v45 }
 0x181   : > { %v2146_v10 = vpop.f32.mrb[68].mxu1  ;;  %v1179_v25 = vpack.c.bf16 %v1140_v24, %v1137_v18 }
 0x182   : > { %v2147_v16 = vpop.f32.mrb[69].mxu1 }
 0x183   : > { %v2148_v26 = vadd.f32 %v2147_v16, %v2146_v10  ;;  %v2149_v29 = vpop.f32.mrb[70].mxu1  ;;  %2228 = vmatprep.mubr.bf16.mxu0 %v1179_v25 }
 0x184   : > { %v2150_v30 = vpop.f32.mrb[71].mxu1 }
 0x185   : > { %v1145_v9 = vadd.f32 %v2148_v26, %v2633_v52  ;;  %v2151_v31 = vadd.f32 %v2150_v30, %v2149_v29 }
 0x187   : > { %v1148_v19 = vadd.f32 %v2151_v31, %v2635_v57 }
 0x189   : > { %v2152_v32 = vpop.f32.mrb[72].mxu1  ;;  %v1180_v33 = vpack.c.bf16 %v1148_v19, %v1145_v9 }
 0x18a   : > { %v2153_v35 = vpop.f32.mrb[73].mxu1 }
 0x18b   : > { %v2154_v36 = vadd.f32 %v2153_v35, %v2152_v32  ;;  %v2155_v42 = vpop.f32.mrb[74].mxu1  ;;  %2229 = vmatmul.mubr.bf16.gmra.mrb[72].mxu0 %v1180_v33 }
 0x18c   : > { %v2156_v38 = vpop.f32.mrb[75].mxu1 }
 0x18d   : > { %v1153_v45 = vadd.f32 %v2154_v36, %v2637_v0  ;;  %v2157_v39 = vadd.f32 %v2156_v38, %v2155_v42  ;;  %v2656_v0 = vld [vmem:[%s2718_s3] ss:$0 sm:$0xff] }
 0x18f   : > { %v1156_v22 = vadd.f32 %v2157_v39, %v2639_v5 }
 0x191   : > { %v2158_v40 = vpop.f32.mrb[76].mxu1  ;;  %v1181_v28 = vpack.c.bf16 %v1156_v22, %v1153_v45 }
 0x192   : > { %v2159_v41 = vpop.f32.mrb[77].mxu1 }
 0x193   : > { %v2160_v52 = vadd.f32 %v2159_v41, %v2158_v40  ;;  %v2161_v46 = vpop.f32.mrb[78].mxu1  ;;  %2232 = vmatprep.mubr.bf16.mxu0 %v1181_v28 }
 0x194   : > { %v2162_v57 = vpop.f32.mrb[79].mxu1 }
 0x195   : > { %v1161_v47 = vadd.f32 %v2160_v52, %v2641_v12  ;;  %v2163_v27 = vadd.f32 %v2162_v57, %v2161_v46 }
 0x197   : > { %v1164_v48 = vadd.f32 %v2163_v27, %v2643_v17 }
 0x199   : > { %v1182_v34 = vpack.c.bf16 %v1164_v48, %v1161_v47 }
 0x19b   : > { %2233 = vmatmul.mubr.bf16.gmra.mrb[76].mxu0 %v1182_v34 }
 0x1fe   : > { %v2206_v5 = vpop.f32.mrb[48].mxu0 }
 0x1ff   : > { %v1297_v49 = vadd.f32 %v2206_v5, %v2656_v0  ;;  %v1288_v50 = vpop.f32.mrb[49].mxu0 }
 0x200   : > { %v1289_v53 = vadd.f32 %v2656_v0, %v1288_v50  ;;  %v2207_v54 = vpop.f32.mrb[50].mxu0 }
 0x201   : > { %v1300_v12 = vadd.f32 %v2207_v54, %v2656_v0  ;;  %v1291_v56 = vpop.f32.mrb[51].mxu0  ;;  %v1417_v58 = vmax.f32 %v1297_v49, 0.0 }
 0x202   : > { %v1292_v17 = vadd.f32 %v2656_v0, %v1291_v56  ;;  %v1415_v59 = vmax.f32 %v1289_v53, 0.0 }
 0x203   : > { %v1418_v37 = vmax.f32 %v1300_v12, 0.0 }
 0x204   : > { %v1416_v44 = vmax.f32 %v1292_v17, 0.0 }
 0x205   : > { %v1853_v60 = vpack.c.bf16 %v1418_v37, %v1417_v58 }
 0x206   : > { %v1848_v1 = vpack.c.bf16 %v1416_v44, %v1415_v59 }
 0x207   : > { %1925 = vst [vmem:[%s2666_s10 + $0x8] sm:$0xff] %v1853_v60  }
 0x208   : > { %1849 = vst [vmem:[%s2666_s10] sm:$0xff] %v1848_v1  }
 0x20e   : > { %v2210_v43 = vpop.f32.mrb[52].mxu0 }
 0x20f   : > { %v1313_v2 = vadd.f32 %v2210_v43, %v2656_v0  ;;  %v1304_v51 = vpop.f32.mrb[53].mxu0 }
 0x210   : > { %v1305_v3 = vadd.f32 %v2656_v0, %v1304_v51  ;;  %v2211_v6 = vpop.f32.mrb[54].mxu0 }
 0x211   : > { %v1316_v62 = vadd.f32 %v2211_v6, %v2656_v0  ;;  %v1307_v4 = vpop.f32.mrb[55].mxu0  ;;  %v1421_v11 = vmax.f32 %v1313_v2, 0.0 }
 0x212   : > { %v1308_v8 = vadd.f32 %v2656_v0, %v1307_v4  ;;  %v1419_v13 = vmax.f32 %v1305_v3, 0.0 }
 0x213   : > { %v1422_v61 = vmax.f32 %v1316_v62, 0.0 }
 0x214   : > { %v1420_v7 = vmax.f32 %v1308_v8, 0.0 }
 0x215   : > { %v1863_v55 = vpack.c.bf16 %v1422_v61, %v1421_v11 }
 0x216   : > { %v1858_v14 = vpack.c.bf16 %v1420_v7, %v1419_v13 }
 0x217   : > { %1927 = vst [vmem:[%s2666_s10 + $0x18] sm:$0xff] %v1863_v55  }
 0x218   : > { %1926 = vst [vmem:[%s2666_s10 + $0x10] sm:$0xff] %v1858_v14  }
 0x21e   : > { %v2214_v63 = vpop.f32.mrb[56].mxu0 }
 0x21f   : > { %v1329_v15 = vadd.f32 %v2214_v63, %v2656_v0  ;;  %v1320_v20 = vpop.f32.mrb[57].mxu0 }
 0x220   : > { %v1321_v21 = vadd.f32 %v2656_v0, %v1320_v20  ;;  %v2215_v18 = vpop.f32.mrb[58].mxu0 }
 0x221   : > { %v1332_v23 = vadd.f32 %v2215_v18, %v2656_v0  ;;  %v1323_v24 = vpop.f32.mrb[59].mxu0  ;;  %v1425_v25 = vmax.f32 %v1329_v15, 0.0 }
 0x222   : > { %v1324_v10 = vadd.f32 %v2656_v0, %v1323_v24  ;;  %v1423_v26 = vmax.f32 %v1321_v21, 0.0 }
 0x223   : > { %v1426_v16 = vmax.f32 %v1332_v23, 0.0 }
 0x224   : > { %v1424_v29 = vmax.f32 %v1324_v10, 0.0 }
 0x225   : > { %v1873_v30 = vpack.c.bf16 %v1426_v16, %v1425_v25 }
 0x226   : > { %v1868_v9 = vpack.c.bf16 %v1424_v29, %v1423_v26 }
 0x227   : > { %1929 = vst [vmem:[%s2666_s10 + $0x28] sm:$0xff] %v1873_v30  }
 0x228   : > { %1928 = vst [vmem:[%s2666_s10 + $0x20] sm:$0xff] %v1868_v9  }
 0x22e   : > { %v2218_v31 = vpop.f32.mrb[60].mxu0 }
 0x22f   : > { %v1345_v19 = vadd.f32 %v2218_v31, %v2656_v0  ;;  %v1336_v32 = vpop.f32.mrb[61].mxu0 }
 0x230   : > { %v1337_v33 = vadd.f32 %v2656_v0, %v1336_v32  ;;  %v2219_v35 = vpop.f32.mrb[62].mxu0 }
 0x231   : > { %v1348_v36 = vadd.f32 %v2219_v35, %v2656_v0  ;;  %v1339_v42 = vpop.f32.mrb[63].mxu0  ;;  %v1429_v45 = vmax.f32 %v1345_v19, 0.0 }
 0x232   : > { %v1340_v38 = vadd.f32 %v2656_v0, %v1339_v42  ;;  %v1427_v22 = vmax.f32 %v1337_v33, 0.0 }
 0x233   : > { %v1430_v39 = vmax.f32 %v1348_v36, 0.0 }
 0x234   : > { %v1428_v40 = vmax.f32 %v1340_v38, 0.0 }
 0x235   : > { %v1883_v28 = vpack.c.bf16 %v1430_v39, %v1429_v45 }
 0x236   : > { %v1878_v41 = vpack.c.bf16 %v1428_v40, %v1427_v22 }
 0x237   : > { %1931 = vst [vmem:[%s2666_s10 + $0x38] sm:$0xff] %v1883_v28  }
 0x238   : > { %1930 = vst [vmem:[%s2666_s10 + $0x30] sm:$0xff] %v1878_v41  }
 0x23e   : > { %v2222_v52 = vpop.f32.mrb[64].mxu0 }
 0x23f   : > { %v1361_v46 = vadd.f32 %v2222_v52, %v2656_v0  ;;  %v1352_v57 = vpop.f32.mrb[65].mxu0 }
 0x240   : > { %v1353_v47 = vadd.f32 %v2656_v0, %v1352_v57  ;;  %v2223_v27 = vpop.f32.mrb[66].mxu0 }
 0x241   : > { %v1364_v48 = vadd.f32 %v2223_v27, %v2656_v0  ;;  %v1355_v34 = vpop.f32.mrb[67].mxu0  ;;  %v1433_v49 = vmax.f32 %v1361_v46, 0.0 }
 0x242   : > { %v1356_v5 = vadd.f32 %v2656_v0, %v1355_v34  ;;  %v1431_v53 = vmax.f32 %v1353_v47, 0.0 }
 0x243   : > { %v1434_v50 = vmax.f32 %v1364_v48, 0.0 }
 0x244   : > { %v1432_v54 = vmax.f32 %v1356_v5, 0.0 }
 0x245   : > { %v1893_v12 = vpack.c.bf16 %v1434_v50, %v1433_v49 }
 0x246   : > { %v1888_v56 = vpack.c.bf16 %v1432_v54, %v1431_v53 }
 0x247   : > { %1933 = vst [vmem:[%s2666_s10 + $0x48] sm:$0xff] %v1893_v12  }
 0x248   : > { %1932 = vst [vmem:[%s2666_s10 + $0x40] sm:$0xff] %v1888_v56  }
 0x24e   : > { %v2226_v17 = vpop.f32.mrb[68].mxu0 }
 0x24f   : > { %v1377_v58 = vadd.f32 %v2226_v17, %v2656_v0  ;;  %v1368_v37 = vpop.f32.mrb[69].mxu0 }
 0x250   : > { %v1369_v59 = vadd.f32 %v2656_v0, %v1368_v37  ;;  %v2227_v44 = vpop.f32.mrb[70].mxu0 }
 0x251   : > { %v1380_v60 = vadd.f32 %v2227_v44, %v2656_v0  ;;  %v1371_v1 = vpop.f32.mrb[71].mxu0  ;;  %v1437_v2 = vmax.f32 %v1377_v58, 0.0 }
 0x252   : > { %v1372_v43 = vadd.f32 %v2656_v0, %v1371_v1  ;;  %v1435_v3 = vmax.f32 %v1369_v59, 0.0 }
 0x253   : > { %v1438_v51 = vmax.f32 %v1380_v60, 0.0 }
 0x254   : > { %v1436_v6 = vmax.f32 %v1372_v43, 0.0 }
 0x255   : > { %v1903_v62 = vpack.c.bf16 %v1438_v51, %v1437_v2 }
 0x256   : > { %v1898_v4 = vpack.c.bf16 %v1436_v6, %v1435_v3 }
 0x257   : > { %1935 = vst [vmem:[%s2666_s10 + $0x58] sm:$0xff] %v1903_v62  }
 0x258   : > { %1934 = vst [vmem:[%s2666_s10 + $0x50] sm:$0xff] %v1898_v4  }
 0x25e   : > { %v2230_v8 = vpop.f32.mrb[72].mxu0 }
 0x25f   : > { %v1393_v11 = vadd.f32 %v2230_v8, %v2656_v0  ;;  %v1384_v61 = vpop.f32.mrb[73].mxu0 }
 0x260   : > { %v1385_v13 = vadd.f32 %v2656_v0, %v1384_v61  ;;  %v2231_v7 = vpop.f32.mrb[74].mxu0 }
 0x261   : > { %v1396_v55 = vadd.f32 %v2231_v7, %v2656_v0  ;;  %v1387_v14 = vpop.f32.mrb[75].mxu0  ;;  %v1441_v15 = vmax.f32 %v1393_v11, 0.0 }
 0x262   : > { %v1388_v63 = vadd.f32 %v2656_v0, %v1387_v14  ;;  %v1439_v21 = vmax.f32 %v1385_v13, 0.0 }
 0x263   : > { %v1442_v20 = vmax.f32 %v1396_v55, 0.0 }
 0x264   : > { %v1440_v18 = vmax.f32 %v1388_v63, 0.0 }
 0x265   : > { %v1913_v23 = vpack.c.bf16 %v1442_v20, %v1441_v15 }
 0x266   : > { %v1908_v24 = vpack.c.bf16 %v1440_v18, %v1439_v21 }
 0x267   : > { %1937 = vst [vmem:[%s2666_s10 + $0x68] sm:$0xff] %v1913_v23  }
 0x268   : > { %1936 = vst [vmem:[%s2666_s10 + $0x60] sm:$0xff] %v1908_v24  }
 0x26e   : > { %v2234_v10 = vpop.f32.mrb[76].mxu0 }
 0x26f   : > { %v1409_v25 = vadd.f32 %v2234_v10, %v2656_v0  ;;  %v1400_v16 = vpop.f32.mrb[77].mxu0 }
 0x270   : > { %v1401_v26 = vadd.f32 %v2656_v0, %v1400_v16  ;;  %v2235_v29 = vpop.f32.mrb[78].mxu0 }
 0x271   : > { %v1412_v30 = vadd.f32 %v2235_v29, %v2656_v0  ;;  %v1403_v9 = vpop.f32.mrb[79].mxu0  ;;  %v1445_v19 = vmax.f32 %v1409_v25, 0.0 }
 0x272   : > { %v1404_v31 = vadd.f32 %v2656_v0, %v1403_v9  ;;  %v1443_v33 = vmax.f32 %v1401_v26, 0.0 }
 0x273   : > { %v1446_v32 = vmax.f32 %v1412_v30, 0.0 }
 0x274   : > { %v1444_v35 = vmax.f32 %v1404_v31, 0.0 }
 0x275   : > { %v1923_v36 = vpack.c.bf16 %v1446_v32, %v1445_v19 }
 0x276   : > { %v1918_v42 = vpack.c.bf16 %v1444_v35, %v1443_v33 }
 0x277   : > { %1939 = vst [vmem:[%s2666_s10 + $0x78] sm:$0xff] %v1923_v36  }
 0x278   : > { %1938 = vst [vmem:[%s2666_s10 + $0x70] sm:$0xff] %v1918_v42  }
 0x279 PF: > { %s14_s15 = sadd.s32 1, %s2402_s15  }
 0x27a   : > { %p11_p4 = scmp.ge.s32.totalorder %s14_s15, 4  }
 0x27c   :  { %13 = sbr.rel (!%p11_p4) target bundleno = 1 (0x1), region = 66 }

// kernel: prodar_forward.4
= control target key start
LH: loop header
LB: loop body
LE: loop exit
PB: predicated region body
PF: predicated region fallthrough
CT: control target
= control target key end

     0   :  { %9 = vsyncpa [#allocation3], 0  ;;  %s3113_s0 = inlined_call_operand.hbm [shape: bf16[512,512], index: 0, kind: input, shape index: {}]   ;;  %s3114_s1 = inlined_call_operand.hbm [shape: bf16[512,128], index: 1, kind: input, shape index: {}]   ;;  %s3115_s2 = inlined_call_operand.hbm [shape: bf16[128,128], index: 2, kind: input, shape index: {}]   ;;  %s3116_s3 = inlined_call_operand.hbm [shape: f32[1,128], index: 3, kind: input, shape index: {}]   ;;  %s3117_s4 = inlined_call_operand.vmem [shape: bf16[512,128], index: 4, kind: output, shape index: {}]  }
   0x1   :  { %11 = vsyncpa [#allocation3 + $0x1], 0 }
   0x2   :  { %12 = vsyncpa [#allocation5], 0 }
   0x3   :  { %13 = vsyncpa [#allocation8], 0  ;;  %s2761_s15 = smov 0   ;;  %s2763_s16 = smov 0  }
   0x4   :  { %s2765_s17 = smov 0   ;;  %s2767_s18 = smov 0  }
   0x5 LB: > { %s1762_s19 = sadd.s32 4294967295, %s2726_s18   ;;  %p39_p0 = scmp.ne.s32.totalorder %s2718_s16, %s2714_s15  ;;  %s2726_s18 = sphi %s2767_s18, %s3134_s18   ;;  %s2722_s17 = sphi %s2765_s17, %s3133_s17   ;;  %s2718_s16 = sphi %s2763_s16, %s3132_s16   ;;  %s2714_s15 = sphi %s2761_s15, %s3131_s15  }
   0x6   : > { %p2783_p1 = scmp.eq.s32.totalorder %s1762_s19, 0  ;;  %p1764_p2 = scmp.ge.s32.totalorder %s2726_s18, 1 }
   0x7   : > { %p139_p3 = scmp.lt.s32.totalorder %s2726_s18, 3  ;;  %s2728_s23 = smov [#allocation4]  }
   0x8   : > { %s3122_s20 = scalar_select %p2783_p1, 1, 0 }
   0x9   : > { %p2791_p4 = por %p2783_p1, %p39_p0  ;;  %p2795_p5 = pnand %p1764_p2, %p139_p3 }
   0xa   : > { %s151_s24 = sshll.u32 %s2728_s23, 4  ;;  %s2729_s26 = smov [#allocation6]   ;;  %s2799_s24 = int_to_ptr.vmem [resolvable:$true] %s151_s24 }
   0xb   : > { %s3123_s21 = scalar_select %p2791_p4, 1, 0 }
   0xc   : > { %s3124_s22 = scalar_select %p2795_p5, 1, 0 }
   0xd   : > { %p2374_p6 = pneg %p2795_p5  ;;  %s164_s27 = sshll.u32 %s2729_s26, 4  ;;  %s2809_s27 = int_to_ptr.vmem [resolvable:$true] %s164_s27 }
   0xe   : > { %s2730_s28 = smov [#allocation7]   ;;  %s2570_s6 = scalar_lea.hbm %s3114_s1, 4096 }
   0xf   : > { %p2805_p7 = pnand %p2374_p6, %p2783_p1  ;;  %s2811_s29 = sshll.u32 %s2730_s28, 4  ;;  %s179_s29 = int_to_ptr.vmem [resolvable:$true] %s2811_s29 }
  0x10   : > { %p2571_p8 = scmp.ne.s32.totalorder %s3114_s1, %s2570_s6  ;;  %p2577_p12 = scmp.lt.u32.totalorder %s2570_s6, %s3114_s1 }
  0x11   : > { %p2821_p9 = pneg %p2805_p7 }
  0x13   : > { %p2573_p10 = pnand %p2821_p9, %p2571_p8 }
  0x15   : > { %p2574_p11 = pneg %p2573_p10 }
  0x17   : > { %p2579_p13 = pnand %p2577_p12, %p2574_p11 }
  0x19   : > { %2582 = shalt.err (!%p2579_p13)
}
  0x1a   : > { %s2583_s12 = scalar_lea.vmem %s2799_s24, 4096  ;;  %p2591_p6 = scmp.lt.s32.totalorder %s2799_s24, %s2799_s24 }
  0x1b   : > { %p2584_p0 = scmp.ne.s32.totalorder %s2799_s24, %s2583_s12  ;;  %p2592_p1 = scmp.lt.s32.totalorder %s2583_s12, %s2583_s12 }
  0x1d   : > { %p2586_p2 = pnand %p2584_p0, %p2821_p9  ;;  %p2593_p8 = por %p2592_p1, %p2591_p6 }
  0x1f   : > { %p2587_p3 = pneg %p2586_p2 }
  0x21   : > { %p2594_p10 = pnand %p2593_p8, %p2587_p3 }
  0x23   : > { %2597 = shalt.err (!%p2594_p10)
}
  0x24   : > { %s2731_s13 = smov 64   ;;  %s2732_s14 = smov 4  }
  0x25   : > { %2377 = dma.hbm_to_vmem [thread:$0]  (!%p2805_p7), %s3114_s1, 4096, %s2799_s24, [#allocation5], %s2731_s13, %s2731_s13, %s2732_s14  }
  0x26   : > { %s2598_s30 = scalar_lea.hbm %s3115_s2, 1024 }
  0x27   : > { %p2599_p1 = scmp.ne.s32.totalorder %s3115_s2, %s2598_s30  ;;  %p2605_p13 = scmp.lt.u32.totalorder %s2598_s30, %s3115_s2 }
  0x29   : > { %p2601_p11 = pnand %p2599_p1, %p2821_p9 }
  0x2b   : > { %p2602_p12 = pneg %p2601_p11 }
  0x2d   : > { %p2607_p0 = pnand %p2605_p13, %p2602_p12 }
  0x2f   : > { %2610 = shalt.err (!%p2607_p0)
}
  0x30   : > { %s2611_s24 = scalar_lea.vmem %s2809_s27, 1024  ;;  %p2619_p8 = scmp.lt.s32.totalorder %s2809_s27, %s2809_s27 }
  0x31   : > { %p2612_p2 = scmp.ne.s32.totalorder %s2809_s27, %s2611_s24  ;;  %p2620_p10 = scmp.lt.s32.totalorder %s2611_s24, %s2611_s24 }
  0x33   : > { %p2614_p3 = pnand %p2612_p2, %p2821_p9  ;;  %p2621_p1 = por %p2620_p10, %p2619_p8 }
  0x35   : > { %p2615_p6 = pneg %p2614_p3 }
  0x37   : > { %p2622_p11 = pnand %p2621_p1, %p2615_p6 }
  0x39   : > { %2625 = shalt.err (!%p2622_p11)
}
  0x3a   : > { %2380 = dma.hbm_to_vmem [thread:$0]  (!%p2805_p7), %s3115_s2, 1024, %s2809_s27, [#allocation5], %s2731_s13, %s2731_s13, %s2732_s14  }
  0x3b   : > { %s2626_s23 = scalar_lea.hbm %s3116_s3, 16 }
  0x3c   : > { %p2627_p12 = scmp.ne.s32.totalorder %s3116_s3, %s2626_s23  ;;  %p2633_p2 = scmp.lt.u32.totalorder %s2626_s23, %s3116_s3 }
  0x3e   : > { %p2629_p13 = pnand %p2627_p12, %p2821_p9 }
  0x40   : > { %p2630_p0 = pneg %p2629_p13 }
  0x42   : > { %p2635_p3 = pnand %p2633_p2, %p2630_p0 }
  0x44   : > { %2638 = shalt.err (!%p2635_p3)
}
  0x45   : > { %s2639_s6 = scalar_lea.vmem %s179_s29, 16  ;;  %s2646_s27 = scalar_lea.vmem %s179_s29, 32 }
  0x46   : > { %p2640_p6 = scmp.ne.s32.totalorder %s179_s29, %s2639_s6  ;;  %p2647_p1 = scmp.lt.s32.totalorder %s179_s29, %s179_s29 }
  0x47   : > { %p2648_p11 = scmp.lt.s32.totalorder %s2646_s27, %s2639_s6 }
  0x48   : > { %p2642_p8 = pnand %p2640_p6, %p2821_p9 }
  0x49   : > { %p2649_p4 = por %p2648_p11, %p2647_p1 }
  0x4a   : > { %p2643_p10 = pneg %p2642_p8 }
  0x4c   : > { %p2650_p5 = pnand %p2649_p4, %p2643_p10 }
  0x4e   : > { %2653 = shalt.err (!%p2650_p5)
}
  0x4f   : > { %2383 = dma.hbm_to_vmem [thread:$0]  (!%p2805_p7), %s3116_s3, 16, %s179_s29, [#allocation8]  }
  0x50   : > { %s2885_s9 = sadd.s32 1, %s2726_s18   ;;  %s26_s8 = sadd.s32 1, %s2722_s17 }
  0x51   : > { %s23_s7 = ssub.s32 %s2726_s18, %s2885_s9  ;;  %p33_p5 = scmp.ne.s32.totalorder %s2722_s17, %s2718_s16 }
  0x52   : > { %p24_p4 = scmp.eq.s32.totalorder %s23_s7, 0  ;;  %p34_p9 = scmp.eq.s32.totalorder %s2726_s18, 0 }
  0x53   : > { %p2391_p12 = scmp.lt.s32.totalorder %s2726_s18, 2  ;;  %s189_s24 = sand.u32 1, %s2722_s17  }
  0x54   : > { %s2895_s25 = scalar_select %p24_p4, %s2722_s17, %s26_s8  }
  0x55   : > { %p35_p13 = por %p34_p9, %p33_p5  ;;  %s1769_s10 = sshll.u32 %s189_s24, 9 }
  0x56   : > { %s1920_s11 = sshll.u32 %s2726_s18, 13  ;;  %s193_s29 = scalar_lea.vmem [#allocation2], %s1769_s10 }
  0x57   : > { %s2902_s23 = scalar_lea.hbm %s3113_s0, %s1920_s11  ;;  %s201_s26 = sshll.u32 %s193_s29, 4  ;;  %s2904_s26 = int_to_ptr.vmem [resolvable:$true] %s201_s26 }
  0x58   : > { %p2906_p7 = pnand %p2391_p12, %p35_p13  ;;  %s2910_s30 = scalar_lea.sflag [#allocation3], %s189_s24 }
  0x59   : > { %s2654_s5 = scalar_lea.hbm %s2902_s23, 8192  ;;  %s2659_s13 = scalar_lea.hbm %s3113_s0, 16384 }
  0x5a   : > { %p2655_p0 = scmp.ne.s32.totalorder %s2902_s23, %s2654_s5  ;;  %p2656_p2 = pneg %p2906_p7 }
  0x5b   : > { %p2660_p8 = scmp.lt.u32.totalorder %s2902_s23, %s3113_s0  ;;  %p2661_p10 = scmp.lt.u32.totalorder %s2659_s13, %s2654_s5 }
  0x5c   : > { %p2657_p3 = pnand %p2656_p2, %p2655_p0  ;;  %p2663_p11 = scmp.lt.u32.totalorder %s2654_s5, %s2902_s23 }
  0x5d   : > { %p2662_p1 = por %p2661_p10, %p2660_p8 }
  0x5e   : > { %p2658_p6 = pneg %p2657_p3 }
  0x5f   : > { %p2664_p4 = por %p2663_p11, %p2662_p1 }
  0x61   : > { %p2665_p5 = pnand %p2664_p4, %p2658_p6 }
  0x63   : > { %2668 = shalt.err (!%p2665_p5)
}
  0x64   : > { %s2669_s8 = scalar_lea.vmem %s2904_s26, 8192  ;;  %s2733_s24 = smov [#allocation2]  }
  0x65   : > { %p2670_p9 = scmp.ne.s32.totalorder %s2904_s26, %s2669_s8  ;;  %s2674_s10 = sshll.u32 %s2733_s24, 4  ;;  %s2675_s10 = int_to_ptr.vmem [resolvable:$false] %s2674_s10 }
  0x66   : > { %s2676_s11 = scalar_lea.vmem %s2675_s10, 16384  ;;  %p2677_p0 = scmp.lt.s32.totalorder %s2904_s26, %s2675_s10 }
  0x67   : > { %p2672_p12 = pnand %p2670_p9, %p2656_p2  ;;  %p2678_p3 = scmp.lt.s32.totalorder %s2676_s11, %s2669_s8 }
  0x69   : > { %p2673_p13 = pneg %p2672_p12  ;;  %p2679_p8 = por %p2678_p3, %p2677_p0 }
  0x6b   : > { %p2680_p10 = pnand %p2679_p8, %p2673_p13 }
  0x6d   : > { %2683 = shalt.err (!%p2680_p10)
}
  0x6e   : > { %s2734_s12 = smov 256   ;;  %s2735_s15 = smov 16  }
  0x6f   : > { %2387 = dma.hbm_to_vmem [thread:$0]  (!%p2906_p7), %s2902_s23, 8192, %s2904_s26, %s2910_s30, %s2734_s12, %s2734_s12, %s2735_s15  }
  0x70   : > { %p3128_p2 = scmp.ne.s32.totalorder %s3124_s22, 0 }
  0x71   : > { %s215_s29 = sand.u32 (!%p3128_p2), 1, %s2718_s16   ;;  %p3129_p6 = scmp.ne.s32.totalorder (!%p3128_p2), %s3123_s21, 0 }
  0x72   : > { %213 = sbr.rel (%p3128_p2) target bundleno = 755 (0x2f3), region = 36  ;;  %s1774_s5 = sshll.u32 (!%p3128_p2), %s215_s29, 9 }
  0x73   : > { %s216_s6 = scalar_lea.sflag (!%p3128_p2), [#allocation3], %s215_s29  ;;  %s2941_s27 = scalar_lea.vmem (!%p3128_p2), [#allocation2], %s1774_s5 }
  0x79   : > { %2701 = dma.done.wait (%p3129_p6), %s216_s6, 8192  }
  0x7a   : > { %2703 = vsyncadd (%p3129_p6), %s216_s6, 4294959104  ;;  %p3130_p1 = scmp.ne.s32.totalorder %s3122_s20, 0 }
  0x7c   : > { %2705 = dma.done.wait (%p3130_p1), [#allocation5], 5120  }
  0x7d   : > { %2707 = vsyncadd (%p3130_p1), [#allocation5], 4294962176 }
  0x7e   : > { %2709 = dma.done.wait (%p3130_p1), [#allocation8], 16  }
  0x7f   : > { %2711 = vsyncadd (%p3130_p1), [#allocation8], 4294967280  ;;  %v2434_v0 = vld [vmem:[#allocation4 + $0x40] sm:$0xff]   ;;  %v2436_v2 = vld [vmem:[#allocation4 + $0x48] sm:$0xff]   ;;  %s1778_s20 = sshll.u32 %s1762_s19, 5 }
  0x80   : > { %v2435_v1 = vld [vmem:[#allocation4] sm:$0xff]   ;;  %2344 = vmatprep.subr.bf16.mxu1 %v2434_v0  ;;  %2048 = vmatprep.subr.bf16.mxu0 %v2434_v0  ;;  %v2437_v3 = vld [vmem:[#allocation4 + $0x8] sm:$0xff]   ;;  %v2438_v4 = vld [vmem:[#allocation4 + $0x50] sm:$0xff]   ;;  %p258_p7 = scmp.lt.s32.totalorder %s1778_s20, 63 }
  0x81   : > { %2352 = vmatpush3.bf16.msra.mxu1 %v2435_v1  ;;  %2049 = vmatpush3.bf16.msra.mxu0 %v2435_v1  ;;  %v2439_v5 = vld [vmem:[#allocation4 + $0x10] sm:$0xff]   ;;  %v2440_v6 = vld [vmem:[#allocation4 + $0x58] sm:$0xff]   ;;  %v2442_v8 = vld [vmem:[#allocation4 + $0x60] sm:$0xff]  }
  0x82   : > { %2345 = vmatprep.subr.bf16.mxu1 %v2436_v2  ;;  %2050 = vmatprep.subr.bf16.mxu0 %v2436_v2  ;;  %v2441_v7 = vld [vmem:[#allocation4 + $0x18] sm:$0xff]   ;;  %v2443_v9 = vld [vmem:[#allocation4 + $0x20] sm:$0xff]   ;;  %v2444_v10 = vld [vmem:[#allocation4 + $0x68] sm:$0xff]   ;;  %s3136_s20 = smov (!%p258_p7, %s1778_s20), 63 }
  0x83   : > { %v2452_v11 = vld [vmem:[%s2941_s27 + $0x184] ss:$16 sps:$4 sm:$0xff]   ;;  %v2445_v12 = vld [vmem:[#allocation4 + $0x28] sm:$0xff]   ;;  %v2448_v15 = vld [vmem:[#allocation4 + $0x78] sm:$0xff]   ;;  %s1779_s21 = sshll.u32 %s3136_s20, 2 }
  0x84   : > { %1032 = vmatprep.mubr.bf16.mxu1 %v2452_v11  ;;  %v2446_v13 = vld [vmem:[#allocation4 + $0x70] sm:$0xff]   ;;  %v2449_v16 = vld [vmem:[#allocation4 + $0x38] sm:$0xff]   ;;  %v2453_v17 = vld [vmem:[#allocation4 + $0xc0] sm:$0xff]   ;;  %s3054_s22 = scalar_lea.vmem %s3117_s4, %s1779_s21 }
  0x85   : > { %2353 = vmatpush3.bf16.msra.mxu1 %v2437_v3  ;;  %2051 = vmatpush3.bf16.msra.mxu0 %v2437_v3  ;;  %v2447_v14 = vld [vmem:[#allocation4 + $0x30] sm:$0xff]   ;;  %v2454_v19 = vld [vmem:[#allocation4 + $0x80] sm:$0xff]   ;;  %v2455_v21 = vld [vmem:[#allocation4 + $0xc8] sm:$0xff]  }
  0x86   : > { %2346 = vmatprep.subr.bf16.mxu1 %v2438_v4  ;;  %2052 = vmatprep.subr.bf16.mxu0 %v2438_v4  ;;  %v2450_v18 = vld [vmem:[%s2941_s27 + $0x180] ss:$16 sps:$4 sm:$0xff]   ;;  %v2457_v20 = vld [vmem:[%s2941_s27 + $0x1a4] ss:$16 sps:$4 sm:$0xff]   ;;  %v2456_v22 = vld [vmem:[#allocation4 + $0x88] sm:$0xff]  }
  0x87   : > { %v2459_v23 = vld [vmem:[%s2941_s27 + $0x1a0] ss:$16 sps:$4 sm:$0xff]   ;;  %v2480_v27 = vld [vmem:[%s2941_s27 + $0x4] ss:$16 sps:$4 sm:$0xff]   ;;  %v2462_v28 = vld [vmem:[#allocation4 + $0xd8] sm:$0xff]  }
  0x88   : > { %v2460_v24 = vld [vmem:[#allocation4 + $0xd0] sm:$0xff]   ;;  %936 = vmatprep.mubr.bf16.mxu0 %v2480_v27  ;;  %v2463_v31 = vld [vmem:[#allocation4 + $0x98] sm:$0xff]   ;;  %v2467_v33 = vld [vmem:[#allocation4 + $0xe0] sm:$0xff]  }
  0x89   : > { %2354 = vmatpush3.bf16.msra.mxu1 %v2439_v5  ;;  %2053 = vmatpush3.bf16.msra.mxu0 %v2439_v5  ;;  %v2461_v25 = vld [vmem:[#allocation4 + $0x90] sm:$0xff]   ;;  %v2468_v36 = vld [vmem:[#allocation4 + $0xa0] sm:$0xff]   ;;  %v2469_v38 = vld [vmem:[#allocation4 + $0xe8] sm:$0xff]  }
  0x8a   : > { %2347 = vmatprep.subr.bf16.mxu1 %v2440_v6  ;;  %2054 = vmatprep.subr.bf16.mxu0 %v2440_v6  ;;  %v2478_v26 = vld [vmem:[%s2941_s27] ss:$16 sps:$4 sm:$0xff]   ;;  %v2464_v29 = vld [vmem:[%s2941_s27 + $0x1c4] ss:$16 sps:$4 sm:$0xff]   ;;  %v2470_v39 = vld [vmem:[#allocation4 + $0xa8] sm:$0xff]  }
  0x8b   : > { %v2484_v30 = vld [vmem:[%s2941_s27 + $0x24] ss:$16 sps:$4 sm:$0xff]   ;;  %v2466_v32 = vld [vmem:[%s2941_s27 + $0x1c0] ss:$16 sps:$4 sm:$0xff]   ;;  %v2483_v45 = vld [vmem:[%s2941_s27 + $0xc] ss:$16 sps:$4 sm:$0xff]  }
  0x8c   : > { %v2488_v34 = vld [vmem:[%s2941_s27 + $0x20] ss:$16 sps:$4 sm:$0xff]   ;;  %v2490_v35 = vld [vmem:[%s2941_s27 + $0x44] ss:$16 sps:$4 sm:$0xff]   ;;  %v2476_v46 = vld [vmem:[#allocation4 + $0xf8] sm:$0xff]  }
  0x8d   : > { %2355 = vmatpush3.bf16.msra.mxu1 %v2441_v7  ;;  %2055 = vmatpush3.bf16.msra.mxu0 %v2441_v7  ;;  %v2471_v37 = vld [vmem:[%s2941_s27 + $0x1e4] ss:$16 sps:$4 sm:$0xff]   ;;  %v2473_v40 = vld [vmem:[%s2941_s27 + $0x1e0] ss:$16 sps:$4 sm:$0xff]   ;;  %v2477_v47 = vld [vmem:[#allocation4 + $0xb8] sm:$0xff]  }
  0x8e   : > { %2348 = vmatprep.subr.bf16.mxu1 %v2442_v8  ;;  %2056 = vmatprep.subr.bf16.mxu0 %v2442_v8  ;;  %v2474_v41 = vld [vmem:[#allocation4 + $0xf0] sm:$0xff]   ;;  %v2481_v48 = vld [vmem:[%s2941_s27 + $0x8] ss:$16 sps:$4 sm:$0xff]   ;;  %v2486_v51 = vld [vmem:[%s2941_s27 + $0x2c] ss:$16 sps:$4 sm:$0xff]  }
  0x8f   : > { %v2494_v42 = vld [vmem:[%s2941_s27 + $0x40] ss:$16 sps:$4 sm:$0xff]   ;;  %v2496_v43 = vld [vmem:[%s2941_s27 + $0x64] ss:$16 sps:$4 sm:$0xff]   ;;  %v2489_v53 = vld [vmem:[%s2941_s27 + $0x28] ss:$16 sps:$4 sm:$0xff]  }
  0x90   : > { %v2475_v44 = vld [vmem:[#allocation4 + $0xb0] sm:$0xff]   ;;  %v2492_v55 = vld [vmem:[%s2941_s27 + $0x4c] ss:$16 sps:$4 sm:$0xff]   ;;  %v2495_v57 = vld [vmem:[%s2941_s27 + $0x48] ss:$16 sps:$4 sm:$0xff]  }
  0x91   : > { %2356 = vmatpush3.bf16.msra.mxu1 %v2443_v9  ;;  %2057 = vmatpush3.bf16.msra.mxu0 %v2443_v9  ;;  %v2500_v49 = vld [vmem:[%s2941_s27 + $0x60] ss:$16 sps:$4 sm:$0xff]   ;;  %v2502_v50 = vld [vmem:[%s2941_s27 + $0x84] ss:$16 sps:$4 sm:$0xff]   ;;  %v2498_v59 = vld [vmem:[%s2941_s27 + $0x6c] ss:$16 sps:$4 sm:$0xff]  }
  0x92   : > { %2349 = vmatprep.subr.bf16.mxu1 %v2444_v10  ;;  %2058 = vmatprep.subr.bf16.mxu0 %v2444_v10  ;;  %v2506_v52 = vld [vmem:[%s2941_s27 + $0x80] ss:$16 sps:$4 sm:$0xff]   ;;  %v2508_v54 = vld [vmem:[%s2941_s27 + $0xa4] ss:$16 sps:$4 sm:$0xff]   ;;  %v2501_v61 = vld [vmem:[%s2941_s27 + $0x68] ss:$16 sps:$4 sm:$0xff]  }
  0x93   : > { %v2512_v56 = vld [vmem:[%s2941_s27 + $0xa0] ss:$16 sps:$4 sm:$0xff]   ;;  %v2514_v58 = vld [vmem:[%s2941_s27 + $0xc4] ss:$16 sps:$4 sm:$0xff]   ;;  %v2504_v63 = vld [vmem:[%s2941_s27 + $0x8c] ss:$16 sps:$4 sm:$0xff]  }
  0x94   : > { %v2518_v60 = vld [vmem:[%s2941_s27 + $0xc0] ss:$16 sps:$4 sm:$0xff]   ;;  %v2520_v62 = vld [vmem:[%s2941_s27 + $0xe4] ss:$16 sps:$4 sm:$0xff]   ;;  %v2507_v1 = vld [vmem:[%s2941_s27 + $0x88] ss:$16 sps:$4 sm:$0xff]  }
  0x95   : > { %2357 = vmatpush3.bf16.msra.mxu1 %v2445_v12  ;;  %2059 = vmatpush3.bf16.msra.mxu0 %v2445_v12  ;;  %v2524_v0 = vld [vmem:[%s2941_s27 + $0xe0] ss:$16 sps:$4 sm:$0xff]   ;;  %v2526_v2 = vld [vmem:[%s2941_s27 + $0x104] ss:$16 sps:$4 sm:$0xff]   ;;  %v2510_v3 = vld [vmem:[%s2941_s27 + $0xac] ss:$16 sps:$4 sm:$0xff]  }
  0x96   : > { %2350 = vmatprep.subr.bf16.mxu1 %v2446_v13  ;;  %2060 = vmatprep.subr.bf16.mxu0 %v2446_v13  ;;  %v2530_v4 = vld [vmem:[%s2941_s27 + $0x100] ss:$16 sps:$4 sm:$0xff]   ;;  %v2513_v5 = vld [vmem:[%s2941_s27 + $0xa8] ss:$16 sps:$4 sm:$0xff]   ;;  %v2532_v6 = vld [vmem:[%s2941_s27 + $0x124] ss:$16 sps:$4 sm:$0xff]  }
  0x97   : > { %v2516_v7 = vld [vmem:[%s2941_s27 + $0xcc] ss:$16 sps:$4 sm:$0xff]   ;;  %v2536_v8 = vld [vmem:[%s2941_s27 + $0x120] ss:$16 sps:$4 sm:$0xff]   ;;  %v2519_v9 = vld [vmem:[%s2941_s27 + $0xc8] ss:$16 sps:$4 sm:$0xff]  }
  0x98   : > { %v2538_v10 = vld [vmem:[%s2941_s27 + $0x144] ss:$16 sps:$4 sm:$0xff]   ;;  %v2522_v11 = vld [vmem:[%s2941_s27 + $0xec] ss:$16 sps:$4 sm:$0xff]   ;;  %v2542_v12 = vld [vmem:[%s2941_s27 + $0x140] ss:$16 sps:$4 sm:$0xff]  }
  0x99   : > { %2358 = vmatpush3.bf16.msra.mxu1 %v2447_v14  ;;  %2061 = vmatpush3.bf16.msra.mxu0 %v2447_v14  ;;  %v2525_v13 = vld [vmem:[%s2941_s27 + $0xe8] ss:$16 sps:$4 sm:$0xff]   ;;  %v2544_v14 = vld [vmem:[%s2941_s27 + $0x164] ss:$16 sps:$4 sm:$0xff]  }
  0x9a   : > { %2351 = vmatprep.subr.bf16.mxu1 %v2448_v15  ;;  %2062 = vmatprep.subr.bf16.mxu0 %v2448_v15  ;;  %v2528_v15 = vld [vmem:[%s2941_s27 + $0x10c] ss:$16 sps:$4 sm:$0xff]   ;;  %v2566_v27 = vld [vmem:[#allocation6 + $0x20] sm:$0xff]  }
  0x9d   : > { %2359 = vmatpush3.bf16.msra.mxu1 %v2449_v16  ;;  %2063 = vmatpush3.bf16.msra.mxu0 %v2449_v16  ;;  %v2548_v16 = vld [vmem:[%s2941_s27 + $0x160] ss:$16 sps:$4 sm:$0xff]  }
  0x9e   : > { %2160 = vmatprep.subr.bf16.mxu1 %v2453_v17  ;;  %v2531_v17 = vld [vmem:[%s2941_s27 + $0x108] ss:$16 sps:$4 sm:$0xff]  }
  0xa0   : > { %1033 = vmatmul.mubr.bf16.vlgmr.msra.gmra.mrb[0].mxu1 %v2450_v18  ;;  %937 = vmatmul.mubr.bf16.vlgmr.msra.gmra.mrb[0].mxu0 %v2478_v26  ;;  %v2534_v18 = vld [vmem:[%s2941_s27 + $0x12c] ss:$16 sps:$4 sm:$0xff]  }
  0xa1   : > { %2161 = vmatpush3.bf16.msra.mxu1 %v2454_v19  ;;  %1040 = vmatprep.mubr.bf16.mxu1 %v2457_v20  ;;  %v2562_v19 = vld [vmem:[#allocation6] sm:$0xff]   ;;  %v2537_v20 = vld [vmem:[%s2941_s27 + $0x128] ss:$16 sps:$4 sm:$0xff]  }
  0xa2   : > { %2162 = vmatprep.subr.bf16.mxu1 %v2455_v21  ;;  %944 = vmatprep.mubr.bf16.mxu0 %v2484_v30  ;;  %v2540_v21 = vld [vmem:[%s2941_s27 + $0x14c] ss:$16 sps:$4 sm:$0xff]  }
  0xa3   : > { %2296 = vmatprep.subr.bf16.mxu0 %v2562_v19  ;;  %v2565_v26 = vld [vmem:[#allocation6 + $0x18] sm:$0xff]   ;;  %v2567_v30 = vld [vmem:[#allocation6 + $0x28] sm:$0xff]  }
  0xa4   : > { %2297 = vmatpush3.bf16.msra.mxu0 %v2562_v19 }
  0xa5   : > { %2163 = vmatpush3.bf16.msra.mxu1 %v2456_v22  ;;  %v2563_v22 = vld [vmem:[#allocation6 + $0x8] sm:$0xff]  }
  0xa6   : > { %2164 = vmatprep.subr.bf16.mxu1 %v2460_v24  ;;  %2298 = vmatprep.subr.bf16.mxu0 %v2563_v22  ;;  %v2543_v24 = vld [vmem:[%s2941_s27 + $0x148] ss:$16 sps:$4 sm:$0xff]  }
  0xa8   : > { %1041 = vmatmul.mubr.bf16.gmra.mrb[4].mxu1 %v2459_v23  ;;  %945 = vmatmul.mubr.bf16.gmra.mrb[4].mxu0 %v2488_v34  ;;  %v2564_v23 = vld [vmem:[#allocation6 + $0x10] sm:$0xff]   ;;  %v2569_v34 = vld [vmem:[#allocation6 + $0x38] sm:$0xff]  }
  0xa9   : > { %2165 = vmatpush3.bf16.msra.mxu1 %v2461_v25  ;;  %1048 = vmatprep.mubr.bf16.mxu1 %v2464_v29  ;;  %v2546_v25 = vld [vmem:[%s2941_s27 + $0x16c] ss:$16 sps:$4 sm:$0xff]  }
  0xaa   : > { %2166 = vmatprep.subr.bf16.mxu1 %v2462_v28  ;;  %952 = vmatprep.mubr.bf16.mxu0 %v2490_v35  ;;  %v2549_v28 = vld [vmem:[%s2941_s27 + $0x168] ss:$16 sps:$4 sm:$0xff]   ;;  %v2550_v29 = vld [vmem:[%s2941_s27 + $0x18c] ss:$16 sps:$4 sm:$0xff]  }
  0xab   : > { %2299 = vmatpush3.bf16.msra.mxu0 %v2563_v22  ;;  %v2555_v35 = vld [vmem:[%s2941_s27 + $0x1a8] ss:$16 sps:$4 sm:$0xff]  }
  0xac   : > { %2300 = vmatprep.subr.bf16.mxu0 %v2564_v23 }
  0xad   : > { %2167 = vmatpush3.bf16.msra.mxu1 %v2463_v31  ;;  %v2568_v31 = vld [vmem:[#allocation6 + $0x30] sm:$0xff]  }
  0xae   : > { %2168 = vmatprep.subr.bf16.mxu1 %v2467_v33  ;;  %v2553_v33 = vld [vmem:[%s2941_s27 + $0x1ac] ss:$16 sps:$4 sm:$0xff]  }
  0xaf   : > { %2301 = vmatpush3.bf16.msra.mxu0 %v2564_v23 }
  0xb0   : > { %1049 = vmatmul.mubr.bf16.gmra.mrb[8].mxu1 %v2466_v32  ;;  %953 = vmatmul.mubr.bf16.gmra.mrb[8].mxu0 %v2494_v42  ;;  %v2552_v32 = vld [vmem:[%s2941_s27 + $0x188] ss:$16 sps:$4 sm:$0xff]  }
  0xb1   : > { %2169 = vmatpush3.bf16.msra.mxu1 %v2468_v36  ;;  %1056 = vmatprep.mubr.bf16.mxu1 %v2471_v37  ;;  %v2556_v36 = vld [vmem:[%s2941_s27 + $0x1cc] ss:$16 sps:$4 sm:$0xff]   ;;  %v2558_v37 = vld [vmem:[%s2941_s27 + $0x1c8] ss:$16 sps:$4 sm:$0xff]  }
  0xb2   : > { %2170 = vmatprep.subr.bf16.mxu1 %v2469_v38  ;;  %960 = vmatprep.mubr.bf16.mxu0 %v2496_v43  ;;  %v2559_v38 = vld [vmem:[%s2941_s27 + $0x1ec] ss:$16 sps:$4 sm:$0xff]  }
  0xb3   : > { %2302 = vmatprep.subr.bf16.mxu0 %v2565_v26 }
  0xb4   : > { %2303 = vmatpush3.bf16.msra.mxu0 %v2565_v26 }
  0xb5   : > { %2171 = vmatpush3.bf16.msra.mxu1 %v2470_v39  ;;  %2304 = vmatprep.subr.bf16.mxu0 %v2566_v27  ;;  %v2561_v39 = vld [vmem:[%s2941_s27 + $0x1e8] ss:$16 sps:$4 sm:$0xff]  }
  0xb6   : > { %2172 = vmatprep.subr.bf16.mxu1 %v2474_v41 }
  0xb8   : > { %1057 = vmatmul.mubr.bf16.gmra.mrb[12].mxu1 %v2473_v40  ;;  %961 = vmatmul.mubr.bf16.gmra.mrb[12].mxu0 %v2500_v49 }
  0xb9   : > { %2173 = vmatpush3.bf16.msra.mxu1 %v2475_v44  ;;  %1097 = vmatprep.mubr.bf16.mxu1 %v2483_v45 }
  0xba   : > { %2174 = vmatprep.subr.bf16.mxu1 %v2476_v46  ;;  %968 = vmatprep.mubr.bf16.mxu0 %v2502_v50 }
  0xbb   : > { %2305 = vmatpush3.bf16.msra.mxu0 %v2566_v27 }
  0xbc   : > { %2306 = vmatprep.subr.bf16.mxu0 %v2567_v30 }
  0xbd   : > { %2175 = vmatpush3.bf16.msra.mxu1 %v2477_v47 }
  0xbf   : > { %2307 = vmatpush3.bf16.msra.mxu0 %v2567_v30 }
  0xc0   : > { %1098 = vmatmul.mubr.bf16.vlgmr.msra.gmra.mrb[16].mxu1 %v2481_v48  ;;  %969 = vmatmul.mubr.bf16.gmra.mrb[16].mxu0 %v2506_v52 }
  0xc1   : > { %1105 = vmatprep.mubr.bf16.mxu1 %v2486_v51  ;;  %976 = vmatprep.mubr.bf16.mxu0 %v2508_v54 }
  0xc2   : > { %2308 = vmatprep.subr.bf16.mxu0 %v2568_v31 }
  0xc3   : > { %2309 = vmatpush3.bf16.msra.mxu0 %v2568_v31 }
  0xc4   : > { %2310 = vmatprep.subr.bf16.mxu0 %v2569_v34 }
  0xc7   : > { %2311 = vmatpush3.bf16.msra.mxu0 %v2569_v34 }
  0xc8   : > { %1106 = vmatmul.mubr.bf16.gmra.mrb[20].mxu1 %v2489_v53  ;;  %977 = vmatmul.mubr.bf16.gmra.mrb[20].mxu0 %v2512_v56 }
  0xc9   : > { %1113 = vmatprep.mubr.bf16.mxu1 %v2492_v55  ;;  %984 = vmatprep.mubr.bf16.mxu0 %v2514_v58 }
  0xd0   : > { %1114 = vmatmul.mubr.bf16.gmra.mrb[24].mxu1 %v2495_v57  ;;  %985 = vmatmul.mubr.bf16.gmra.mrb[24].mxu0 %v2518_v60 }
  0xd1   : > { %1121 = vmatprep.mubr.bf16.mxu1 %v2498_v59  ;;  %992 = vmatprep.mubr.bf16.mxu0 %v2520_v62 }
  0xd8   : > { %1122 = vmatmul.mubr.bf16.gmra.mrb[28].mxu1 %v2501_v61  ;;  %993 = vmatmul.mubr.bf16.gmra.mrb[28].mxu0 %v2524_v0 }
  0xd9   : > { %1129 = vmatprep.mubr.bf16.mxu1 %v2504_v63  ;;  %1000 = vmatprep.mubr.bf16.mxu0 %v2526_v2 }
  0xe0   : > { %1130 = vmatmul.mubr.bf16.gmra.mrb[32].mxu1 %v2507_v1  ;;  %1001 = vmatmul.mubr.bf16.gmra.mrb[32].mxu0 %v2530_v4 }
  0xe1   : > { %1137 = vmatprep.mubr.bf16.mxu1 %v2510_v3  ;;  %1008 = vmatprep.mubr.bf16.mxu0 %v2532_v6 }
  0xe8   : > { %1138 = vmatmul.mubr.bf16.gmra.mrb[36].mxu1 %v2513_v5  ;;  %1009 = vmatmul.mubr.bf16.gmra.mrb[36].mxu0 %v2536_v8 }
  0xe9   : > { %1145 = vmatprep.mubr.bf16.mxu1 %v2516_v7  ;;  %1016 = vmatprep.mubr.bf16.mxu0 %v2538_v10 }
  0xf0   : > { %1146 = vmatmul.mubr.bf16.gmra.mrb[40].mxu1 %v2519_v9  ;;  %1017 = vmatmul.mubr.bf16.gmra.mrb[40].mxu0 %v2542_v12 }
  0xf1   : > { %1153 = vmatprep.mubr.bf16.mxu1 %v2522_v11  ;;  %1024 = vmatprep.mubr.bf16.mxu0 %v2544_v14 }
  0xf8   : > { %1154 = vmatmul.mubr.bf16.gmra.mrb[44].mxu1 %v2525_v13  ;;  %1025 = vmatmul.mubr.bf16.gmra.mrb[44].mxu0 %v2548_v16 }
  0xf9   : > { %1161 = vmatprep.mubr.bf16.mxu1 %v2528_v15 }
 0x100   : > { %1162 = vmatmul.mubr.bf16.gmra.mrb[48].mxu1 %v2531_v17 }
 0x101   : > { %1169 = vmatprep.mubr.bf16.mxu1 %v2534_v18 }
 0x108   : > { %1170 = vmatmul.mubr.bf16.gmra.mrb[52].mxu1 %v2537_v20 }
 0x109   : > { %1177 = vmatprep.mubr.bf16.mxu1 %v2540_v21 }
 0x110   : > { %1178 = vmatmul.mubr.bf16.gmra.mrb[56].mxu1 %v2543_v24 }
 0x111   : > { %1185 = vmatprep.mubr.bf16.mxu1 %v2546_v25 }
 0x118   : > { %1186 = vmatmul.mubr.bf16.gmra.mrb[60].mxu1 %v2549_v28 }
 0x119   : > { %1193 = vmatprep.mubr.bf16.mxu1 %v2550_v29 }
 0x120   : > { %1194 = vmatmul.mubr.bf16.gmra.mrb[64].mxu1 %v2552_v32 }
 0x121   : > { %1201 = vmatprep.mubr.bf16.mxu1 %v2553_v33 }
 0x128   : > { %1202 = vmatmul.mubr.bf16.gmra.mrb[68].mxu1 %v2555_v35 }
 0x129   : > { %1209 = vmatprep.mubr.bf16.mxu1 %v2556_v36 }
 0x130   : > { %1210 = vmatmul.mubr.bf16.gmra.mrb[72].mxu1 %v2558_v37 }
 0x131   : > { %1217 = vmatprep.mubr.bf16.mxu1 %v2559_v38 }
 0x138   : > { %1218 = vmatmul.mubr.bf16.gmra.mrb[76].mxu1 %v2561_v39 }
 0x173   : > { %v2136_v40 = vpop.f32.mrb[0].mxu1  ;;  %v2064_v46 = vpop.f32.mrb[0].mxu0 }
 0x174   : > { %v2137_v41 = vpop.f32.mrb[1].mxu1  ;;  %v2065_v48 = vpop.f32.mrb[1].mxu0 }
 0x175   : > { %v3019_v42 = vadd.f32 %v2137_v41, %v2136_v40  ;;  %v2139_v43 = vpop.f32.mrb[2].mxu1  ;;  %v2066_v50 = vadd.f32 %v2065_v48, %v2064_v46  ;;  %v2067_v51 = vpop.f32.mrb[2].mxu0 }
 0x176   : > { %v2140_v44 = vpop.f32.mrb[3].mxu1  ;;  %v2068_v54 = vpop.f32.mrb[3].mxu0 }
 0x177   : > { %v3021_v45 = vadd.f32 %v2140_v44, %v2139_v43  ;;  %v2069_v56 = vadd.f32 %v2068_v54, %v2067_v51 }
 0x17b   : > { %v2142_v47 = vpop.f32.mrb[4].mxu1  ;;  %v2070_v58 = vpop.f32.mrb[4].mxu0 }
 0x17c   : > { %v2143_v49 = vpop.f32.mrb[5].mxu1  ;;  %v2071_v60 = vpop.f32.mrb[5].mxu0 }
 0x17d   : > { %v3023_v52 = vadd.f32 %v2143_v49, %v2142_v47  ;;  %v2145_v53 = vpop.f32.mrb[6].mxu1  ;;  %v2072_v62 = vadd.f32 %v2071_v60, %v2070_v58  ;;  %v2073_v63 = vpop.f32.mrb[6].mxu0 }
 0x17e   : > { %v2146_v55 = vpop.f32.mrb[7].mxu1  ;;  %v2074_v2 = vpop.f32.mrb[7].mxu0 }
 0x17f   : > { %v3025_v57 = vadd.f32 %v2146_v55, %v2145_v53  ;;  %v2075_v4 = vadd.f32 %v2074_v2, %v2073_v63 }
 0x183   : > { %v2148_v59 = vpop.f32.mrb[8].mxu1  ;;  %v2076_v6 = vpop.f32.mrb[8].mxu0 }
 0x184   : > { %v2149_v61 = vpop.f32.mrb[9].mxu1  ;;  %v2077_v8 = vpop.f32.mrb[9].mxu0 }
 0x185   : > { %v3027_v0 = vadd.f32 %v2149_v61, %v2148_v59  ;;  %v2151_v1 = vpop.f32.mrb[10].mxu1  ;;  %v2078_v10 = vadd.f32 %v2077_v8, %v2076_v6  ;;  %v2079_v11 = vpop.f32.mrb[10].mxu0 }
 0x186   : > { %v2152_v3 = vpop.f32.mrb[11].mxu1  ;;  %v2080_v14 = vpop.f32.mrb[11].mxu0 }
 0x187   : > { %v3029_v5 = vadd.f32 %v2152_v3, %v2151_v1  ;;  %v2081_v16 = vadd.f32 %v2080_v14, %v2079_v11 }
 0x18b   : > { %v2154_v7 = vpop.f32.mrb[12].mxu1  ;;  %v2082_v18 = vpop.f32.mrb[12].mxu0 }
 0x18c   : > { %v2155_v9 = vpop.f32.mrb[13].mxu1  ;;  %v2083_v20 = vpop.f32.mrb[13].mxu0 }
 0x18d   : > { %v3031_v12 = vadd.f32 %v2155_v9, %v2154_v7  ;;  %v2157_v13 = vpop.f32.mrb[14].mxu1  ;;  %v2084_v22 = vadd.f32 %v2083_v20, %v2082_v18  ;;  %v2085_v23 = vpop.f32.mrb[14].mxu0 }
 0x18e   : > { %v2158_v15 = vpop.f32.mrb[15].mxu1  ;;  %v2086_v26 = vpop.f32.mrb[15].mxu0 }
 0x18f   : > { %v3033_v17 = vadd.f32 %v2158_v15, %v2157_v13  ;;  %v2087_v28 = vadd.f32 %v2086_v26, %v2085_v23 }
 0x193   : > { %v2176_v19 = vpop.f32.mrb[16].mxu1  ;;  %v2088_v32 = vpop.f32.mrb[16].mxu0 }
 0x194   : > { %v2177_v21 = vpop.f32.mrb[17].mxu1  ;;  %v2089_v35 = vpop.f32.mrb[17].mxu0 }
 0x195   : > { %v2178_v24 = vadd.f32 %v2177_v21, %v2176_v19  ;;  %v2179_v25 = vpop.f32.mrb[18].mxu1  ;;  %v2090_v37 = vadd.f32 %v2089_v35, %v2088_v32  ;;  %v2091_v38 = vpop.f32.mrb[18].mxu0 }
 0x196   : > { %v2180_v27 = vpop.f32.mrb[19].mxu1  ;;  %v2092_v41 = vpop.f32.mrb[19].mxu0 }
 0x197   : > { %v1100_v29 = vadd.f32 %v2178_v24, %v2066_v50  ;;  %v2181_v30 = vadd.f32 %v2180_v27, %v2179_v25  ;;  %v2093_v44 = vadd.f32 %v2092_v41, %v2091_v38 }
 0x199   : > { %v1103_v31 = vadd.f32 %v2181_v30, %v2069_v56 }
 0x19b   : > { %v2182_v33 = vpop.f32.mrb[20].mxu1  ;;  %v1226_v34 = vpack.c.bf16 %v1103_v31, %v1100_v29  ;;  %v2094_v49 = vpop.f32.mrb[20].mxu0 }
 0x19c   : > { %v2183_v36 = vpop.f32.mrb[21].mxu1  ;;  %v2095_v53 = vpop.f32.mrb[21].mxu0 }
 0x19d   : > { %v2184_v39 = vadd.f32 %v2183_v36, %v2182_v33  ;;  %v2185_v40 = vpop.f32.mrb[22].mxu1  ;;  %2312 = vmatprep.mubr.bf16.mxu0 %v1226_v34  ;;  %v2096_v55 = vadd.f32 %v2095_v53, %v2094_v49  ;;  %v2097_v56 = vpop.f32.mrb[22].mxu0 }
 0x19e   : > { %v2186_v43 = vpop.f32.mrb[23].mxu1  ;;  %v2098_v60 = vpop.f32.mrb[23].mxu0 }
 0x19f   : > { %v1108_v46 = vadd.f32 %v2184_v39, %v2072_v62  ;;  %v2187_v47 = vadd.f32 %v2186_v43, %v2185_v40  ;;  %v2099_v63 = vadd.f32 %v2098_v60, %v2097_v56 }
 0x1a1   : > { %v1111_v48 = vadd.f32 %v2187_v47, %v2075_v4 }
 0x1a3   : > { %v1227_v50 = vpack.c.bf16 %v1111_v48, %v1108_v46  ;;  %v2188_v51 = vpop.f32.mrb[24].mxu1  ;;  %v2100_v6 = vpop.f32.mrb[24].mxu0 }
 0x1a4   : > { %v2189_v54 = vpop.f32.mrb[25].mxu1  ;;  %v2101_v4 = vpop.f32.mrb[25].mxu0 }
 0x1a5   : > { %v2190_v58 = vadd.f32 %v2189_v54, %v2188_v51  ;;  %v2191_v59 = vpop.f32.mrb[26].mxu1  ;;  %2313 = vmatmul.mubr.bf16.vlgmr.msra.gmra.mrb[48].mxu0 %v1227_v50  ;;  %v2102_v9 = vadd.f32 %v2101_v4, %v2100_v6  ;;  %v2103_v11 = vpop.f32.mrb[26].mxu0 }
 0x1a6   : > { %v2192_v61 = vpop.f32.mrb[27].mxu1  ;;  %v2104_v15 = vpop.f32.mrb[27].mxu0 }
 0x1a7   : > { %v1116_v1 = vadd.f32 %v2190_v58, %v2078_v10  ;;  %v2193_v2 = vadd.f32 %v2192_v61, %v2191_v59  ;;  %v2105_v19 = vadd.f32 %v2104_v15, %v2103_v11 }
 0x1a9   : > { %v1119_v3 = vadd.f32 %v2193_v2, %v2081_v16 }
 0x1ab   : > { %v2194_v62 = vpop.f32.mrb[28].mxu1  ;;  %v1228_v7 = vpack.c.bf16 %v1119_v3, %v1116_v1  ;;  %v2106_v24 = vpop.f32.mrb[28].mxu0 }
 0x1ac   : > { %v2195_v8 = vpop.f32.mrb[29].mxu1  ;;  %v2107_v16 = vpop.f32.mrb[29].mxu0 }
 0x1ad   : > { %v2196_v13 = vadd.f32 %v2195_v8, %v2194_v62  ;;  %v2197_v14 = vpop.f32.mrb[30].mxu1  ;;  %2316 = vmatprep.mubr.bf16.mxu0 %v1228_v7  ;;  %v2108_v27 = vadd.f32 %v2107_v16, %v2106_v24  ;;  %v2109_v29 = vpop.f32.mrb[30].mxu0 }
 0x1ae   : > { %v2198_v18 = vpop.f32.mrb[31].mxu1  ;;  %v2110_v32 = vpop.f32.mrb[31].mxu0 }
 0x1af   : > { %v1124_v20 = vadd.f32 %v2196_v13, %v2084_v22  ;;  %v2199_v21 = vadd.f32 %v2198_v18, %v2197_v14  ;;  %v2111_v34 = vadd.f32 %v2110_v32, %v2109_v29 }
 0x1b1   : > { %v1127_v23 = vadd.f32 %v2199_v21, %v2087_v28 }
 0x1b3   : > { %v2200_v10 = vpop.f32.mrb[32].mxu1  ;;  %v1229_v25 = vpack.c.bf16 %v1127_v23, %v1124_v20  ;;  %v2112_v39 = vpop.f32.mrb[32].mxu0 }
 0x1b4   : > { %v2201_v26 = vpop.f32.mrb[33].mxu1  ;;  %v2113_v28 = vpop.f32.mrb[33].mxu0 }
 0x1b5   : > { %v2202_v30 = vadd.f32 %v2201_v26, %v2200_v10  ;;  %v2203_v31 = vpop.f32.mrb[34].mxu1  ;;  %2317 = vmatmul.mubr.bf16.gmra.mrb[52].mxu0 %v1229_v25  ;;  %v2114_v43 = vadd.f32 %v2113_v28, %v2112_v39  ;;  %v2115_v46 = vpop.f32.mrb[34].mxu0 }
 0x1b6   : > { %v2204_v33 = vpop.f32.mrb[35].mxu1  ;;  %v2116_v49 = vpop.f32.mrb[35].mxu0 }
 0x1b7   : > { %v1132_v35 = vadd.f32 %v2202_v30, %v2090_v37  ;;  %v2205_v36 = vadd.f32 %v2204_v33, %v2203_v31  ;;  %v2117_v51 = vadd.f32 %v2116_v49, %v2115_v46 }
 0x1b9   : > { %v1135_v38 = vadd.f32 %v2205_v36, %v2093_v44 }
 0x1bb   : > { %v2206_v22 = vpop.f32.mrb[36].mxu1  ;;  %v1230_v40 = vpack.c.bf16 %v1135_v38, %v1132_v35  ;;  %v2118_v58 = vpop.f32.mrb[36].mxu0 }
 0x1bc   : > { %v2207_v41 = vpop.f32.mrb[37].mxu1  ;;  %v2119_v44 = vpop.f32.mrb[37].mxu0 }
 0x1bd   : > { %v2208_v47 = vadd.f32 %v2207_v41, %v2206_v22  ;;  %v2209_v48 = vpop.f32.mrb[38].mxu1  ;;  %2320 = vmatprep.mubr.bf16.mxu0 %v1230_v40  ;;  %v2120_v61 = vadd.f32 %v2119_v44, %v2118_v58  ;;  %v2121_v1 = vpop.f32.mrb[38].mxu0 }
 0x1be   : > { %v2210_v50 = vpop.f32.mrb[39].mxu1  ;;  %v2122_v6 = vpop.f32.mrb[39].mxu0 }
 0x1bf   : > { %v1140_v53 = vadd.f32 %v2208_v47, %v2096_v55  ;;  %v2211_v54 = vadd.f32 %v2210_v50, %v2209_v48  ;;  %v2123_v7 = vadd.f32 %v2122_v6, %v2121_v1 }
 0x1c1   : > { %v1143_v56 = vadd.f32 %v2211_v54, %v2099_v63 }
 0x1c3   : > { %v2212_v37 = vpop.f32.mrb[40].mxu1  ;;  %v1231_v59 = vpack.c.bf16 %v1143_v56, %v1140_v53  ;;  %v2124_v13 = vpop.f32.mrb[40].mxu0 }
 0x1c4   : > { %v2213_v60 = vpop.f32.mrb[41].mxu1  ;;  %v2125_v63 = vpop.f32.mrb[41].mxu0 }
 0x1c5   : > { %v2214_v2 = vadd.f32 %v2213_v60, %v2212_v37  ;;  %v2215_v3 = vpop.f32.mrb[42].mxu1  ;;  %2321 = vmatmul.mubr.bf16.gmra.mrb[56].mxu0 %v1231_v59  ;;  %v2126_v18 = vadd.f32 %v2125_v63, %v2124_v13  ;;  %v2127_v20 = vpop.f32.mrb[42].mxu0 }
 0x1c6   : > { %v2216_v62 = vpop.f32.mrb[43].mxu1  ;;  %v2128_v24 = vpop.f32.mrb[43].mxu0 }
 0x1c7   : > { %v1148_v4 = vadd.f32 %v2214_v2, %v2102_v9  ;;  %v2217_v8 = vadd.f32 %v2216_v62, %v2215_v3  ;;  %v2129_v25 = vadd.f32 %v2128_v24, %v2127_v20 }
 0x1c9   : > { %v1151_v11 = vadd.f32 %v2217_v8, %v2105_v19 }
 0x1cb   : > { %v2218_v55 = vpop.f32.mrb[44].mxu1  ;;  %v1232_v14 = vpack.c.bf16 %v1151_v11, %v1148_v4  ;;  %v2130_v30 = vpop.f32.mrb[44].mxu0 }
 0x1cc   : > { %v2219_v15 = vpop.f32.mrb[45].mxu1  ;;  %v2131_v19 = vpop.f32.mrb[45].mxu0 }
 0x1cd   : > { %v2220_v21 = vadd.f32 %v2219_v15, %v2218_v55  ;;  %v2221_v23 = vpop.f32.mrb[46].mxu1  ;;  %2324 = vmatprep.mubr.bf16.mxu0 %v1232_v14  ;;  %v2132_v33 = vadd.f32 %v2131_v19, %v2130_v30  ;;  %v2133_v35 = vpop.f32.mrb[46].mxu0 }
 0x1ce   : > { %v2222_v10 = vpop.f32.mrb[47].mxu1  ;;  %v2134_v39 = vpop.f32.mrb[47].mxu0 }
 0x1cf   : > { %v1156_v16 = vadd.f32 %v2220_v21, %v2108_v27  ;;  %v2223_v26 = vadd.f32 %v2222_v10, %v2221_v23  ;;  %v2135_v40 = vadd.f32 %v2134_v39, %v2133_v35 }
 0x1d1   : > { %v1159_v29 = vadd.f32 %v2223_v26, %v2111_v34 }
 0x1d3   : > { %v2224_v9 = vpop.f32.mrb[48].mxu1  ;;  %v1233_v31 = vpack.c.bf16 %v1159_v29, %v1156_v16 }
 0x1d4   : > { %v2225_v32 = vpop.f32.mrb[49].mxu1 }
 0x1d5   : > { %v2226_v36 = vadd.f32 %v2225_v32, %v2224_v9  ;;  %v2227_v38 = vpop.f32.mrb[50].mxu1  ;;  %2325 = vmatmul.mubr.bf16.gmra.mrb[60].mxu0 %v1233_v31 }
 0x1d6   : > { %v2228_v22 = vpop.f32.mrb[51].mxu1 }
 0x1d7   : > { %v1164_v28 = vadd.f32 %v2226_v36, %v2114_v43  ;;  %v2229_v41 = vadd.f32 %v2228_v22, %v2227_v38 }
 0x1d9   : > { %v1167_v46 = vadd.f32 %v2229_v41, %v2117_v51 }
 0x1db   : > { %v2230_v47 = vpop.f32.mrb[52].mxu1  ;;  %v1234_v27 = vpack.c.bf16 %v1167_v46, %v1164_v28 }
 0x1dc   : > { %v2231_v48 = vpop.f32.mrb[53].mxu1 }
 0x1dd   : > { %v2232_v34 = vadd.f32 %v2231_v48, %v2230_v47  ;;  %v2233_v49 = vpop.f32.mrb[54].mxu1  ;;  %2328 = vmatprep.mubr.bf16.mxu0 %v1234_v27 }
 0x1de   : > { %v2234_v50 = vpop.f32.mrb[55].mxu1 }
 0x1df   : > { %v1172_v53 = vadd.f32 %v2232_v34, %v2120_v61  ;;  %v2235_v54 = vadd.f32 %v2234_v50, %v2233_v49 }
 0x1e1   : > { %v1175_v56 = vadd.f32 %v2235_v54, %v2123_v7 }
 0x1e3   : > { %v2236_v58 = vpop.f32.mrb[56].mxu1  ;;  %v1235_v37 = vpack.c.bf16 %v1175_v56, %v1172_v53 }
 0x1e4   : > { %v2237_v59 = vpop.f32.mrb[57].mxu1 }
 0x1e5   : > { %v2238_v44 = vadd.f32 %v2237_v59, %v2236_v58  ;;  %v2239_v60 = vpop.f32.mrb[58].mxu1  ;;  %2329 = vmatmul.mubr.bf16.gmra.mrb[64].mxu0 %v1235_v37 }
 0x1e6   : > { %v2240_v1 = vpop.f32.mrb[59].mxu1 }
 0x1e7   : > { %v1180_v43 = vadd.f32 %v2238_v44, %v2126_v18  ;;  %v2241_v2 = vadd.f32 %v2240_v1, %v2239_v60 }
 0x1e9   : > { %v1183_v51 = vadd.f32 %v2241_v2, %v2129_v25 }
 0x1eb   : > { %v2242_v3 = vpop.f32.mrb[60].mxu1  ;;  %v1236_v6 = vpack.c.bf16 %v1183_v51, %v1180_v43 }
 0x1ec   : > { %v2243_v62 = vpop.f32.mrb[61].mxu1 }
 0x1ed   : > { %v2244_v4 = vadd.f32 %v2243_v62, %v2242_v3  ;;  %v2245_v8 = vpop.f32.mrb[62].mxu1  ;;  %2332 = vmatprep.mubr.bf16.mxu0 %v1236_v6 }
 0x1ee   : > { %v2246_v11 = vpop.f32.mrb[63].mxu1 }
 0x1ef   : > { %v1188_v61 = vadd.f32 %v2244_v4, %v2132_v33  ;;  %v2247_v13 = vadd.f32 %v2246_v11, %v2245_v8 }
 0x1f1   : > { %v1191_v7 = vadd.f32 %v2247_v13, %v2135_v40 }
 0x1f3   : > { %v2248_v55 = vpop.f32.mrb[64].mxu1  ;;  %v1237_v14 = vpack.c.bf16 %v1191_v7, %v1188_v61 }
 0x1f4   : > { %v2249_v63 = vpop.f32.mrb[65].mxu1 }
 0x1f5   : > { %v2250_v15 = vadd.f32 %v2249_v63, %v2248_v55  ;;  %v2251_v20 = vpop.f32.mrb[66].mxu1  ;;  %2333 = vmatmul.mubr.bf16.gmra.mrb[68].mxu0 %v1237_v14 }
 0x1f6   : > { %v2252_v21 = vpop.f32.mrb[67].mxu1 }
 0x1f7   : > { %v1196_v18 = vadd.f32 %v2250_v15, %v3019_v42  ;;  %v2253_v23 = vadd.f32 %v2252_v21, %v2251_v20 }
 0x1f9   : > { %v1199_v24 = vadd.f32 %v2253_v23, %v3021_v45 }
 0x1fb   : > { %v2254_v10 = vpop.f32.mrb[68].mxu1  ;;  %v1238_v25 = vpack.c.bf16 %v1199_v24, %v1196_v18 }
 0x1fc   : > { %v2255_v16 = vpop.f32.mrb[69].mxu1 }
 0x1fd   : > { %v2256_v26 = vadd.f32 %v2255_v16, %v2254_v10  ;;  %v2257_v29 = vpop.f32.mrb[70].mxu1  ;;  %2336 = vmatprep.mubr.bf16.mxu0 %v1238_v25 }
 0x1fe   : > { %v2258_v30 = vpop.f32.mrb[71].mxu1 }
 0x1ff   : > { %v1204_v9 = vadd.f32 %v2256_v26, %v3023_v52  ;;  %v2259_v31 = vadd.f32 %v2258_v30, %v2257_v29 }
 0x201   : > { %v1207_v19 = vadd.f32 %v2259_v31, %v3025_v57 }
 0x203   : > { %v2260_v32 = vpop.f32.mrb[72].mxu1  ;;  %v1239_v33 = vpack.c.bf16 %v1207_v19, %v1204_v9 }
 0x204   : > { %v2261_v35 = vpop.f32.mrb[73].mxu1 }
 0x205   : > { %v2262_v36 = vadd.f32 %v2261_v35, %v2260_v32  ;;  %v2263_v42 = vpop.f32.mrb[74].mxu1  ;;  %2337 = vmatmul.mubr.bf16.gmra.mrb[72].mxu0 %v1239_v33 }
 0x206   : > { %v2264_v38 = vpop.f32.mrb[75].mxu1 }
 0x207   : > { %v1212_v45 = vadd.f32 %v2262_v36, %v3027_v0  ;;  %v2265_v39 = vadd.f32 %v2264_v38, %v2263_v42  ;;  %v3045_v0 = vld [vmem:[#allocation7] ss:$0 sm:$0xff] }
 0x209   : > { %v1215_v22 = vadd.f32 %v2265_v39, %v3029_v5 }
 0x20b   : > { %v2266_v40 = vpop.f32.mrb[76].mxu1  ;;  %v1240_v28 = vpack.c.bf16 %v1215_v22, %v1212_v45 }
 0x20c   : > { %v2267_v41 = vpop.f32.mrb[77].mxu1 }
 0x20d   : > { %v2268_v52 = vadd.f32 %v2267_v41, %v2266_v40  ;;  %v2269_v46 = vpop.f32.mrb[78].mxu1  ;;  %2340 = vmatprep.mubr.bf16.mxu0 %v1240_v28 }
 0x20e   : > { %v2270_v57 = vpop.f32.mrb[79].mxu1 }
 0x20f   : > { %v1220_v47 = vadd.f32 %v2268_v52, %v3031_v12  ;;  %v2271_v27 = vadd.f32 %v2270_v57, %v2269_v46 }
 0x211   : > { %v1223_v48 = vadd.f32 %v2271_v27, %v3033_v17 }
 0x213   : > { %v1241_v34 = vpack.c.bf16 %v1223_v48, %v1220_v47 }
 0x215   : > { %2341 = vmatmul.mubr.bf16.gmra.mrb[76].mxu0 %v1241_v34 }
 0x278   : > { %v2314_v5 = vpop.f32.mrb[48].mxu0 }
 0x279   : > { %v1356_v49 = vadd.f32 %v2314_v5, %v3045_v0  ;;  %v1347_v50 = vpop.f32.mrb[49].mxu0 }
 0x27a   : > { %v1348_v53 = vadd.f32 %v3045_v0, %v1347_v50  ;;  %v2315_v54 = vpop.f32.mrb[50].mxu0 }
 0x27b   : > { %v1359_v12 = vadd.f32 %v2315_v54, %v3045_v0  ;;  %v1350_v56 = vpop.f32.mrb[51].mxu0  ;;  %v1476_v58 = vmax.f32 %v1356_v49, 0.0 }
 0x27c   : > { %v1351_v17 = vadd.f32 %v3045_v0, %v1350_v56  ;;  %v1474_v59 = vmax.f32 %v1348_v53, 0.0 }
 0x27d   : > { %v1477_v37 = vmax.f32 %v1359_v12, 0.0 }
 0x27e   : > { %v1475_v44 = vmax.f32 %v1351_v17, 0.0 }
 0x27f   : > { %v1961_v60 = vpack.c.bf16 %v1477_v37, %v1476_v58 }
 0x280   : > { %v1956_v1 = vpack.c.bf16 %v1475_v44, %v1474_v59 }
 0x281   : > { %2033 = vst [vmem:[%s3054_s22 + $0x8] sm:$0xff] %v1961_v60  }
 0x282   : > { %1957 = vst [vmem:[%s3054_s22] sm:$0xff] %v1956_v1  }
 0x288   : > { %v2318_v43 = vpop.f32.mrb[52].mxu0 }
 0x289   : > { %v1372_v2 = vadd.f32 %v2318_v43, %v3045_v0  ;;  %v1363_v51 = vpop.f32.mrb[53].mxu0 }
 0x28a   : > { %v1364_v3 = vadd.f32 %v3045_v0, %v1363_v51  ;;  %v2319_v6 = vpop.f32.mrb[54].mxu0 }
 0x28b   : > { %v1375_v62 = vadd.f32 %v2319_v6, %v3045_v0  ;;  %v1366_v4 = vpop.f32.mrb[55].mxu0  ;;  %v1480_v11 = vmax.f32 %v1372_v2, 0.0 }
 0x28c   : > { %v1367_v8 = vadd.f32 %v3045_v0, %v1366_v4  ;;  %v1478_v13 = vmax.f32 %v1364_v3, 0.0 }
 0x28d   : > { %v1481_v61 = vmax.f32 %v1375_v62, 0.0 }
 0x28e   : > { %v1479_v7 = vmax.f32 %v1367_v8, 0.0 }
 0x28f   : > { %v1971_v55 = vpack.c.bf16 %v1481_v61, %v1480_v11 }
 0x290   : > { %v1966_v14 = vpack.c.bf16 %v1479_v7, %v1478_v13 }
 0x291   : > { %2035 = vst [vmem:[%s3054_s22 + $0x18] sm:$0xff] %v1971_v55  }
 0x292   : > { %2034 = vst [vmem:[%s3054_s22 + $0x10] sm:$0xff] %v1966_v14  }
 0x298   : > { %v2322_v63 = vpop.f32.mrb[56].mxu0 }
 0x299   : > { %v1388_v15 = vadd.f32 %v2322_v63, %v3045_v0  ;;  %v1379_v20 = vpop.f32.mrb[57].mxu0 }
 0x29a   : > { %v1380_v21 = vadd.f32 %v3045_v0, %v1379_v20  ;;  %v2323_v18 = vpop.f32.mrb[58].mxu0 }
 0x29b   : > { %v1391_v23 = vadd.f32 %v2323_v18, %v3045_v0  ;;  %v1382_v24 = vpop.f32.mrb[59].mxu0  ;;  %v1484_v25 = vmax.f32 %v1388_v15, 0.0 }
 0x29c   : > { %v1383_v10 = vadd.f32 %v3045_v0, %v1382_v24  ;;  %v1482_v26 = vmax.f32 %v1380_v21, 0.0 }
 0x29d   : > { %v1485_v16 = vmax.f32 %v1391_v23, 0.0 }
 0x29e   : > { %v1483_v29 = vmax.f32 %v1383_v10, 0.0 }
 0x29f   : > { %v1981_v30 = vpack.c.bf16 %v1485_v16, %v1484_v25 }
 0x2a0   : > { %v1976_v9 = vpack.c.bf16 %v1483_v29, %v1482_v26 }
 0x2a1   : > { %2037 = vst [vmem:[%s3054_s22 + $0x28] sm:$0xff] %v1981_v30  }
 0x2a2   : > { %2036 = vst [vmem:[%s3054_s22 + $0x20] sm:$0xff] %v1976_v9  }
 0x2a8   : > { %v2326_v31 = vpop.f32.mrb[60].mxu0 }
 0x2a9   : > { %v1404_v19 = vadd.f32 %v2326_v31, %v3045_v0  ;;  %v1395_v32 = vpop.f32.mrb[61].mxu0 }
 0x2aa   : > { %v1396_v33 = vadd.f32 %v3045_v0, %v1395_v32  ;;  %v2327_v35 = vpop.f32.mrb[62].mxu0 }
 0x2ab   : > { %v1407_v36 = vadd.f32 %v2327_v35, %v3045_v0  ;;  %v1398_v42 = vpop.f32.mrb[63].mxu0  ;;  %v1488_v45 = vmax.f32 %v1404_v19, 0.0 }
 0x2ac   : > { %v1399_v38 = vadd.f32 %v3045_v0, %v1398_v42  ;;  %v1486_v22 = vmax.f32 %v1396_v33, 0.0 }
 0x2ad   : > { %v1489_v39 = vmax.f32 %v1407_v36, 0.0 }
 0x2ae   : > { %v1487_v40 = vmax.f32 %v1399_v38, 0.0 }
 0x2af   : > { %v1991_v28 = vpack.c.bf16 %v1489_v39, %v1488_v45 }
 0x2b0   : > { %v1986_v41 = vpack.c.bf16 %v1487_v40, %v1486_v22 }
 0x2b1   : > { %2039 = vst [vmem:[%s3054_s22 + $0x38] sm:$0xff] %v1991_v28  }
 0x2b2   : > { %2038 = vst [vmem:[%s3054_s22 + $0x30] sm:$0xff] %v1986_v41  }
 0x2b8   : > { %v2330_v52 = vpop.f32.mrb[64].mxu0 }
 0x2b9   : > { %v1420_v46 = vadd.f32 %v2330_v52, %v3045_v0  ;;  %v1411_v57 = vpop.f32.mrb[65].mxu0 }
 0x2ba   : > { %v1412_v47 = vadd.f32 %v3045_v0, %v1411_v57  ;;  %v2331_v27 = vpop.f32.mrb[66].mxu0 }
 0x2bb   : > { %v1423_v48 = vadd.f32 %v2331_v27, %v3045_v0  ;;  %v1414_v34 = vpop.f32.mrb[67].mxu0  ;;  %v1492_v49 = vmax.f32 %v1420_v46, 0.0 }
 0x2bc   : > { %v1415_v5 = vadd.f32 %v3045_v0, %v1414_v34  ;;  %v1490_v53 = vmax.f32 %v1412_v47, 0.0 }
 0x2bd   : > { %v1493_v50 = vmax.f32 %v1423_v48, 0.0 }
 0x2be   : > { %v1491_v54 = vmax.f32 %v1415_v5, 0.0 }
 0x2bf   : > { %v2001_v12 = vpack.c.bf16 %v1493_v50, %v1492_v49 }
 0x2c0   : > { %v1996_v56 = vpack.c.bf16 %v1491_v54, %v1490_v53 }
 0x2c1   : > { %2041 = vst [vmem:[%s3054_s22 + $0x48] sm:$0xff] %v2001_v12  }
 0x2c2   : > { %2040 = vst [vmem:[%s3054_s22 + $0x40] sm:$0xff] %v1996_v56  }
 0x2c8   : > { %v2334_v17 = vpop.f32.mrb[68].mxu0 }
 0x2c9   : > { %v1436_v58 = vadd.f32 %v2334_v17, %v3045_v0  ;;  %v1427_v37 = vpop.f32.mrb[69].mxu0 }
 0x2ca   : > { %v1428_v59 = vadd.f32 %v3045_v0, %v1427_v37  ;;  %v2335_v44 = vpop.f32.mrb[70].mxu0 }
 0x2cb   : > { %v1439_v60 = vadd.f32 %v2335_v44, %v3045_v0  ;;  %v1430_v1 = vpop.f32.mrb[71].mxu0  ;;  %v1496_v2 = vmax.f32 %v1436_v58, 0.0 }
 0x2cc   : > { %v1431_v43 = vadd.f32 %v3045_v0, %v1430_v1  ;;  %v1494_v3 = vmax.f32 %v1428_v59, 0.0 }
 0x2cd   : > { %v1497_v51 = vmax.f32 %v1439_v60, 0.0 }
 0x2ce   : > { %v1495_v6 = vmax.f32 %v1431_v43, 0.0 }
 0x2cf   : > { %v2011_v62 = vpack.c.bf16 %v1497_v51, %v1496_v2 }
 0x2d0   : > { %v2006_v4 = vpack.c.bf16 %v1495_v6, %v1494_v3 }
 0x2d1   : > { %2043 = vst [vmem:[%s3054_s22 + $0x58] sm:$0xff] %v2011_v62  }
 0x2d2   : > { %2042 = vst [vmem:[%s3054_s22 + $0x50] sm:$0xff] %v2006_v4  }
 0x2d8   : > { %v2338_v8 = vpop.f32.mrb[72].mxu0 }
 0x2d9   : > { %v1452_v11 = vadd.f32 %v2338_v8, %v3045_v0  ;;  %v1443_v61 = vpop.f32.mrb[73].mxu0 }
 0x2da   : > { %v1444_v13 = vadd.f32 %v3045_v0, %v1443_v61  ;;  %v2339_v7 = vpop.f32.mrb[74].mxu0 }
 0x2db   : > { %v1455_v55 = vadd.f32 %v2339_v7, %v3045_v0  ;;  %v1446_v14 = vpop.f32.mrb[75].mxu0  ;;  %v1500_v15 = vmax.f32 %v1452_v11, 0.0 }
 0x2dc   : > { %v1447_v63 = vadd.f32 %v3045_v0, %v1446_v14  ;;  %v1498_v21 = vmax.f32 %v1444_v13, 0.0 }
 0x2dd   : > { %v1501_v20 = vmax.f32 %v1455_v55, 0.0 }
 0x2de   : > { %v1499_v18 = vmax.f32 %v1447_v63, 0.0 }
 0x2df   : > { %v2021_v23 = vpack.c.bf16 %v1501_v20, %v1500_v15 }
 0x2e0   : > { %v2016_v24 = vpack.c.bf16 %v1499_v18, %v1498_v21 }
 0x2e1   : > { %2045 = vst [vmem:[%s3054_s22 + $0x68] sm:$0xff] %v2021_v23  }
 0x2e2   : > { %2044 = vst [vmem:[%s3054_s22 + $0x60] sm:$0xff] %v2016_v24  }
 0x2e8   : > { %v2342_v10 = vpop.f32.mrb[76].mxu0 }
 0x2e9   : > { %v1468_v25 = vadd.f32 %v2342_v10, %v3045_v0  ;;  %v1459_v16 = vpop.f32.mrb[77].mxu0 }
 0x2ea   : > { %v1460_v26 = vadd.f32 %v3045_v0, %v1459_v16  ;;  %v2343_v29 = vpop.f32.mrb[78].mxu0 }
 0x2eb   : > { %v1471_v30 = vadd.f32 %v2343_v29, %v3045_v0  ;;  %v1462_v9 = vpop.f32.mrb[79].mxu0  ;;  %v1504_v19 = vmax.f32 %v1468_v25, 0.0 }
 0x2ec   : > { %v1463_v31 = vadd.f32 %v3045_v0, %v1462_v9  ;;  %v1502_v33 = vmax.f32 %v1460_v26, 0.0 }
 0x2ed   : > { %v1505_v32 = vmax.f32 %v1471_v30, 0.0 }
 0x2ee   : > { %v1503_v35 = vmax.f32 %v1463_v31, 0.0 }
 0x2ef   : > { %v2031_v36 = vpack.c.bf16 %v1505_v32, %v1504_v19 }
 0x2f0   : > { %v2026_v42 = vpack.c.bf16 %v1503_v35, %v1502_v33 }
 0x2f1   : > { %2047 = vst [vmem:[%s3054_s22 + $0x78] sm:$0xff] %v2031_v36  }
 0x2f2   : > { %2046 = vst [vmem:[%s3054_s22 + $0x70] sm:$0xff] %v2026_v42  }
 0x2f3 PF: > { %p16_p11 = scmp.ge.s32.totalorder %s2885_s9, 4   ;;  %s3131_s15 = smov %s2718_s16 }
 0x2f4   : > { %s3132_s16 = smov %s2722_s17  ;;  %s3133_s17 = smov %s2895_s25 }
 0x2f5   : > { %s3134_s18 = smov %s2885_s9  ;;  %18 = sbr.rel (!%p16_p11) target bundleno = 5 (0x5), region = 88 }
 0x2fc   :  { %1688 = vsyncpa [#allocation3], 1 }
 0x2fd   :  { %1690 = vsyncpa [#allocation3 + $0x1], 1 }
 0x2fe   :  { %1691 = vsyncpa [#allocation5], 1 }
 0x2ff   :  { %1692 = vsyncpa [#allocation8], 1 }

// kernel: prodar_forward.7
= control target key start
LH: loop header
LB: loop body
LE: loop exit
PB: predicated region body
PF: predicated region fallthrough
CT: control target
= control target key end

     0   :  { %s3053_s0 = inlined_call_operand.vmem [shape: bf16[512,128], index: 0, kind: input, shape index: {}]   ;;  %s3054_s1 = inlined_call_operand.vmem [shape: bf16[512,128], index: 1, kind: input, shape index: {}]   ;;  %s3055_s2 = inlined_call_operand.vmem [shape: bf16[512,128], index: 2, kind: input, shape index: {}]   ;;  %s3056_s3 = inlined_call_operand.vmem [shape: bf16[8,128], index: 3, kind: input, shape index: {}]   ;;  %s3057_s4 = inlined_call_operand.vmem [shape: bf16[384,128], index: 4, kind: input, shape index: {}]   ;;  %s3058_s5 = inlined_call_operand.vmem [shape: f32[1,128], index: 5, kind: input, shape index: {}]   ;;  %s3059_s6 = inlined_call_operand.vmem [shape: f32[1,128], index: 6, kind: input, shape index: {}]   ;;  %s3060_s7 = inlined_call_operand.vmem [shape: f32[1,128], index: 7, kind: input, shape index: {}]   ;;  %s3061_s8 = inlined_call_operand.vmem [shape: bf16[128,128], index: 8, kind: input, shape index: {}]   ;;  %s3062_s9 = inlined_call_operand.vmem [shape: f32[1,128], index: 9, kind: input, shape index: {}]   ;;  %s3063_s10 = inlined_call_operand.vmem [shape: f32[1,128], index: 10, kind: input, shape index: {}]   ;;  %s3064_s11 = inlined_call_operand.vmem [shape: f32[1,128], index: 11, kind: input, shape index: {}]   ;;  %s3065_s12 = inlined_call_operand.vmem [shape: bf16[128,128], index: 12, kind: input, shape index: {}]   ;;  %s3066_s13 = inlined_call_operand.vmem [shape: bf16[128,128], index: 13, kind: input, shape index: {}]   ;;  %s3067_s14 = inlined_call_operand.vmem [shape: f32[1,128], index: 14, kind: input, shape index: {}]   ;;  %s3068_s15 = inlined_call_operand.vmem [shape: f32[1,128], index: 15, kind: input, shape index: {}]   ;;  %s3069_s16 = inlined_call_operand.vmem [shape: f32[1,128], index: 16, kind: input, shape index: {}]   ;;  %s3070_s17 = inlined_call_operand.hbm [shape: f32[8,128], index: 17, kind: output, shape index: {}]  }
   0x1   :  { %3073 = sst [smem:[#allocation5_spill]] %s3053_s0 }
   0x2   :  { %3074 = sst [smem:[#allocation6_spill]] %s3054_s1 }
   0x3   :  { %v2235_v0 = vld [vmem:[%s3057_s4 + $0x40] sm:$0xff]   ;;  %v2409_v2 = vmov 0.0   ;;  %v2237_v3 = vld [vmem:[%s3057_s4 + $0x48] sm:$0xff]   ;;  %v2240_v6 = vld [vmem:[%s3057_s4 + $0x50] sm:$0xff]   ;;  %vm2410_vm0 = vmmov 0   ;;  %s3075_s27 = sld [smem:[#allocation6_spill]] }
   0x4   :  { %v2236_v1 = vld [vmem:[%s3057_s4] sm:$0xff]   ;;  %2152 = vmatprep.subr.bf16.mxu1 %v2409_v2  ;;  %2094 = vmatprep.subr.bf16.mxu0 %v2235_v0  ;;  %v2238_v4 = vld [vmem:[%s3057_s4 + $0x8] sm:$0xff]   ;;  %v2241_v7 = vld [vmem:[%s3057_s4 + $0x10] sm:$0xff]   ;;  %vm1154_vm1 = vcmask 1041409   ;;  %vm1156_vm2 = vcmask 1042434   ;;  %vm1158_vm3 = vcmask 1043459  }
   0x5   :  { %2095 = vmatpush3.bf16.msra.mxu0 %v2236_v1  ;;  %v2239_v5 = vld [vmem:[%s3057_s4 + $0x80] sm:$0xff]   ;;  %v2242_v8 = vld [vmem:[%s3057_s4 + $0x88] sm:$0xff]   ;;  %v2243_v9 = vld [vmem:[%s3057_s4 + $0x58] sm:$0xff]   ;;  %2168 = vmatprep.mubr.msk.bf16.mxu1 %vm2410_vm0, %v2409_v2  ;;  %s3076_s20 = sld [smem:[#allocation5_spill]]  ;;  %vm1160_vm4 = vcmask 1044484   ;;  %vm1162_vm5 = vcmask 1045509  }
   0x6   :  { %2096 = vmatprep.subr.bf16.mxu0 %v2237_v3  ;;  %2153 = vmatpush3.bf16.msra.mxu1 %v2239_v5  ;;  %v2245_v10 = vld [vmem:[%s3057_s4 + $0x90] sm:$0xff]   ;;  %v2244_v11 = vld [vmem:[%s3057_s4 + $0x18] sm:$0xff]   ;;  %v2246_v12 = vld [vmem:[%s3057_s4 + $0x60] sm:$0xff]   ;;  %vm1164_vm6 = vcmask 1046534   ;;  %vm1166_vm7 = vcmask 1047559  }
   0x7   :  { %2154 = vmatprep.subr.bf16.mxu1 %v2409_v2  ;;  %v2248_v13 = vld [vmem:[%s3057_s4 + $0x98] sm:$0xff]   ;;  %v2247_v14 = vld [vmem:[%s3057_s4 + $0x20] sm:$0xff]   ;;  %v2249_v15 = vld [vmem:[%s3057_s4 + $0x68] sm:$0xff]  }
   0x8   :  { %v2251_v16 = vld [vmem:[%s3057_s4 + $0xa0] sm:$0xff]   ;;  %v2250_v17 = vld [vmem:[%s3057_s4 + $0x28] sm:$0xff]   ;;  %v2252_v18 = vld [vmem:[%s3057_s4 + $0x70] sm:$0xff]  }
   0x9   :  { %2097 = vmatpush3.bf16.msra.mxu0 %v2238_v4  ;;  %v2253_v19 = vld [vmem:[%s3057_s4 + $0x30] sm:$0xff]   ;;  %v2254_v20 = vld [vmem:[%s3057_s4 + $0xa8] sm:$0xff]   ;;  %v2255_v21 = vld [vmem:[%s3057_s4 + $0x78] sm:$0xff]  }
   0xa   :  { %2098 = vmatprep.subr.bf16.mxu0 %v2240_v6  ;;  %2155 = vmatpush3.bf16.msra.mxu1 %v2242_v8  ;;  %v2257_v22 = vld [vmem:[%s3057_s4 + $0xb0] sm:$0xff]   ;;  %v2256_v23 = vld [vmem:[%s3057_s4 + $0x38] sm:$0xff]   ;;  %v2258_v24 = vld [vmem:[%s3075_s27] sm:$0xff]  }
   0xb   :  { %2156 = vmatprep.subr.bf16.mxu1 %v2409_v2  ;;  %v2259_v25 = vld [vmem:[%s3075_s27 + $0x8] sm:$0xff]   ;;  %v2260_v26 = vld [vmem:[%s3075_s27 + $0x10] sm:$0xff]   ;;  %v2262_v27 = vld [vmem:[%s3075_s27 + $0x20] sm:$0xff]  }
   0xc   :  { %v2261_v28 = vld [vmem:[%s3075_s27 + $0x18] sm:$0xff]   ;;  %v2263_v29 = vld [vmem:[%s3075_s27 + $0x28] sm:$0xff]   ;;  %v2264_v30 = vld [vmem:[%s3075_s27 + $0x30] sm:$0xff]   ;;  %v674_v31 = vmax.bf16 %v2259_v25, %v2258_v24 }
   0xd   :  { %2099 = vmatpush3.bf16.msra.mxu0 %v2241_v7  ;;  %v2266_v32 = vld [vmem:[%s3075_s27 + $0x40] sm:$0xff]   ;;  %v2267_v33 = vld [vmem:[%s3075_s27 + $0x48] sm:$0xff]   ;;  %v2268_v34 = vld [vmem:[%s3075_s27 + $0x50] sm:$0xff]   ;;  %v687_v39 = vmax.bf16 %v2263_v29, %v2262_v27 }
   0xe   :  { %2100 = vmatprep.subr.bf16.mxu0 %v2243_v9  ;;  %2157 = vmatpush3.bf16.msra.mxu1 %v2245_v10  ;;  %v2265_v35 = vld [vmem:[%s3075_s27 + $0x38] sm:$0xff]   ;;  %v2270_v36 = vld [vmem:[%s3075_s27 + $0x60] sm:$0xff]   ;;  %v2271_v37 = vld [vmem:[%s3075_s27 + $0x68] sm:$0xff]   ;;  %v675_v38 = vmax.bf16 %v2260_v26, %v674_v31  ;;  %v700_v43 = vmax.bf16 %v2267_v33, %v2266_v32 }
   0xf   :  { %2158 = vmatprep.subr.bf16.mxu1 %v2409_v2  ;;  %v2269_v40 = vld [vmem:[%s3075_s27 + $0x58] sm:$0xff]   ;;  %v2272_v41 = vld [vmem:[%s3075_s27 + $0x70] sm:$0xff]   ;;  %v2274_v42 = vld [vmem:[%s3075_s27 + $0x80] sm:$0xff]   ;;  %v688_v48 = vmax.bf16 %v2264_v30, %v687_v39  ;;  %v713_v49 = vmax.bf16 %v2271_v37, %v2270_v36 }
  0x10   :  { %v2273_v44 = vld [vmem:[%s3075_s27 + $0x78] sm:$0xff]   ;;  %v2275_v45 = vld [vmem:[%s3075_s27 + $0x88] sm:$0xff]   ;;  %v2276_v46 = vld [vmem:[%s3075_s27 + $0x90] sm:$0xff]   ;;  %v676_v47 = vmax.bf16 %v2261_v28, %v675_v38  ;;  %v701_v53 = vmax.bf16 %v2268_v34, %v700_v43 }
  0x11   :  { %2101 = vmatpush3.bf16.msra.mxu0 %v2244_v11  ;;  %v2278_v50 = vld [vmem:[%s3075_s27 + $0xa0] sm:$0xff]   ;;  %v2279_v51 = vld [vmem:[%s3075_s27 + $0xa8] sm:$0xff]   ;;  %v2280_v52 = vld [vmem:[%s3075_s27 + $0xb0] sm:$0xff]   ;;  %v689_v57 = vmax.bf16 %v2265_v35, %v688_v48  ;;  %v714_v58 = vmax.bf16 %v2272_v41, %v713_v49  ;;  %v726_v63 = vmax.bf16 %v2275_v45, %v2274_v42 }
  0x12   :  { %2102 = vmatprep.subr.bf16.mxu0 %v2246_v12  ;;  %2159 = vmatpush3.bf16.msra.mxu1 %v2248_v13  ;;  %v2277_v54 = vld [vmem:[%s3075_s27 + $0x98] sm:$0xff]   ;;  %v677_v55 = vunpack.i.l.bf16 %v676_v47  ;;  %v678_v56 = vunpack.i.h.bf16 %v676_v47  ;;  %v2282_v60 = vld [vmem:[%s3075_s27 + $0xc0] sm:$0xff]   ;;  %v2283_v61 = vld [vmem:[%s3075_s27 + $0xc8] sm:$0xff]   ;;  %v702_v62 = vmax.bf16 %v2269_v40, %v701_v53  ;;  %v739_v0 = vmax.bf16 %v2279_v51, %v2278_v50 }
  0x13   :  { %2160 = vmatprep.subr.bf16.mxu1 %v2409_v2  ;;  %v2281_v59 = vld [vmem:[%s3075_s27 + $0xb8] sm:$0xff]   ;;  %v2286_v1 = vld [vmem:[%s3075_s27 + $0xe0] sm:$0xff]   ;;  %v2287_v3 = vld [vmem:[%s3075_s27 + $0xe8] sm:$0xff]   ;;  %v690_v5 = vunpack.i.l.bf16 %v689_v57  ;;  %v691_v6 = vunpack.i.h.bf16 %v689_v57  ;;  %v715_v7 = vmax.bf16 %v2273_v44, %v714_v58  ;;  %v727_v11 = vmax.bf16 %v2276_v46, %v726_v63 }
  0x14   :  { %v679_v4 = vmax.f32 %v677_v55, %v678_v56  ;;  %v2284_v8 = vld [vmem:[%s3075_s27 + $0xd0] sm:$0xff]   ;;  %v703_v9 = vunpack.i.l.bf16 %v702_v62  ;;  %v704_v10 = vunpack.i.h.bf16 %v702_v62  ;;  %v740_v12 = vmax.bf16 %v2280_v52, %v739_v0  ;;  %v2289_v27 = vld [vmem:[%s3075_s27 + $0xf8] sm:$0xff]  }
  0x15   :  { %2103 = vmatpush3.bf16.msra.mxu0 %v2247_v14  ;;  %v2288_v13 = vld [vmem:[%s3075_s27 + $0xf0] sm:$0xff]   ;;  %v765_v26 = vmax.bf16 %v2287_v3, %v2286_v1 }
  0x16   :  { %2104 = vmatprep.subr.bf16.mxu0 %v2249_v15  ;;  %2161 = vmatpush3.bf16.msra.mxu1 %v2251_v16  ;;  %v680_v14 = vrot.slane %v679_v4, 4  ;;  %v692_v15 = vmax.f32 %v690_v5, %v691_v6  ;;  %v716_v16 = vunpack.i.l.bf16 %v715_v7 }
  0x17   :  { %2162 = vmatprep.subr.bf16.mxu1 %v2409_v2  ;;  %v766_v39 = vmax.bf16 %v2288_v13, %v765_v26  ;;  %v2296_v26 = vld [vmem:[%s3076_s20 + $0x30] sm:$0xff]  }
  0x18   :  { %v693_v24 = vrot.slane %v692_v15, 4 }
  0x19   :  { %2105 = vmatpush3.bf16.msra.mxu0 %v2250_v17  ;;  %v717_v17 = vunpack.i.h.bf16 %v715_v7  ;;  %v767_v47 = vmax.bf16 %v2289_v27, %v766_v39 }
  0x1a   :  { %2106 = vmatprep.subr.bf16.mxu0 %v2252_v18  ;;  %2163 = vmatpush3.bf16.msra.mxu1 %v2254_v20  ;;  %v705_v18 = vmax.f32 %v703_v9, %v704_v10  ;;  %v741_v20 = vmax.bf16 %v2281_v59, %v740_v12  ;;  %v694_v33 = vmax.f32 %v692_v15, %v693_v24 }
  0x1b   :  { %2164 = vmatprep.subr.bf16.mxu1 %v2409_v2  ;;  %v718_v25 = vmax.f32 %v716_v16, %v717_v17  ;;  %v768_v1 = vunpack.i.l.bf16 %v767_v47  ;;  %v769_v10 = vunpack.i.h.bf16 %v767_v47  ;;  %v2293_v16 = vld [vmem:[%s3076_s20 + $0x18] sm:$0xff]   ;;  %v2294_v17 = vld [vmem:[%s3076_s20 + $0x20] sm:$0xff]  }
  0x1c   :  { %v706_v28 = vrot.slane %v705_v18, 4  ;;  %v742_v31 = vunpack.i.l.bf16 %v741_v20  ;;  %v743_v35 = vunpack.i.h.bf16 %v741_v20  ;;  %v695_v41 = vrot.slane %v694_v33, 2 }
  0x1d   :  { %2107 = vmatpush3.bf16.msra.mxu0 %v2253_v19  ;;  %v728_v19 = vmax.bf16 %v2277_v54, %v727_v11  ;;  %v719_v34 = vrot.slane %v718_v25, 4  ;;  %v2292_v11 = vld [vmem:[%s3076_s20 + $0x10] sm:$0xff]  }
  0x1e   :  { %2108 = vmatprep.subr.bf16.mxu0 %v2255_v21  ;;  %2165 = vmatpush3.bf16.msra.mxu1 %v2257_v22  ;;  %v752_v21 = vmax.bf16 %v2283_v61, %v2282_v60  ;;  %v2285_v22 = vld [vmem:[%s3075_s27 + $0xd8] sm:$0xff]   ;;  %v707_v36 = vmax.f32 %v705_v18, %v706_v28  ;;  %v744_v43 = vmax.f32 %v742_v31, %v743_v35  ;;  %v2290_v60 = vld [vmem:[%s3076_s20] sm:$0xff]   ;;  %v2291_v61 = vld [vmem:[%s3076_s20 + $0x8] sm:$0xff]  }
  0x1f   :  { %2166 = vmatprep.subr.bf16.mxu1 %v2409_v2  ;;  %v729_v29 = vunpack.i.l.bf16 %v728_v19  ;;  %v730_v30 = vunpack.i.h.bf16 %v728_v19  ;;  %v720_v42 = vmax.f32 %v718_v25, %v719_v34  ;;  %v696_v49 = vmax.f32 %v694_v33, %v695_v41  ;;  %v2297_v35 = vld [vmem:[%s3076_s20 + $0x38] sm:$0xff]  }
  0x20   :  { %v753_v38 = vmax.bf16 %v2284_v8, %v752_v21  ;;  %v708_v44 = vrot.slane %v707_v36, 2  ;;  %v745_v51 = vrot.slane %v744_v43, 4  ;;  %v770_v21 = vmax.f32 %v768_v1, %v769_v10  ;;  %v2306_v10 = vld [vmem:[%s3076_s20 + $0x80] sm:$0xff]  }
  0x21   :  { %2109 = vmatpush3.bf16.msra.mxu0 %v2256_v23  ;;  %v681_v23 = vmax.f32 %v679_v4, %v680_v14  ;;  %v731_v37 = vmax.f32 %v729_v29, %v730_v30  ;;  %v721_v50 = vrot.slane %v720_v42, 2  ;;  %v697_v57 = vrot.slane %v696_v49, 1 }
  0x22   :  { %2172 = vmatprep.subr.bf16.mxu0 %v2409_v2  ;;  %v754_v46 = vmax.bf16 %v2285_v22, %v753_v38  ;;  %v709_v52 = vmax.f32 %v707_v36, %v708_v44  ;;  %v746_v59 = vmax.f32 %v744_v43, %v745_v51  ;;  %v2295_v22 = vld [vmem:[%s3076_s20 + $0x28] sm:$0xff]   ;;  %v314_v27 = vmax.bf16 %v2291_v61, %v2290_v60  ;;  %v2300_v61 = vld [vmem:[%s3076_s20 + $0x50] sm:$0xff]  }
  0x23   :  { %v682_v32 = vrot.slane %v681_v23, 2  ;;  %v732_v45 = vrot.slane %v731_v37, 4  ;;  %v722_v58 = vmax.f32 %v720_v42, %v721_v50  ;;  %v698_v4 = vmax.f32 %v696_v49, %v697_v57  ;;  %v2299_v60 = vld [vmem:[%s3076_s20 + $0x48] sm:$0xff]  }
  0x24   :  { %v755_v54 = vunpack.i.l.bf16 %v754_v46  ;;  %v756_v55 = vunpack.i.h.bf16 %v754_v46  ;;  %v710_v62 = vrot.slane %v709_v52, 1  ;;  %v747_v6 = vrot.slane %v746_v59, 2 }
  0x25   :  { %v683_v40 = vmax.f32 %v681_v23, %v682_v32  ;;  %v733_v53 = vmax.f32 %v731_v37, %v732_v45  ;;  %v723_v5 = vrot.slane %v722_v58, 1  ;;  %v699_v12 = vpack.i.bf16 %v698_v4, %v698_v4 }
  0x26   :  { %v757_v0 = vmax.f32 %v755_v54, %v756_v55  ;;  %v711_v7 = vmax.f32 %v709_v52, %v710_v62  ;;  %v748_v14 = vmax.f32 %v746_v59, %v747_v6  ;;  %v771_v30 = vrot.slane %v770_v21, 4  ;;  %v2302_v62 = vld [vmem:[%s3076_s20 + $0x60] sm:$0xff]   ;;  %v2301_v6 = vld [vmem:[%s3076_s20 + $0x58] sm:$0xff]  }
  0x27   :  { %v684_v48 = vrot.slane %v683_v40, 1  ;;  %v734_v63 = vrot.slane %v733_v53, 2  ;;  %v724_v13 = vmax.f32 %v722_v58, %v723_v5  ;;  %v1179_v25 = vunpack.c.l.b16 %v699_v12  ;;  %v2308_v12 = vld [vmem:[%s3076_s20 + $0x90] sm:$0xff]  }
  0x28   :  { %v758_v9 = vrot.slane %v757_v0, 4  ;;  %v712_v18 = vpack.i.bf16 %v711_v7, %v711_v7  ;;  %v749_v24 = vrot.slane %v748_v14, 1  ;;  %v315_v36 = vmax.bf16 %v2292_v11, %v314_v27  ;;  %v2303_v7 = vld [vmem:[%s3076_s20 + $0x68] sm:$0xff]   ;;  %v2312_v27 = vld [vmem:[%s3076_s20 + $0xb0] sm:$0xff]  }
  0x29   :  { %v685_v56 = vmax.f32 %v683_v40, %v684_v48  ;;  %v735_v8 = vmax.f32 %v733_v53, %v734_v63  ;;  %v725_v23 = vpack.i.bf16 %v724_v13, %v724_v13  ;;  %v772_v39 = vmax.f32 %v770_v21, %v771_v30  ;;  %v2298_v48 = vld [vmem:[%s3076_s20 + $0x40] sm:$0xff]   ;;  %v2307_v11 = vld [vmem:[%s3076_s20 + $0x88] sm:$0xff]  }
  0x2a   :  { %v759_v20 = vmax.f32 %v757_v0, %v758_v9  ;;  %v1180_v31 = vunpack.c.l.b16 %v712_v18  ;;  %v750_v32 = vmax.f32 %v748_v14, %v749_v24  ;;  %v316_v42 = vmax.bf16 %v2293_v16, %v315_v36  ;;  %v2305_v16 = vld [vmem:[%s3076_s20 + $0x78] sm:$0xff]   ;;  %v2311_v18 = vld [vmem:[%s3076_s20 + $0xa8] sm:$0xff]  }
  0x2b   :  { %v686_v3 = vpack.i.bf16 %v685_v56, %v685_v56  ;;  %v736_v19 = vrot.slane %v735_v8, 1  ;;  %v1181_v33 = vunpack.c.l.b16 %v725_v23  ;;  %v327_v43 = vmax.bf16 %v2295_v22, %v2294_v17  ;;  %v2310_v17 = vld [vmem:[%s3076_s20 + $0xa0] sm:$0xff]   ;;  %v2309_v22 = vld [vmem:[%s3076_s20 + $0x98] sm:$0xff]  }
  0x2c   :  { %v760_v29 = vrot.slane %v759_v20, 2  ;;  %v751_v41 = vpack.i.bf16 %v750_v32, %v750_v32  ;;  %v773_v45 = vrot.slane %v772_v39, 2  ;;  %v317_v49 = vunpack.i.l.bf16 %v316_v42  ;;  %v2314_v32 = vld [vmem:[%s3076_s20 + $0xc0] sm:$0xff]  }
  0x2d   :  { %v1178_v15 = vunpack.c.l.b16 %v686_v3  ;;  %v737_v28 = vmax.f32 %v735_v8, %v736_v19  ;;  %v318_v50 = vunpack.i.h.bf16 %v316_v42  ;;  %v328_v51 = vmax.bf16 %v2296_v26, %v327_v43  ;;  %v2304_v8 = vld [vmem:[%s3076_s20 + $0x70] sm:$0xff]  }
  0x2e   :  { %v761_v38 = vmax.f32 %v759_v20, %v760_v29  ;;  %v774_v53 = vmax.f32 %v772_v39, %v773_v45  ;;  %v1183_v54 = vunpack.c.l.b16 %v751_v41  ;;  %v340_v9 = vmax.bf16 %v2299_v60, %v2298_v48  ;;  %v2316_v43 = vld [vmem:[%s3076_s20 + $0xd0] sm:$0xff]   ;;  %v2323_v48 = vld [vmem:[%s3057_s4 + $0xb8] sm:$0xff]  }
  0x2f   :  { %v1186_v34 = vsel %vm1154_vm1, %v1179_v25, %v1178_v15  ;;  %v738_v37 = vpack.i.bf16 %v737_v28, %v737_v28  ;;  %v319_v56 = vmax.f32 %v317_v49, %v318_v50  ;;  %v329_v57 = vmax.bf16 %v2297_v35, %v328_v51  ;;  %2167 = vmatpush3.bf16.msra.mxu1 %v2323_v48 }
  0x30   :  { %v1187_v40 = vsel %vm1156_vm2, %v1180_v31, %v1186_v34  ;;  %v762_v44 = vrot.slane %v761_v38, 1  ;;  %v775_v59 = vrot.slane %v774_v53, 1  ;;  %v341_v19 = vmax.bf16 %v2300_v61, %v340_v9  ;;  %v2313_v31 = vld [vmem:[%s3076_s20 + $0xb8] sm:$0xff]   ;;  %2192 = vmatprep.subr.bf16.mxu1 %v2409_v2 }
  0x31   :  { %v1182_v46 = vunpack.c.l.b16 %v738_v37  ;;  %v1188_v47 = vsel %vm1158_vm3, %v1181_v33, %v1187_v40  ;;  %v320_v63 = vrot.slane %v319_v56, 4  ;;  %v330_v0 = vunpack.i.l.bf16 %v329_v57  ;;  %v2315_v33 = vld [vmem:[%s3076_s20 + $0xc8] sm:$0xff]  }
  0x32   :  { %v763_v52 = vmax.f32 %v761_v38, %v762_v44  ;;  %v331_v1 = vunpack.i.h.bf16 %v329_v57  ;;  %v776_v3 = vmax.f32 %v774_v53, %v775_v59  ;;  %v353_v20 = vmax.bf16 %v2303_v7, %v2302_v62  ;;  %v2318_v38 = vld [vmem:[%s3076_s20 + $0xe0] sm:$0xff]   ;;  %v2319_v44 = vld [vmem:[%s3076_s20 + $0xe8] sm:$0xff]   ;;  %v2317_v53 = vld [vmem:[%s3076_s20 + $0xd8] sm:$0xff]  }
  0x33   :  { %v1189_v55 = vsel %vm1160_vm4, %v1182_v46, %v1188_v47  ;;  %v321_v13 = vmax.f32 %v319_v56, %v320_v63  ;;  %v366_v25 = vmax.bf16 %v2307_v11, %v2306_v10  ;;  %v342_v28 = vmax.bf16 %v2301_v6, %v341_v19  ;;  %v2321_v59 = vld [vmem:[%s3076_s20 + $0xf8] sm:$0xff]   ;;  %v2326_v10 = vld [vmem:[%s3055_s2 + $0x8] sm:$0xff]   ;;  %v2327_v19 = vld [vmem:[%s3055_s2 + $0x10] sm:$0xff]  }
  0x34   :  { %v764_v58 = vpack.i.bf16 %v763_v52, %v763_v52  ;;  %v1190_v5 = vsel %vm1162_vm5, %v1183_v54, %v1189_v55  ;;  %v332_v14 = vmax.f32 %v330_v0, %v331_v1  ;;  %v777_v15 = vpack.i.bf16 %v776_v3, %v776_v3  ;;  %v2320_v54 = vld [vmem:[%s3076_s20 + $0xf0] sm:$0xff]  }
  0x35   :  { %v322_v23 = vrot.slane %v321_v13, 2  ;;  %v354_v29 = vmax.bf16 %v2304_v8, %v353_v20  ;;  %v379_v30 = vmax.bf16 %v2311_v18, %v2310_v17  ;;  %v367_v36 = vmax.bf16 %v2308_v12, %v366_v25 }
  0x36   :  { %v1184_v4 = vunpack.c.l.b16 %v764_v58  ;;  %v333_v24 = vrot.slane %v332_v14, 4  ;;  %v1185_v26 = vunpack.c.l.b16 %v777_v15  ;;  %v343_v39 = vunpack.i.l.bf16 %v342_v28 }
  0x37   :  { %v323_v34 = vmax.f32 %v321_v13, %v322_v23  ;;  %v344_v40 = vunpack.i.h.bf16 %v342_v28  ;;  %v355_v41 = vmax.bf16 %v2305_v16, %v354_v29  ;;  %v368_v47 = vmax.bf16 %v2309_v22, %v367_v36 }
  0x38   :  { %v1191_v21 = vsel %vm1164_vm6, %v1184_v4, %v1190_v5  ;;  %v334_v35 = vmax.f32 %v332_v14, %v333_v24  ;;  %v380_v52 = vmax.bf16 %v2312_v27, %v379_v30  ;;  %v392_v63 = vmax.bf16 %v2315_v33, %v2314_v32  ;;  %v2325_v5 = vld [vmem:[%s3055_s2] sm:$0xff]   ;;  %v2328_v32 = vld [vmem:[%s3055_s2 + $0x18] sm:$0xff]  }
  0x39   :  { %v1192_v37 = vsel %vm1166_vm7, %v1185_v26, %v1191_v21  ;;  %v324_v45 = vrot.slane %v323_v34, 1  ;;  %v345_v49 = vmax.f32 %v343_v39, %v344_v40  ;;  %v356_v50 = vunpack.i.l.bf16 %v355_v41  ;;  %v2329_v40 = vld [vmem:[%s3055_s2 + $0x20] sm:$0xff]  }
  0x3a   :  { %v1193_v42 = vpack.c.b16 %v1192_v37, %v1192_v37  ;;  %v335_v46 = vrot.slane %v334_v35, 2  ;;  %v357_v51 = vunpack.i.h.bf16 %v355_v41  ;;  %v369_v57 = vunpack.i.l.bf16 %v368_v47  ;;  %v2330_v41 = vld [vmem:[%s3055_s2 + $0x28] sm:$0xff]  }
  0x3b   :  { %v325_v55 = vmax.f32 %v323_v34, %v324_v45  ;;  %v370_v58 = vunpack.i.h.bf16 %v368_v47  ;;  %v346_v60 = vrot.slane %v345_v49, 4  ;;  %v381_v62 = vmax.bf16 %v2313_v31, %v380_v52 }
  0x3c   :  { %1451 = vmatprep.mubr.bf16.mxu0 %v1193_v42  ;;  %v336_v56 = vmax.f32 %v334_v35, %v335_v46  ;;  %v358_v61 = vmax.f32 %v356_v50, %v357_v51  ;;  %v405_v4 = vmax.bf16 %v2319_v44, %v2318_v38  ;;  %v393_v13 = vmax.bf16 %v2316_v43, %v392_v63  ;;  %v2333_v63 = vld [vmem:[%s3055_s2 + $0x40] sm:$0xff]  }
  0x3d   :  { %v326_v0 = vpack.i.bf16 %v325_v55, %v325_v55  ;;  %v371_v3 = vmax.f32 %v369_v57, %v370_v58  ;;  %v347_v6 = vmax.f32 %v345_v49, %v346_v60  ;;  %v382_v8 = vunpack.i.l.bf16 %v381_v62  ;;  %v2332_v58 = vld [vmem:[%s3055_s2 + $0x38] sm:$0xff]  }
  0x3e   :  { %v337_v1 = vrot.slane %v336_v56, 1  ;;  %v359_v7 = vrot.slane %v358_v61, 4  ;;  %v383_v9 = vunpack.i.h.bf16 %v381_v62  ;;  %v406_v14 = vmax.bf16 %v2320_v54, %v405_v4  ;;  %v2331_v54 = vld [vmem:[%s3055_s2 + $0x30] sm:$0xff]  }
  0x3f   :  { %v372_v12 = vrot.slane %v371_v3, 4  ;;  %v348_v15 = vrot.slane %v347_v6, 2  ;;  %v1146_v18 = vunpack.c.l.b16 %v326_v0  ;;  %v394_v22 = vmax.bf16 %v2317_v53, %v393_v13 }
  0x40   :  { %v338_v11 = vmax.f32 %v336_v56, %v337_v1  ;;  %v360_v16 = vmax.f32 %v358_v61, %v359_v7  ;;  %v384_v17 = vmax.f32 %v382_v8, %v383_v9  ;;  %v407_v23 = vmax.bf16 %v2321_v59, %v406_v14 }
  0x41   :  { %v373_v21 = vmax.f32 %v371_v3, %v372_v12  ;;  %v349_v24 = vmax.f32 %v347_v6, %v348_v15  ;;  %v1034_v27 = vmax.bf16 %v2326_v10, %v2325_v5  ;;  %v395_v29 = vunpack.i.l.bf16 %v394_v22  ;;  %v2334_v3 = vld [vmem:[%s3055_s2 + $0x48] sm:$0xff]   ;;  %v2335_v10 = vld [vmem:[%s3055_s2 + $0x50] sm:$0xff]  }
  0x42   :  { %v339_v20 = vpack.i.bf16 %v338_v11, %v338_v11  ;;  %v361_v25 = vrot.slane %v360_v16, 2  ;;  %v385_v26 = vrot.slane %v384_v17, 4  ;;  %v396_v30 = vunpack.i.h.bf16 %v394_v22 }
  0x43   :  { %v374_v28 = vrot.slane %v373_v21, 2  ;;  %v408_v31 = vunpack.i.l.bf16 %v407_v23  ;;  %v350_v33 = vrot.slane %v349_v24, 1  ;;  %v409_v36 = vunpack.i.h.bf16 %v407_v23 }
  0x44   :  { %v362_v34 = vmax.f32 %v360_v16, %v361_v25  ;;  %v386_v35 = vmax.f32 %v384_v17, %v385_v26  ;;  %v397_v38 = vmax.f32 %v395_v29, %v396_v30  ;;  %v1147_v39 = vunpack.c.l.b16 %v339_v20  ;;  %v2336_v20 = vld [vmem:[%s3055_s2 + $0x58] sm:$0xff]  }
  0x45   :  { %v375_v37 = vmax.f32 %v373_v21, %v374_v28  ;;  %v1035_v42 = vmax.bf16 %v2327_v19, %v1034_v27  ;;  %v351_v43 = vmax.f32 %v349_v24, %v350_v33  ;;  %v410_v46 = vmax.f32 %v408_v31, %v409_v36  ;;  %v2337_v31 = vld [vmem:[%s3055_s2 + $0x60] sm:$0xff]  }
  0x46   :  { %v363_v44 = vrot.slane %v362_v34, 1  ;;  %v387_v45 = vrot.slane %v386_v35, 2  ;;  %v398_v48 = vrot.slane %v397_v38, 4  ;;  %v1155_v57 = vsel %vm1154_vm1, %v1147_v39, %v1146_v18 }
  0x47   :  { %v376_v47 = vrot.slane %v375_v37, 1  ;;  %v1036_v49 = vmax.bf16 %v2328_v32, %v1035_v42  ;;  %v352_v50 = vpack.i.bf16 %v351_v43, %v351_v43  ;;  %v411_v53 = vrot.slane %v410_v46, 4  ;;  %v2322_v42 = vld [vmem:[%s3061_s8] sm:$0xff]   ;;  %v2338_v43 = vld [vmem:[%s3055_s2 + $0x68] sm:$0xff]  }
  0x48   :  { %v364_v51 = vmax.f32 %v362_v34, %v363_v44  ;;  %v388_v52 = vmax.f32 %v386_v35, %v387_v45  ;;  %v399_v56 = vmax.f32 %v397_v38, %v398_v48  ;;  %v1047_v5 = vmax.bf16 %v2330_v41, %v2329_v40  ;;  %v2339_v44 = vld [vmem:[%s3055_s2 + $0x70] sm:$0xff]   ;;  %v2341_v48 = vld [vmem:[%s3055_s2 + $0x80] sm:$0xff]  }
  0x49   :  { %v377_v55 = vmax.f32 %v375_v37, %v376_v47  ;;  %v412_v61 = vmax.f32 %v410_v46, %v411_v53  ;;  %v1148_v62 = vunpack.c.l.b16 %v352_v50  ;;  %v1037_v4 = vunpack.i.l.bf16 %v1036_v49  ;;  %v2343_v50 = vld [vmem:[%s3055_s2 + $0x90] sm:$0xff]   ;;  %v2340_v53 = vld [vmem:[%s3055_s2 + $0x78] sm:$0xff]  }
  0x4a   :  { %v365_v59 = vpack.i.bf16 %v364_v51, %v364_v51  ;;  %v389_v60 = vrot.slane %v388_v52, 1  ;;  %v400_v1 = vrot.slane %v399_v56, 2  ;;  %v1048_v13 = vmax.bf16 %v2331_v54, %v1047_v5  ;;  %v2345_v54 = vld [vmem:[%s3055_s2 + $0xa0] sm:$0xff]  }
  0x4b   :  { %v378_v0 = vpack.i.bf16 %v377_v55, %v377_v55  ;;  %v413_v7 = vrot.slane %v412_v61, 2  ;;  %v1157_v9 = vsel %vm1156_vm2, %v1148_v62, %v1155_v57  ;;  %v1060_v14 = vmax.bf16 %v2334_v3, %v2333_v63  ;;  %v2346_v55 = vld [vmem:[%s3055_s2 + $0xa8] sm:$0xff]   ;;  %v2349_v62 = vld [vmem:[%s3055_s2 + $0xc0] sm:$0xff]  }
  0x4c   :  { %v390_v6 = vmax.f32 %v388_v52, %v389_v60  ;;  %v1149_v8 = vunpack.c.l.b16 %v365_v59  ;;  %v401_v11 = vmax.f32 %v399_v56, %v400_v1  ;;  %v1038_v18 = vunpack.i.h.bf16 %v1036_v49  ;;  %v2342_v49 = vld [vmem:[%s3055_s2 + $0x88] sm:$0xff]   ;;  %v2344_v60 = vld [vmem:[%s3055_s2 + $0x98] sm:$0xff]  }
  0x4d   :  { %v1150_v12 = vunpack.c.l.b16 %v378_v0  ;;  %v414_v16 = vmax.f32 %v412_v61, %v413_v7  ;;  %v1049_v21 = vmax.bf16 %v2332_v58, %v1048_v13  ;;  %v1061_v22 = vmax.bf16 %v2335_v10, %v1060_v14  ;;  %v2347_v61 = vld [vmem:[%s3055_s2 + $0xb0] sm:$0xff]   ;;  %v2324_v1 = vld [vmem:[%s3061_s8 + $0x8] sm:$0xff]  }
  0x4e   :  { %v391_v15 = vpack.i.bf16 %v390_v6, %v390_v6  ;;  %v1159_v17 = vsel %vm1158_vm3, %v1149_v8, %v1157_v9  ;;  %v402_v19 = vrot.slane %v401_v11, 1  ;;  %v1039_v32 = vmax.f32 %v1037_v4, %v1038_v18  ;;  %v2350_v3 = vld [vmem:[%s3055_s2 + $0xc8] sm:$0xff]   ;;  %v2348_v8 = vld [vmem:[%s3055_s2 + $0xb8] sm:$0xff]   ;;  %v2353_v9 = vld [vmem:[%s3055_s2 + $0xe0] sm:$0xff]  }
  0x4f   :  { %v415_v23 = vrot.slane %v414_v16, 1  ;;  %v1161_v25 = vsel %vm1160_vm4, %v1150_v12, %v1159_v17  ;;  %v1050_v27 = vunpack.i.l.bf16 %v1049_v21  ;;  %v1051_v28 = vunpack.i.h.bf16 %v1049_v21  ;;  %v2354_v10 = vld [vmem:[%s3055_s2 + $0xe8] sm:$0xff]   ;;  %v2351_v13 = vld [vmem:[%s3055_s2 + $0xd0] sm:$0xff]  }
  0x50   :  { %v1151_v24 = vunpack.c.l.b16 %v391_v15  ;;  %v403_v26 = vmax.f32 %v401_v11, %v402_v19  ;;  %v1062_v29 = vmax.bf16 %v2336_v20, %v1061_v22  ;;  %v1040_v45 = vrot.slane %v1039_v32, 4  ;;  %v2352_v22 = vld [vmem:[%s3055_s2 + $0xd8] sm:$0xff]  }
  0x51   :  { %v416_v30 = vmax.f32 %v414_v16, %v415_v23  ;;  %v1052_v34 = vmax.f32 %v1050_v27, %v1051_v28  ;;  %v1073_v58 = vmax.bf16 %v2338_v43, %v2337_v31  ;;  %v1086_v0 = vmax.bf16 %v2342_v49, %v2341_v48  ;;  %v2355_v23 = vld [vmem:[%s3055_s2 + $0xf0] sm:$0xff]  }
  0x52   :  { %v404_v33 = vpack.i.bf16 %v403_v26, %v403_v26  ;;  %v1063_v35 = vunpack.i.l.bf16 %v1062_v29  ;;  %v1064_v36 = vunpack.i.h.bf16 %v1062_v29  ;;  %v1163_v38 = vsel %vm1162_vm5, %v1151_v24, %v1161_v25 }
  0x53   :  { %v417_v37 = vpack.i.bf16 %v416_v30, %v416_v30  ;;  %v1053_v46 = vrot.slane %v1052_v34, 4  ;;  %v1041_v56 = vmax.f32 %v1039_v32, %v1040_v45  ;;  %v1074_v6 = vmax.bf16 %v2339_v44, %v1073_v58  ;;  %v2357_v32 = vld [vmem:[%s3061_s8 + $0x10] sm:$0xff]  }
  0x54   :  { %v1152_v39 = vunpack.c.l.b16 %v404_v33  ;;  %v1065_v40 = vmax.f32 %v1063_v35, %v1064_v36  ;;  %v1099_v7 = vmax.bf16 %v2346_v55, %v2345_v54  ;;  %v1087_v12 = vmax.bf16 %v2343_v50, %v1086_v0  ;;  %v2358_v50 = vld [vmem:[%s3061_s8 + $0x18] sm:$0xff]  }
  0x55   :  { %v1153_v41 = vunpack.c.l.b16 %v417_v37  ;;  %v1054_v57 = vmax.f32 %v1052_v34, %v1053_v46  ;;  %v1042_v4 = vrot.slane %v1041_v56, 2  ;;  %v1075_v16 = vmax.bf16 %v2340_v53, %v1074_v6  ;;  %v2356_v37 = vld [vmem:[%s3055_s2 + $0xf8] sm:$0xff]   ;;  %v2359_v6 = vld [vmem:[%s3061_s8 + $0x20] sm:$0xff]  }
  0x56   :  { %v1165_v47 = vsel %vm1164_vm6, %v1152_v39, %v1163_v38  ;;  %v1066_v51 = vrot.slane %v1065_v40, 4  ;;  %v1100_v17 = vmax.bf16 %v2347_v61, %v1099_v7  ;;  %v1088_v19 = vmax.bf16 %v2344_v60, %v1087_v12 }
  0x57   :  { %v1167_v52 = vsel %vm1166_vm7, %v1153_v41, %v1165_v47  ;;  %v1055_v5 = vrot.slane %v1054_v57, 2  ;;  %v1043_v14 = vmax.f32 %v1041_v56, %v1042_v4  ;;  %v1112_v20 = vmax.bf16 %v2350_v3, %v2349_v62 }
  0x58   :  { %v1168_v59 = vpack.c.b16 %v1167_v52, %v1167_v52  ;;  %v1067_v63 = vmax.f32 %v1065_v40, %v1066_v51  ;;  %v1125_v21 = vmax.bf16 %v2354_v10, %v2353_v9  ;;  %v1076_v26 = vunpack.i.l.bf16 %v1075_v16 }
  0x59   :  { %v1056_v15 = vmax.f32 %v1054_v57, %v1055_v5  ;;  %v1044_v24 = vrot.slane %v1043_v14, 1  ;;  %v1077_v27 = vunpack.i.h.bf16 %v1075_v16  ;;  %v1089_v29 = vunpack.i.l.bf16 %v1088_v19 }
  0x5a   :  { %1452 = vmatmul.mubr.bf16.vlgmr.msra.gmra.mrb[0].mxu0 %v1168_v59  ;;  %v1068_v11 = vrot.slane %v1067_v63, 2  ;;  %v1090_v30 = vunpack.i.h.bf16 %v1088_v19  ;;  %v1101_v31 = vmax.bf16 %v2348_v8, %v1100_v17  ;;  %v1113_v36 = vmax.bf16 %v2351_v13, %v1112_v20 }
  0x5b   :  { %2173 = vmatpush3.bf16.msra.mxu0 %v2322_v42  ;;  %v1057_v25 = vrot.slane %v1056_v15, 1  ;;  %2188 = vmatprep.mubr.msk.bf16.mxu0 %vm2410_vm0, %v2409_v2  ;;  %v1045_v33 = vmax.f32 %v1043_v14, %v1044_v24  ;;  %v1078_v35 = vmax.f32 %v1076_v26, %v1077_v27  ;;  %v1126_v49 = vmax.bf16 %v2355_v23, %v1125_v21 }
  0x5c   :  { %2174 = vmatprep.subr.bf16.mxu0 %v2409_v2  ;;  %v1069_v18 = vmax.f32 %v1067_v63, %v1068_v11  ;;  %v1091_v39 = vmax.f32 %v1089_v29, %v1090_v30  ;;  %v1102_v40 = vunpack.i.l.bf16 %v1101_v31  ;;  %v1103_v41 = vunpack.i.h.bf16 %v1101_v31  ;;  %v2361_v29 = vld [vmem:[%s3061_s8 + $0x30] sm:$0xff]  }
  0x5d   :  { %v1058_v34 = vmax.f32 %v1056_v15, %v1057_v25  ;;  %v1046_v42 = vpack.i.bf16 %v1045_v33, %v1045_v33  ;;  %v1079_v44 = vrot.slane %v1078_v35, 4  ;;  %v1114_v45 = vmax.bf16 %v2352_v22, %v1113_v36 }
  0x5e   :  { %v1070_v28 = vrot.slane %v1069_v18, 1  ;;  %v1092_v47 = vrot.slane %v1091_v39, 4  ;;  %v1104_v48 = vmax.f32 %v1102_v40, %v1103_v41  ;;  %v1127_v57 = vmax.bf16 %v2356_v37, %v1126_v49 }
  0x5f   :  { %2175 = vmatpush3.bf16.msra.mxu0 %v2324_v1  ;;  %v1059_v43 = vpack.i.bf16 %v1058_v34, %v1058_v34  ;;  %v1080_v51 = vmax.f32 %v1078_v35, %v1079_v44  ;;  %v1115_v52 = vunpack.i.l.bf16 %v1114_v45  ;;  %v1116_v53 = vunpack.i.h.bf16 %v1114_v45 }
  0x60   :  { %v1071_v38 = vmax.f32 %v1069_v18, %v1070_v28  ;;  %2176 = vmatprep.subr.bf16.mxu0 %v2409_v2  ;;  %v1203_v54 = vunpack.c.l.b16 %v1046_v42  ;;  %v1093_v55 = vmax.f32 %v1091_v39, %v1092_v47  ;;  %v1105_v56 = vrot.slane %v1104_v48, 4  ;;  %v2360_v18 = vld [vmem:[%s3061_s8 + $0x28] sm:$0xff]  }
  0x61   :  { %v1204_v58 = vunpack.c.l.b16 %v1059_v43  ;;  %v1081_v59 = vrot.slane %v1080_v51, 2  ;;  %v1117_v60 = vmax.f32 %v1115_v52, %v1116_v53  ;;  %v1128_v0 = vunpack.i.l.bf16 %v1127_v57 }
  0x62   :  { %v1072_v46 = vpack.i.bf16 %v1071_v38, %v1071_v38  ;;  %v1094_v62 = vrot.slane %v1093_v55, 2  ;;  %v1106_v63 = vmax.f32 %v1104_v48, %v1105_v56  ;;  %v1129_v1 = vunpack.i.h.bf16 %v1127_v57 }
  0x63   :  { %2177 = vmatpush3.bf16.msra.mxu0 %v2357_v32  ;;  %v1082_v3 = vmax.f32 %v1080_v51, %v1081_v59  ;;  %v1118_v4 = vrot.slane %v1117_v60, 4  ;;  %v1211_v5 = vsel %vm1154_vm1, %v1204_v58, %v1203_v54 }
  0x64   :  { %2178 = vmatprep.subr.bf16.mxu0 %v2409_v2  ;;  %v1205_v61 = vunpack.c.l.b16 %v1072_v46  ;;  %v1095_v7 = vmax.f32 %v1093_v55, %v1094_v62  ;;  %v1107_v8 = vrot.slane %v1106_v63, 2  ;;  %v1130_v9 = vmax.f32 %v1128_v0, %v1129_v1 }
  0x65   :  { %v1083_v11 = vrot.slane %v1082_v3, 1  ;;  %v1119_v12 = vmax.f32 %v1117_v60, %v1118_v4 }
  0x66   :  { %v1212_v10 = vsel %vm1156_vm2, %v1205_v61, %v1211_v5  ;;  %v1096_v13 = vrot.slane %v1095_v7, 1  ;;  %v1108_v14 = vmax.f32 %v1106_v63, %v1107_v8  ;;  %v1131_v15 = vrot.slane %v1130_v9, 4 }
  0x67   :  { %2179 = vmatpush3.bf16.msra.mxu0 %v2358_v50  ;;  %v1084_v16 = vmax.f32 %v1082_v3, %v1083_v11  ;;  %v1120_v17 = vrot.slane %v1119_v12, 2 }
  0x68   :  { %2180 = vmatprep.subr.bf16.mxu0 %v2409_v2  ;;  %v1097_v19 = vmax.f32 %v1095_v7, %v1096_v13  ;;  %v1109_v20 = vrot.slane %v1108_v14, 1  ;;  %v1132_v21 = vmax.f32 %v1130_v9, %v1131_v15 }
  0x69   :  { %v1085_v22 = vpack.i.bf16 %v1084_v16, %v1084_v16  ;;  %v1121_v23 = vmax.f32 %v1119_v12, %v1120_v17 }
  0x6a   :  { %v1098_v24 = vpack.i.bf16 %v1097_v19, %v1097_v19  ;;  %v1110_v25 = vmax.f32 %v1108_v14, %v1109_v20  ;;  %v1133_v26 = vrot.slane %v1132_v21, 2 }
  0x6b   :  { %2181 = vmatpush3.bf16.msra.mxu0 %v2359_v6  ;;  %v1122_v27 = vrot.slane %v1121_v23, 1  ;;  %v1206_v28 = vunpack.c.l.b16 %v1085_v22 }
  0x6c   :  { %2182 = vmatprep.subr.bf16.mxu0 %v2409_v2  ;;  %v1111_v30 = vpack.i.bf16 %v1110_v25, %v1110_v25  ;;  %v1134_v31 = vmax.f32 %v1132_v21, %v1133_v26  ;;  %v1207_v32 = vunpack.c.l.b16 %v1098_v24 }
  0x6f   :  { %2183 = vmatpush3.bf16.msra.mxu0 %v2360_v18 }
  0x70   :  { %2184 = vmatprep.subr.bf16.mxu0 %v2409_v2 }
  0x71   :  { %22 = vsyncpa [#allocation3], 0  ;;  %v1123_v33 = vmax.f32 %v1121_v23, %v1122_v27  ;;  %v1213_v34 = vsel %vm1158_vm3, %v1206_v28, %v1212_v10  ;;  %v1135_v35 = vrot.slane %v1134_v31, 1  ;;  %v1208_v36 = vunpack.c.l.b16 %v1111_v30  ;;  %v2362_v39 = vld [vmem:[%s3061_s8 + $0x38] sm:$0xff]   ;;  %v1533_v45 = vld [vmem:[%s3056_s3] sm:$0xf] }
  0x72   :  { %v1214_v37 = vsel %vm1160_vm4, %v1207_v32, %v1213_v34  ;;  %v1501_v54 = vlaneseq  ;;  %v2037_v56 = vld [vmem:[%s3058_s5] ss:$0 sm:$0xff]  ;;  %v2365_v9 = vld [vmem:[%s3066_s13 + $0x8] sm:$0xff]   ;;  %v2367_v20 = vld [vmem:[%s3066_s13 + $0x10] sm:$0xff]   ;;  %s2411_s8 = smov [#allocation2]  }
  0x73   :  { %v1124_v38 = vpack.i.bf16 %v1123_v33, %v1123_v33  ;;  %2185 = vmatpush3.bf16.msra.mxu0 %v2361_v29  ;;  %v1136_v40 = vmax.f32 %v1134_v31, %v1135_v35  ;;  %v1215_v41 = vsel %vm1162_vm5, %v1208_v36, %v1214_v37  ;;  %v2064_v57 = vld [vmem:[%s3062_s9] ss:$0 sm:$0xff]  ;;  %v2366_v19 = vld [vmem:[%s3065_s12 + $0x8] sm:$0xff]   ;;  %v2368_v21 = vld [vmem:[%s3065_s12 + $0x10] sm:$0xff]   ;;  %s1933_s0 = sshll.u32 %s2411_s8, 4  ;;  %s1934_s0 = int_to_ptr.vmem [resolvable:$true] %s1933_s0 }
  0x74   :  { %2186 = vmatprep.subr.bf16.mxu0 %v2409_v2  ;;  %v2936_v55 = vand.u32 127, %v1501_v54  ;;  %v2363_v7 = vld [vmem:[%s3066_s13] sm:$0xff]   ;;  %v2369_v22 = vld [vmem:[%s3066_s13 + $0x18] sm:$0xff]   ;;  %v2373_v26 = vld [vmem:[%s3066_s13 + $0x28] sm:$0xff]   ;;  %s2385_s30 = scalar_lea.vmem %s1934_s0, 128  ;;  %p2390_p1 = scmp.lt.s32.totalorder %s1934_s0, %s1934_s0 }
  0x75   :  { %v1209_v42 = vunpack.c.l.b16 %v1124_v38  ;;  %v1137_v43 = vpack.i.bf16 %v1136_v40, %v1136_v40  ;;  %v2364_v8 = vld [vmem:[%s3065_s12] sm:$0xff]   ;;  %v2370_v23 = vld [vmem:[%s3065_s12 + $0x18] sm:$0xff]   ;;  %v2374_v27 = vld [vmem:[%s3065_s12 + $0x28] sm:$0xff]   ;;  %p2386_p0 = scmp.ne.s32.totalorder %s1934_s0, %s2385_s30  ;;  %p2391_p2 = scmp.lt.s32.totalorder %s2385_s30, %s2385_s30 }
  0x76   :  { %vm1647_vm8 = vcmp.lt.s32.totalorder %v2936_v55, 64  ;;  %v2371_v24 = vld [vmem:[%s3066_s13 + $0x20] sm:$0xff]   ;;  %v2375_v28 = vld [vmem:[%s3066_s13 + $0x30] sm:$0xff]   ;;  %v2377_v30 = vld [vmem:[%s3066_s13 + $0x38] sm:$0xff]   ;;  %vm1897_vm9 = vcmp.lt.s32.totalorder %v2936_v55, 32 }
  0x77   :  { %v1216_v44 = vsel %vm1164_vm6, %v1209_v42, %v1215_v41  ;;  %2187 = vmatpush3.bf16.msra.mxu0 %v2362_v39  ;;  %v1210_v46 = vunpack.c.l.b16 %v1137_v43  ;;  %v2372_v25 = vld [vmem:[%s3065_s12 + $0x20] sm:$0xff]   ;;  %v2376_v29 = vld [vmem:[%s3065_s12 + $0x30] sm:$0xff]   ;;  %v2378_v31 = vld [vmem:[%s3065_s12 + $0x38] sm:$0xff]   ;;  %p2392_p3 = por %p2391_p2, %p2390_p1 }
  0x78   :  { %2212 = vmatprep.subr.bf16.mxu0 %v2409_v2  ;;  %v2073_v39 = vld [vmem:[%s3063_s10] ss:$0 sm:$0xff] }
  0x79   :  { %v1217_v47 = vsel %vm1166_vm7, %v1210_v46, %v1216_v44  ;;  %v2074_v41 = vld [vmem:[%s3064_s11] ss:$0 sm:$0xff]  ;;  %p2393_p4 = pnand %p2392_p3, %p2386_p0 }
  0x7a   :  { %2189 = vmatmul.mubr.bf16.vlgmr.msra.gmra.mrb[4].mxu0 %v1533_v45  ;;  %v1218_v48 = vpack.c.b16 %v1217_v47, %v1217_v47  ;;  %v2062_v43 = vld [vmem:[%s3059_s6] ss:$0 sm:$0xff] }
  0x7b   :  { %2228 = vmatprep.mubr.msk.bf16.mxu0 %vm2410_vm0, %v2409_v2  ;;  %2213 = vmatpush3.bf16.msra.mxu0 %v2364_v8  ;;  %v2063_v46 = vld [vmem:[%s3060_s7] ss:$0 sm:$0xff] }
  0x7c   :  { %2169 = vmatmul.mubr.bf16.vlgmr.msra.gmra.mrb[0].mxu1 %v1218_v48  ;;  %2214 = vmatprep.subr.bf16.mxu0 %v2409_v2 }
  0x7d   :  { %2208 = vmatprep.mubr.msk.bf16.mxu1 %vm2410_vm0, %v2409_v2  ;;  %2193 = vmatpush3.bf16.msra.mxu1 %v2363_v7 }
  0x7e   :  { %2194 = vmatprep.subr.bf16.mxu1 %v2409_v2 }
  0x7f   :  { %2215 = vmatpush3.bf16.msra.mxu0 %v2366_v19 }
  0x80   :  { %2216 = vmatprep.subr.bf16.mxu0 %v2409_v2 }
  0x81   :  { %2195 = vmatpush3.bf16.msra.mxu1 %v2365_v9 }
  0x82   :  { %2196 = vmatprep.subr.bf16.mxu1 %v2409_v2 }
  0x83   :  { %2217 = vmatpush3.bf16.msra.mxu0 %v2368_v21 }
  0x84   :  { %2218 = vmatprep.subr.bf16.mxu0 %v2409_v2 }
  0x85   :  { %2197 = vmatpush3.bf16.msra.mxu1 %v2367_v20 }
  0x86   :  { %2198 = vmatprep.subr.bf16.mxu1 %v2409_v2 }
  0x87   :  { %2219 = vmatpush3.bf16.msra.mxu0 %v2370_v23 }
  0x88   :  { %2220 = vmatprep.subr.bf16.mxu0 %v2409_v2 }
  0x89   :  { %2199 = vmatpush3.bf16.msra.mxu1 %v2369_v22 }
  0x8a   :  { %2200 = vmatprep.subr.bf16.mxu1 %v2409_v2 }
  0x8b   :  { %2221 = vmatpush3.bf16.msra.mxu0 %v2372_v25 }
  0x8c   :  { %2222 = vmatprep.subr.bf16.mxu0 %v2409_v2 }
  0x8d   :  { %2201 = vmatpush3.bf16.msra.mxu1 %v2371_v24 }
  0x8e   :  { %2202 = vmatprep.subr.bf16.mxu1 %v2409_v2 }
  0x8f   :  { %2223 = vmatpush3.bf16.msra.mxu0 %v2374_v27 }
  0x90   :  { %2224 = vmatprep.subr.bf16.mxu0 %v2409_v2 }
  0x91   :  { %2203 = vmatpush3.bf16.msra.mxu1 %v2373_v26 }
  0x92   :  { %2204 = vmatprep.subr.bf16.mxu1 %v2409_v2 }
  0x93   :  { %2225 = vmatpush3.bf16.msra.mxu0 %v2376_v29 }
  0x94   :  { %2226 = vmatprep.subr.bf16.mxu0 %v2409_v2 }
  0x95   :  { %2205 = vmatpush3.bf16.msra.mxu1 %v2375_v28 }
  0x96   :  { %2206 = vmatprep.subr.bf16.mxu1 %v2409_v2 }
  0x97   :  { %2227 = vmatpush3.bf16.msra.mxu0 %v2378_v31 }
  0x99   :  { %2207 = vmatpush3.bf16.msra.mxu1 %v2377_v30 }
 0x12d   :  { %v2110_v49 = vpop.f32.mrb[0].mxu0 }
 0x12e   :  { %v2111_v50 = vpop.f32.mrb[1].mxu0 }
 0x12f   :  { %v2112_v51 = vadd.f32 %v2111_v50, %v2110_v49  ;;  %v2113_v52 = vpop.f32.mrb[2].mxu0 }
 0x130   :  { %v2114_v53 = vpop.f32.mrb[3].mxu0 }
 0x131   :  { %v1454_v58 = vadd.f32 %v2112_v51, %v2037_v56 }
 0x14d   :  { %v1639_v59 = vpop.f32.mrb[4].mxu0 }
 0x14e   :  { %v1640_v60 = vadd.f32 %v2064_v57, %v1639_v59  ;;  %v2190_v61 = vpop.f32.mrb[5].mxu0 }
 0x14f   :  { %v1642_v62 = vpop.f32.mrb[6].mxu0  ;;  %v1493_v63 = vpop.f32.mrb[0].mxu1 }
 0x150   :  { %v2191_v0 = vpop.f32.mrb[7].mxu0  ;;  %v1648_v1 = vsel %vm1647_vm8, %v1640_v60, 0.0  ;;  %v1494_v3 = vadd.f32 %v1493_v63, %v1454_v58  ;;  %v2170_v4 = vpop.f32.mrb[1].mxu1  ;;  %v2091_v60 = vld [vmem:[%s3067_s14] ss:$0 sm:$0xff] }
 0x151   :  { %1649 = vadd.xlane.f32.xlu0 %v1648_v1  ;;  %v1496_v5 = vpop.f32.mrb[2].mxu1 }
 0x152   :  { %v2171_v6 = vpop.f32.mrb[3].mxu1 }
 0x155   :  { %1505 = vadd.xlane.f32.xlu0 %v1494_v3 }
 0x1de   :  { %v1650_v10 = vpop.xlane.xlu0 %1649 }
 0x1df   :  { %v1651_v11 = vmul.f32 0.015625, %v1650_v10 }
 0x1e1   :  { %v1652_v12 = vsub.f32 %v1648_v1, %v1651_v11 }
 0x1e2   :  { %v1506_v13 = vpop.xlane.xlu0 %1505 }
 0x1e3   :  { %v1507_v14 = vmul.f32 0.0078125, %v1506_v13  ;;  %v1653_v15 = vsel %vm1647_vm8, %v1652_v12, 0.0  ;;  %v2092_v13 = vld [vmem:[%s3068_s15] ss:$0 sm:$0xff] }
 0x1e4   :  { %v1654_v16 = vmul.f32 %v1653_v15, %v1653_v15 }
 0x1e5   :  { %v1508_v17 = vsub.f32 %v1494_v3, %v1507_v14 }
 0x1e6   :  { %1655 = vadd.xlane.f32.xlu1 %v1654_v16 }
 0x1e7   :  { %v1510_v18 = vmul.f32 %v1508_v17, %v1508_v17 }
 0x1ea   :  { %1511 = vadd.xlane.f32.xlu1 %v1510_v18 }
 0x273   :  { %v1656_v32 = vpop.xlane.xlu1 %1655 }
 0x274   :  { %v1657_v33 = vmul.f32 0.015625, %v1656_v32 }
 0x276   :  { %v1658_v34 = vadd.f32 1e-05, %v1657_v33 }
 0x277   :  { %v1512_v35 = vpop.xlane.xlu1 %1511 }
 0x278   :  { %2379 = vrsqrt.f32 %v1658_v34  ;;  %v1513_v36 = vmul.f32 0.0078125, %v1512_v35 }
 0x27a   :  { %v1514_v37 = vadd.f32 1e-05, %v1513_v36 }
 0x27c   :  { %2381 = vrsqrt.f32 %v1514_v37 }
 0x282   :  { %v2380_v38 = vpop.eup %2379 }
 0x283   :  { %v1660_v40 = vmul.f32 %v2380_v38, %v1653_v15  ;;  %v2093_v15 = vld [vmem:[%s3069_s16] ss:$0 sm:$0xff] }
 0x285   :  { %v1667_v2 = vmul.f32 %v2073_v39, %v1660_v40 }
 0x286   :  { %v2382_v42 = vpop.eup %2381 }
 0x287   :  { %v1674_v44 = vadd.f32 %v2074_v41, %v1667_v2  ;;  %v1516_v45 = vmul.f32 %v2382_v42, %v1508_v17 }
 0x289   :  { %v1675_v47 = vsel %vm1647_vm8, %v1674_v44, 0.0  ;;  %v1523_v48 = vmul.f32 %v2062_v43, %v1516_v45 }
 0x28a   :  { %v1676_v49 = vmax.f32 %v1675_v47, 0.0 }
 0x28b   :  { %v1530_v50 = vadd.f32 %v2063_v46, %v1523_v48 }
 0x28c   :  { %v1694_v51 = vpack.c.bf16 %v1676_v49, %v1676_v49 }
 0x28d   :  { %v1532_v52 = vmax.f32 %v1530_v50, 0.0 }
 0x28e   :  { %2209 = vmatmul.mubr.bf16.vlgmr.msra.gmra.mrb[4].mxu1 %v1694_v51 }
 0x28f   :  { %v1677_v53 = vpack.c.bf16 %v1532_v52, %v1532_v52 }
 0x291   :  { %2229 = vmatmul.mubr.bf16.vlgmr.msra.gmra.mrb[8].mxu0 %v1677_v53 }
 0x361   :  { %v1793_v54 = vpop.f32.mrb[4].mxu1 }
 0x362   :  { %v2210_v56 = vpop.f32.mrb[5].mxu1 }
 0x363   :  { %v1796_v57 = vpop.f32.mrb[6].mxu1 }
 0x364   :  { %v2211_v58 = vpop.f32.mrb[7].mxu1  ;;  %v1881_v59 = vpop.f32.mrb[8].mxu0 }
 0x365   :  { %v1882_v61 = vadd.f32 %v1881_v59, %v1793_v54  ;;  %v2230_v62 = vpop.f32.mrb[9].mxu0 }
 0x366   :  { %v1884_v63 = vpop.f32.mrb[10].mxu0 }
 0x367   :  { %v2231_v0 = vpop.f32.mrb[11].mxu0  ;;  %v1894_v1 = vadd.f32 %v2091_v60, %v1882_v61 }
 0x369   :  { %v1898_v3 = vsel %vm1897_vm9, %v1894_v1, 0.0 }
 0x36a   :  { %1899 = vadd.xlane.f32.xlu0 %v1898_v3 }
 0x3f7   :  { %v1900_v4 = vpop.xlane.xlu0 %1899 }
 0x3f8   :  { %v1901_v5 = vmul.f32 0.03125, %v1900_v4 }
 0x3fa   :  { %v1902_v6 = vsub.f32 %v1898_v3, %v1901_v5 }
 0x3fc   :  { %v1903_v7 = vsel %vm1897_vm9, %v1902_v6, 0.0 }
 0x3fd   :  { %v1904_v8 = vmul.f32 %v1903_v7, %v1903_v7 }
 0x3ff   :  { %1905 = vadd.xlane.f32.xlu1 %v1904_v8 }
 0x48c   :  { %v1906_v9 = vpop.xlane.xlu1 %1905 }
 0x48d   :  { %v1907_v10 = vmul.f32 0.03125, %v1906_v9 }
 0x48f   :  { %v1908_v11 = vadd.f32 1e-05, %v1907_v10 }
 0x491   :  { %2383 = vrsqrt.f32 %v1908_v11 }
 0x49b   :  { %v2384_v12 = vpop.eup %2383 }
 0x49c   :  { %v1910_v14 = vmul.f32 %v2384_v12, %v1903_v7 }
 0x49e   :  { %v1917_v16 = vmul.f32 %v2092_v13, %v1910_v14 }
 0x4a0   :  { %v1924_v17 = vadd.f32 %v2093_v15, %v1917_v16 }
 0x4a2   :  { %v1925_v18 = vsel %vm1897_vm9, %v1924_v17, 0.0 }
 0x4a3   :  { %1926 = vst [vmem:[#allocation2] sm:$0xff] %v1925_v18 }
 0x4a4   :  { %2396 = shalt.err (!%p2393_p4)
}
 0x4a5   :  { %s2397_s16 = scalar_lea.hbm %s3070_s17, 128 }
 0x4a6   :  { %p2398_p5 = scmp.ne.s32.totalorder %s3070_s17, %s2397_s16  ;;  %p2401_p6 = scmp.lt.u32.totalorder %s2397_s16, %s3070_s17 }
 0x4a8   :  { %p2403_p7 = pnand %p2401_p6, %p2398_p5 }
 0x4aa   :  { %2406 = shalt.err (!%p2403_p7)
}
 0x4ab   :  { %1936 = dma.vmem_to_hbm [thread:$0]  %s1934_s0, 128, %s3070_s17, [#allocation3]  }
 0x4ac   :  { %2407 = dma.done.wait [#allocation3], 128  }
 0x4ad   :  { %2408 = vsyncadd [#allocation3], 4294967168 }
 0x4ae   :  { %1940 = vsyncpa [#allocation3], 1 }

</bundles_post_ra>
